<compile_context>
chip_gen: v7x
topology: tpu7x:2x2x1
jax: 0.10.0
libtpu: 0.0.40
codegen_flags: <defaults>
</compile_context>

<pallas_src>
import functools

import jax
import jax.numpy as jnp
import numpy as np
from jax.experimental import pallas as pl
from jax.experimental.pallas import tpu as pltpu


def _round_up(x, m):
    return (x + m - 1) // m * m


def _decoder_kernel(
    enc_ref,      # (Bp, S, H)      f32  encoder outputs (batch-padded)
    emb_ref,      # ((T-1)*Bp, E)   mxu  teacher-forced embeddings, time-major flat
    venc_ref,     # (1, H)          f32  pre-composed attention vec (encoder feats)
    vh_ref,       # (1, H)          f32  pre-composed attention vec (hidden state)
    c_ref,        # (1, 1)          f32  pre-composed attention bias constant
    wihe_ref,     # (E, 3H)         mxu  GRU W_ih embed half, pre-transposed
    wihc_ref,     # (H, 3H)         mxu  GRU W_ih context half, pre-transposed
    whh_ref,      # (H, 3H)         mxu  GRU W_hh, pre-transposed
    bih_ref,      # (1, 3H)         f32
    bhh_ref,      # (1, 3H)         f32
    wout_ref,     # (H, Vp)         mxu  output projection, pre-transposed, padded
    bout_ref,     # (1, Vp)         f32
    out_ref,      # ((T-1)*Bp, Vp)  f32  logits, time-major flat
    h_all_ref,    # ((T-1)*Bp, H)   f32  VMEM scratch: per-step hidden states
    *,
    hidden_size: int,
    batch: int,
    num_steps: int,
    mxu_dtype,
):
    H = hidden_size
    Bp = batch

    enc = enc_ref[...]                                           # (Bp, S, H) f32

    # Step-invariant half of the (purely linear) attention score.
    scores_enc = jnp.sum(enc * venc_ref[...][None, :, :], axis=-1) + c_ref[...]  # (Bp, S)

    # ---- Batched embed-half of the GRU input GEMM: M = (T-1)*Bp, not Bp ----
    gi_embed_all = (jnp.dot(emb_ref[...], wihe_ref[...],
                            preferred_element_type=jnp.float32)
                    + bih_ref[...])                              # ((T-1)*Bp, 3H) f32

    # Loop-invariant broadcasts hoisted out of the unrolled loop.
    v_h = jnp.broadcast_to(vh_ref[...], (Bp, H))                 # (Bp, H)
    bhh = jnp.broadcast_to(bhh_ref[...], (Bp, 3 * H))            # (Bp, 3H)
    wihc = wihc_ref[...]
    whh = whh_ref[...]

    # init_state(batch_size) == zeros
    h = jnp.zeros((Bp, H), jnp.float32)

    # Statically unrolled time loop (num_steps = T-1 is small and static).
    # TODO(synk): for production T (>~32) switch to lax.fori_loop (h carried,
    #             pl.ds(i*Bp, Bp) slices of gi_embed_all / h_all_ref) to bound
    #             vreg live ranges and compile time.
    for i in range(num_steps):
        # ---------------- Attention (pre-composed linear chain) -------------
        s_h = jnp.sum(h * v_h, axis=-1, keepdims=True)           # (Bp, 1)
        scores = scores_enc + s_h                                # (Bp, S)
        scores = scores - jnp.max(scores, axis=-1, keepdims=True)
        e = jnp.exp(scores)
        attn = e * pl.reciprocal(jnp.sum(e, axis=-1, keepdims=True), approx=True)
        # VPU+XLU context reduce; S is tiny here (use an MXU dot at large S).
        context = jnp.sum(attn[:, :, None] * enc, axis=1)        # (Bp, H) f32

        # ---------------- GRU cell (PyTorch gate order r, z, n) -------------
        gi = (gi_embed_all[i * Bp:(i + 1) * Bp]                  # embed half (hoisted)
              + jnp.dot(context.astype(mxu_dtype), wihc,
                        preferred_element_type=jnp.float32))     # (Bp, 3H)
        gh = jnp.dot(h.astype(mxu_dtype), whh,
                     preferred_element_type=jnp.float32) + bhh   # (Bp, 3H)
        r = jax.nn.sigmoid(gi[:, 0 * H:1 * H] + gh[:, 0 * H:1 * H])
        z = jax.nn.sigmoid(gi[:, 1 * H:2 * H] + gh[:, 1 * H:2 * H])
        n = jnp.tanh(gi[:, 2 * H:3 * H] + r * gh[:, 2 * H:3 * H])
        h = (1.0 - z) * n + z * h                                # (Bp, H)

        h_all_ref[i * Bp:(i + 1) * Bp, :] = h

    # ---- Vocab projection ONCE over all steps (dropout = identity) ---------
    # One ((T-1)*Bp, H) @ (H, Vp) matmul and a single lane-dense store.
    # TODO(synk): at production V/H/T (esp. v7x, 64 MiB VMEM) tile the Vp axis
    #             with a "parallel" grid axis (2 TCs) and pipeline the store.
    h_all = h_all_ref[...]
    out_ref[...] = (jnp.dot(h_all.astype(mxu_dtype), wout_ref[...],
                            preferred_element_type=jnp.float32)
                    + bout_ref[...])


def decoder_rnn_forward(encoder_output, targets, params, *, hidden_size,
                        embed_dim, vocab_size, mxu_dtype=jnp.bfloat16):
    """Pallas implementation of DecoderRNN.forward (deterministic variant)."""
    B, S, H = encoder_output.shape
    assert H == hidden_size
    T = targets.shape[1]
    E, V = embed_dim, vocab_size
    nsteps = T - 1
    Vp = _round_up(V, 128)        # lane-dense logits / W_out columns
    Bp = _round_up(B, 8)          # sublane-dense batch rows (f32: 8)

    # Glue: embedding gather + teacher-forced inputs, time-major flat layout.
    emb = params["embedding"][targets].astype(jnp.float32)               # (B, T, E)
    emb_tm = jnp.transpose(emb[:, :nsteps, :], (1, 0, 2))                 # (T-1, B, E)
    emb_flat = (jnp.zeros((nsteps, Bp, E), jnp.float32)
                .at[:, :B].set(emb_tm)
                .reshape(nsteps * Bp, E)
                .astype(mxu_dtype))                                       # ((T-1)*Bp, E)

    enc_p = (jnp.zeros((Bp, S, H), jnp.float32)
             .at[:B].set(encoder_output.astype(jnp.float32)))             # (Bp, S, H)

    # ---- Pre-compose the purely linear attention scorer (host side) --------
    W1, b1 = params["W1_w"], params["W1_b"]              # (H, 2H), (1, H)
    W2, b2 = params["W2_w"], params["W2_b"]
    W3, b3 = params["W3_w"], params["W3_b"]
    tw = params["to_weight_w"]                           # (1, H)
    u3 = W3.T @ tw.T                                     # (H, 1)
    u2 = W2.T @ u3                                       # (H, 1)
    v_enc = (W1[:, :H].T @ u2).T                         # (1, H)  acts on enc
    v_h = (W1[:, H:].T @ u2).T                           # (1, H)  acts on hidden
    c = b1 @ u2 + b2 @ u3 + b3 @ tw.T                    # (1, 1)

    # ---- Pre-transpose / split GRU & output weights; cast MXU operands -----
    Wih = params["gru_w_ih"]                             # (3H, E+H), [embed|context]
    wihe_T = Wih[:, :E].T.astype(mxu_dtype)              # (E, 3H)
    wihc_T = Wih[:, E:].T.astype(mxu_dtype)              # (H, 3H)
    whh_T = params["gru_w_hh"].T.astype(mxu_dtype)       # (H, 3H)
    wout_T = (jnp.zeros((H, Vp), jnp.float32)
              .at[:, :V].set(params["out_w"].T)
              .astype(mxu_dtype))                        # (H, Vp)
    bout_p = jnp.zeros((1, Vp), jnp.float32).at[:, :V].set(params["out_b"])

    kernel = functools.partial(_decoder_kernel, hidden_size=H, batch=Bp,
                               num_steps=nsteps, mxu_dtype=mxu_dtype)

    def full(shape):
        return pl.BlockSpec(shape, lambda i, _n=len(shape): (0,) * _n)

    out_flat = pl.pallas_call(
        kernel,
        out_shape=jax.ShapeDtypeStruct((nsteps * Bp, Vp), jnp.float32),
        grid_spec=pltpu.PrefetchScalarGridSpec(
            num_scalar_prefetch=0,
            grid=(1,),
            in_specs=[
                full((Bp, S, H)),                        # encoder_output (padded)
                full((nsteps * Bp, E)),                  # embedded targets (flat)
                full((1, H)), full((1, H)), full((1, 1)),        # v_enc, v_h, c
                full((E, 3 * H)), full((H, 3 * H)), full((H, 3 * H)),  # GRU weights
                full((1, 3 * H)), full((1, 3 * H)),      # GRU biases
                full((H, Vp)), full((1, Vp)),            # output projection
            ],
            out_specs=full((nsteps * Bp, Vp)),
            scratch_shapes=[pltpu.VMEM((nsteps * Bp, H), jnp.float32)],
        ),
        compiler_params=pltpu.CompilerParams(
            dimension_semantics=("arbitrary",)),
    )(
        enc_p, emb_flat, v_enc, v_h, c,
        wihe_T, wihc_T, whh_T,
        params["gru_b_ih"].astype(jnp.float32),
        params["gru_b_hh"].astype(jnp.float32),
        wout_T, bout_p,
    )

    # Strip batch / vocab padding; back to (B, T-1, V).
    seq_logprob = jnp.transpose(out_flat.reshape(nsteps, Bp, Vp)[:, :B, :V],
                                (1, 0, 2))
    caption_preds = jnp.argmax(seq_logprob, axis=2).astype(jnp.int32)
    return seq_logprob, caption_preds


# --------------------------- pure-JAX reference ---------------------------
def decoder_rnn_reference(encoder_output, targets, params, *, hidden_size):
    H = hidden_size
    B, S, _ = encoder_output.shape
    T = targets.shape[1]
    targets_emb = params["embedding"][targets]               # (B, T, E)
    h = jnp.zeros((B, H), jnp.float32)
    logits_all = []
    for i in range(T - 1):
        embed = targets_emb[:, i]
        rep = jnp.broadcast_to(h[:, None, :], (B, S, H))
        matching = jnp.concatenate([encoder_output, rep], axis=2)
        x = matching @ params["W1_w"].T + params["W1_b"]
        x = x @ params["W2_w"].T + params["W2_b"]
        x = x @ params["W3_w"].T + params["W3_b"]
        scores = (x @ params["to_weight_w"].T)[..., 0]
        attn = jax.nn.softmax(scores, axis=1)
        context = jnp.einsum("bs,bsh->bh", attn, encoder_output)
        gru_in = jnp.concatenate([embed, context], axis=1)
        gi = gru_in @ params["gru_w_ih"].T + params["gru_b_ih"]
        gh = h @ params["gru_w_hh"].T + params["gru_b_hh"]
        r = jax.nn.sigmoid(gi[:, :H] + gh[:, :H])
        z = jax.nn.sigmoid(gi[:, H:2 * H] + gh[:, H:2 * H])
        n = jnp.tanh(gi[:, 2 * H:] + r * gh[:, 2 * H:])
        h = (1.0 - z) * n + z * h
        logits_all.append(h @ params["out_w"].T + params["out_b"])
    seq_logprob = jnp.stack(logits_all, axis=1)
    return seq_logprob, jnp.argmax(seq_logprob, axis=2).astype(jnp.int32)


if __name__ == "__main__":
    # Small, module-consistent shapes.
    B, S_enc, T = 2, 8, 8
    hidden_size, embed_dim, vocab_size = 32, 16, 48

    key = jax.random.PRNGKey(0)
    ks = jax.random.split(key, 16)

    def rnd(k, shape, scale=0.1):
        return (scale * jax.random.normal(k, shape)).astype(jnp.float32)

    H, E, V = hidden_size, embed_dim, vocab_size
    params = {
        "embedding":   rnd(ks[0], (V, E), 1.0),
        "W1_w":        rnd(ks[1], (H, 2 * H)),
        "W1_b":        rnd(ks[2], (1, H)),
        "W2_w":        rnd(ks[3], (H, H)),
        "W2_b":        rnd(ks[4], (1, H)),
        "W3_w":        rnd(ks[5], (H, H)),
        "W3_b":        rnd(ks[6], (1, H)),
        "to_weight_w": rnd(ks[7], (1, H)),
        "gru_w_ih":    rnd(ks[8], (3 * H, E + H)),
        "gru_w_hh":    rnd(ks[9], (3 * H, H)),
        "gru_b_ih":    rnd(ks[10], (1, 3 * H)),
        "gru_b_hh":    rnd(ks[11], (1, 3 * H)),
        "out_w":       rnd(ks[12], (V, H)),
        "out_b":       rnd(ks[13], (1, V)),
    }

    encoder_output = rnd(ks[14], (B, S_enc, H), 1.0)
    targets = jax.random.randint(ks[15], (B, T), 0, V, dtype=jnp.int32)

    ref_logprob, ref_preds = decoder_rnn_reference(
        encoder_output, targets, params, hidden_size=H)
    ref_logprob = np.asarray(ref_logprob)
    ref_sorted = np.sort(ref_logprob, axis=2)
    margin = ref_sorted[..., -1] - ref_sorted[..., -2]

    # ---- Run 1: f32 MXU operands — tight numerical check -------------------
    sp32, cp32 = decoder_rnn_forward(
        encoder_output, targets, params,
        hidden_size=H, embed_dim=E, vocab_size=V, mxu_dtype=jnp.float32)
    sp32 = jax.block_until_ready(sp32)
    cp32 = jax.block_until_ready(cp32)
    # Tolerance covers the approx (EUP) softmax reciprocal and the
    # fp-reassociation of the pre-composed linear attention chain.
    np.testing.assert_allclose(np.asarray(sp32), ref_logprob, rtol=2e-3, atol=2e-3)
    sep32 = margin > 1e-2
    np.testing.assert_array_equal(np.asarray(cp32)[sep32],
                                  np.asarray(ref_preds)[sep32])

    # ---- Run 2: bf16 MXU operands (default, production path on v6e/v7x) ----
    spbf, cpbf = decoder_rnn_forward(
        encoder_output, targets, params,
        hidden_size=H, embed_dim=E, vocab_size=V, mxu_dtype=jnp.bfloat16)
    spbf = jax.block_until_ready(spbf)
    cpbf = jax.block_until_ready(cpbf)
    # bf16 operand rounding accumulates through the 7-step GRU recurrence.
    np.testing.assert_allclose(np.asarray(spbf), ref_logprob, rtol=5e-2, atol=5e-2)
    sepbf = margin > 1e-1
    np.testing.assert_array_equal(np.asarray(cpbf)[sepbf],
                                  np.asarray(ref_preds)[sepbf])

    assert sp32.shape == (B, T - 1, V) and spbf.shape == (B, T - 1, V)
    assert cp32.shape == (B, T - 1) and cpbf.shape == (B, T - 1)
    print("KERNEL_OK")
</pallas_src>

<mosaic_0001>
module attributes {stable_mosaic.version = 11 : i64} {
  func.func @_decoder_kernel(%arg0: i32, %arg1: memref<8x8x32xf32, #tpu.memory_space<vmem>>, %arg2: memref<56x16xf32, #tpu.memory_space<vmem>>, %arg3: memref<1x32xf32, #tpu.memory_space<vmem>>, %arg4: memref<1x32xf32, #tpu.memory_space<vmem>>, %arg5: memref<1x1xf32, #tpu.memory_space<vmem>>, %arg6: memref<16x96xf32, #tpu.memory_space<vmem>>, %arg7: memref<32x96xf32, #tpu.memory_space<vmem>>, %arg8: memref<32x96xf32, #tpu.memory_space<vmem>>, %arg9: memref<1x96xf32, #tpu.memory_space<vmem>>, %arg10: memref<1x96xf32, #tpu.memory_space<vmem>>, %arg11: memref<32x128xf32, #tpu.memory_space<vmem>>, %arg12: memref<1x128xf32, #tpu.memory_space<vmem>>, %arg13: memref<56x128xf32, #tpu.memory_space<vmem>>, %arg14: memref<56x32xf32, #tpu.memory_space<vmem>>) attributes {dimension_semantics = [#tpu.dimension_semantics<arbitrary>], iteration_bounds = array<i64: 1>, scalar_prefetch = 0 : i64, scratch_operands = 1 : i64, tpu.core_type = #tpu.core_type<tc>, window_params = [{pipeline_mode = #tpu.pipeline_mode<synchronous>, transform_indices = @transform_0, window_bounds = array<i64: 8, 8, 32>}, {pipeline_mode = #tpu.pipeline_mode<synchronous>, transform_indices = @transform_1, window_bounds = array<i64: 56, 16>}, {pipeline_mode = #tpu.pipeline_mode<synchronous>, transform_indices = @transform_2, window_bounds = array<i64: 1, 32>}, {pipeline_mode = #tpu.pipeline_mode<synchronous>, transform_indices = @transform_3, window_bounds = array<i64: 1, 32>}, {pipeline_mode = #tpu.pipeline_mode<synchronous>, transform_indices = @transform_4, window_bounds = array<i64: 1, 1>}, {pipeline_mode = #tpu.pipeline_mode<synchronous>, transform_indices = @transform_5, window_bounds = array<i64: 16, 96>}, {pipeline_mode = #tpu.pipeline_mode<synchronous>, transform_indices = @transform_6, window_bounds = array<i64: 32, 96>}, {pipeline_mode = #tpu.pipeline_mode<synchronous>, transform_indices = @transform_7, window_bounds = array<i64: 32, 96>}, {pipeline_mode = #tpu.pipeline_mode<synchronous>, transform_indices = @transform_8, window_bounds = array<i64: 1, 96>}, {pipeline_mode = #tpu.pipeline_mode<synchronous>, transform_indices = @transform_9, window_bounds = array<i64: 1, 96>}, {pipeline_mode = #tpu.pipeline_mode<synchronous>, transform_indices = @transform_10, window_bounds = array<i64: 32, 128>}, {pipeline_mode = #tpu.pipeline_mode<synchronous>, transform_indices = @transform_11, window_bounds = array<i64: 1, 128>}, {pipeline_mode = #tpu.pipeline_mode<synchronous>, transform_indices = @transform_12, window_bounds = array<i64: 56, 128>}]} {
    %c0 = arith.constant 0 : index
    %c0_0 = arith.constant 0 : index
    %c0_1 = arith.constant 0 : index
    %0 = vector.load %arg1[%c0, %c0_0, %c0_1] : memref<8x8x32xf32, #tpu.memory_space<vmem>>, vector<8x8x32xf32>
    %c0_2 = arith.constant 0 : index
    %c0_3 = arith.constant 0 : index
    %1 = vector.load %arg3[%c0_2, %c0_3] : memref<1x32xf32, #tpu.memory_space<vmem>>, vector<1x32xf32>
    %2 = vector.shape_cast %1 : vector<1x32xf32> to vector<1x1x32xf32>
    %3 = vector.broadcast %2 : vector<1x1x32xf32> to vector<8x8x32xf32>
    %4 = arith.mulf %0, %3 : vector<8x8x32xf32>
    %cst = arith.constant dense<0.000000e+00> : vector<8x8xf32>
    %5 = vector.multi_reduction <add>, %4, %cst [2] : vector<8x8x32xf32> to vector<8x8xf32>
    %c0_4 = arith.constant 0 : index
    %c0_5 = arith.constant 0 : index
    %6 = vector.load %arg5[%c0_4, %c0_5] : memref<1x1xf32, #tpu.memory_space<vmem>>, vector<1x1xf32>
    %7 = vector.broadcast %6 : vector<1x1xf32> to vector<8x8xf32>
    %8 = arith.addf %5, %7 : vector<8x8xf32>
    %c0_6 = arith.constant 0 : index
    %c0_7 = arith.constant 0 : index
    %9 = vector.load %arg2[%c0_6, %c0_7] : memref<56x16xf32, #tpu.memory_space<vmem>>, vector<56x16xf32>
    %c0_8 = arith.constant 0 : index
    %c0_9 = arith.constant 0 : index
    %10 = vector.load %arg6[%c0_8, %c0_9] : memref<16x96xf32, #tpu.memory_space<vmem>>, vector<16x96xf32>
    %cst_10 = arith.constant dense<0.000000e+00> : vector<56x96xf32>
    %11 = tpu.matmul %9, %10, %cst_10 {dimension_numbers = #tpu.dot_dimension_numbers<[1], [0], [0], [1], [0, 0, 1, 1], [], []>} : vector<56x16xf32>, vector<16x96xf32>, vector<56x96xf32> -> vector<56x96xf32>
    %c0_11 = arith.constant 0 : index
    %c0_12 = arith.constant 0 : index
    %12 = vector.load %arg9[%c0_11, %c0_12] : memref<1x96xf32, #tpu.memory_space<vmem>>, vector<1x96xf32>
    %13 = vector.broadcast %12 : vector<1x96xf32> to vector<56x96xf32>
    %14 = arith.addf %11, %13 : vector<56x96xf32>
    %c0_13 = arith.constant 0 : index
    %c0_14 = arith.constant 0 : index
    %15 = vector.load %arg4[%c0_13, %c0_14] : memref<1x32xf32, #tpu.memory_space<vmem>>, vector<1x32xf32>
    %16 = vector.shape_cast %15 : vector<1x32xf32> to vector<1x32xf32>
    %17 = vector.broadcast %16 : vector<1x32xf32> to vector<8x32xf32>
    %c0_15 = arith.constant 0 : index
    %c0_16 = arith.constant 0 : index
    %18 = vector.load %arg10[%c0_15, %c0_16] : memref<1x96xf32, #tpu.memory_space<vmem>>, vector<1x96xf32>
    %19 = vector.shape_cast %18 : vector<1x96xf32> to vector<1x96xf32>
    %20 = vector.broadcast %19 : vector<1x96xf32> to vector<8x96xf32>
    %c0_17 = arith.constant 0 : index
    %c0_18 = arith.constant 0 : index
    %21 = vector.load %arg7[%c0_17, %c0_18] : memref<32x96xf32, #tpu.memory_space<vmem>>, vector<32x96xf32>
    %c0_19 = arith.constant 0 : index
    %c0_20 = arith.constant 0 : index
    %22 = vector.load %arg8[%c0_19, %c0_20] : memref<32x96xf32, #tpu.memory_space<vmem>>, vector<32x96xf32>
    %cst_21 = arith.constant 0.000000e+00 : f32
    %23 = vector.broadcast %cst_21 : f32 to vector<8x32xf32>
    %24 = arith.mulf %23, %17 : vector<8x32xf32>
    %cst_22 = arith.constant dense<0.000000e+00> : vector<8xf32>
    %25 = vector.multi_reduction <add>, %24, %cst_22 [1] : vector<8x32xf32> to vector<8xf32>
    %26 = vector.shape_cast %25 : vector<8xf32> to vector<8x1xf32>
    %27 = vector.broadcast %26 : vector<8x1xf32> to vector<8x8xf32>
    %28 = arith.addf %8, %27 : vector<8x8xf32>
    %cst_23 = arith.constant dense<0xFF800000> : vector<8xf32>
    %29 = vector.multi_reduction <maximumf>, %28, %cst_23 [1] : vector<8x8xf32> to vector<8xf32>
    %30 = vector.shape_cast %29 : vector<8xf32> to vector<8x1xf32>
    %31 = vector.broadcast %30 : vector<8x1xf32> to vector<8x8xf32>
    %32 = arith.subf %28, %31 : vector<8x8xf32>
    %33 = math.exp %32 : vector<8x8xf32>
    %cst_24 = arith.constant dense<0.000000e+00> : vector<8xf32>
    %34 = vector.multi_reduction <add>, %33, %cst_24 [1] : vector<8x8xf32> to vector<8xf32>
    %35 = vector.shape_cast %34 : vector<8xf32> to vector<8x1xf32>
    %36 = tpu.reciprocal %35 {approx = true} : vector<8x1xf32> -> vector<8x1xf32>
    %37 = vector.broadcast %36 : vector<8x1xf32> to vector<8x8xf32>
    %38 = arith.mulf %33, %37 : vector<8x8xf32>
    %39 = vector.shape_cast %38 : vector<8x8xf32> to vector<8x8x1xf32>
    %40 = vector.broadcast %39 : vector<8x8x1xf32> to vector<8x8x32xf32>
    %41 = arith.mulf %40, %0 : vector<8x8x32xf32>
    %cst_25 = arith.constant dense<0.000000e+00> : vector<8x32xf32>
    %42 = vector.multi_reduction <add>, %41, %cst_25 [1] : vector<8x8x32xf32> to vector<8x32xf32>
    %43 = vector.extract_strided_slice %14 {offsets = [0, 0], sizes = [8, 96], strides = [1, 1]} : vector<56x96xf32> to vector<8x96xf32>
    %cst_26 = arith.constant dense<0.000000e+00> : vector<8x96xf32>
    %44 = tpu.matmul %42, %21, %cst_26 {dimension_numbers = #tpu.dot_dimension_numbers<[1], [0], [0], [1], [0, 0, 1, 1], [], []>} : vector<8x32xf32>, vector<32x96xf32>, vector<8x96xf32> -> vector<8x96xf32>
    %45 = arith.addf %43, %44 : vector<8x96xf32>
    %cst_27 = arith.constant dense<0.000000e+00> : vector<8x96xf32>
    %46 = tpu.matmul %23, %22, %cst_27 {dimension_numbers = #tpu.dot_dimension_numbers<[1], [0], [0], [1], [0, 0, 1, 1], [], []>} : vector<8x32xf32>, vector<32x96xf32>, vector<8x96xf32> -> vector<8x96xf32>
    %47 = arith.addf %46, %20 : vector<8x96xf32>
    %48 = vector.extract_strided_slice %45 {offsets = [0, 0], sizes = [8, 32], strides = [1, 1]} : vector<8x96xf32> to vector<8x32xf32>
    %49 = vector.extract_strided_slice %47 {offsets = [0, 0], sizes = [8, 32], strides = [1, 1]} : vector<8x96xf32> to vector<8x32xf32>
    %50 = arith.addf %48, %49 : vector<8x32xf32>
    %51 = arith.negf %50 : vector<8x32xf32>
    %52 = math.exp %51 : vector<8x32xf32>
    %cst_28 = arith.constant 1.000000e+00 : f32
    %53 = vector.broadcast %cst_28 : f32 to vector<8x32xf32>
    %54 = arith.addf %53, %52 : vector<8x32xf32>
    %55 = arith.divf %53, %54 : vector<8x32xf32>
    %56 = vector.extract_strided_slice %45 {offsets = [0, 32], sizes = [8, 32], strides = [1, 1]} : vector<8x96xf32> to vector<8x32xf32>
    %57 = vector.extract_strided_slice %47 {offsets = [0, 32], sizes = [8, 32], strides = [1, 1]} : vector<8x96xf32> to vector<8x32xf32>
    %58 = arith.addf %56, %57 : vector<8x32xf32>
    %59 = arith.negf %58 : vector<8x32xf32>
    %60 = math.exp %59 : vector<8x32xf32>
    %cst_29 = arith.constant 1.000000e+00 : f32
    %61 = vector.broadcast %cst_29 : f32 to vector<8x32xf32>
    %62 = arith.addf %61, %60 : vector<8x32xf32>
    %63 = arith.divf %61, %62 : vector<8x32xf32>
    %64 = vector.extract_strided_slice %45 {offsets = [0, 64], sizes = [8, 32], strides = [1, 1]} : vector<8x96xf32> to vector<8x32xf32>
    %65 = vector.extract_strided_slice %47 {offsets = [0, 64], sizes = [8, 32], strides = [1, 1]} : vector<8x96xf32> to vector<8x32xf32>
    %66 = arith.mulf %55, %65 : vector<8x32xf32>
    %67 = arith.addf %64, %66 : vector<8x32xf32>
    %68 = math.tanh %67 : vector<8x32xf32>
    %cst_30 = arith.constant 1.000000e+00 : f32
    %69 = vector.broadcast %cst_30 : f32 to vector<8x32xf32>
    %70 = arith.subf %69, %63 : vector<8x32xf32>
    %71 = arith.mulf %70, %68 : vector<8x32xf32>
    %72 = arith.mulf %63, %23 : vector<8x32xf32>
    %73 = arith.addf %71, %72 : vector<8x32xf32>
    %c0_31 = arith.constant 0 : index
    %c0_32 = arith.constant 0 : index
    %74 = vector.load %arg14[%c0_31, %c0_32] : memref<56x32xf32, #tpu.memory_space<vmem>>, vector<8x32xf32>
    tpu.vector_store %arg14[%c0_31, %c0_32], %73 {strides = array<i32>} : memref<56x32xf32, #tpu.memory_space<vmem>>, vector<8x32xf32>,
    %75 = arith.mulf %73, %17 : vector<8x32xf32>
    %cst_33 = arith.constant dense<0.000000e+00> : vector<8xf32>
    %76 = vector.multi_reduction <add>, %75, %cst_33 [1] : vector<8x32xf32> to vector<8xf32>
    %77 = vector.shape_cast %76 : vector<8xf32> to vector<8x1xf32>
    %78 = vector.broadcast %77 : vector<8x1xf32> to vector<8x8xf32>
    %79 = arith.addf %8, %78 : vector<8x8xf32>
    %cst_34 = arith.constant dense<0xFF800000> : vector<8xf32>
    %80 = vector.multi_reduction <maximumf>, %79, %cst_34 [1] : vector<8x8xf32> to vector<8xf32>
    %81 = vector.shape_cast %80 : vector<8xf32> to vector<8x1xf32>
    %82 = vector.broadcast %81 : vector<8x1xf32> to vector<8x8xf32>
    %83 = arith.subf %79, %82 : vector<8x8xf32>
    %84 = math.exp %83 : vector<8x8xf32>
    %cst_35 = arith.constant dense<0.000000e+00> : vector<8xf32>
    %85 = vector.multi_reduction <add>, %84, %cst_35 [1] : vector<8x8xf32> to vector<8xf32>
    %86 = vector.shape_cast %85 : vector<8xf32> to vector<8x1xf32>
    %87 = tpu.reciprocal %86 {approx = true} : vector<8x1xf32> -> vector<8x1xf32>
    %88 = vector.broadcast %87 : vector<8x1xf32> to vector<8x8xf32>
    %89 = arith.mulf %84, %88 : vector<8x8xf32>
    %90 = vector.shape_cast %89 : vector<8x8xf32> to vector<8x8x1xf32>
    %91 = vector.broadcast %90 : vector<8x8x1xf32> to vector<8x8x32xf32>
    %92 = arith.mulf %91, %0 : vector<8x8x32xf32>
    %cst_36 = arith.constant dense<0.000000e+00> : vector<8x32xf32>
    %93 = vector.multi_reduction <add>, %92, %cst_36 [1] : vector<8x8x32xf32> to vector<8x32xf32>
    %94 = vector.extract_strided_slice %14 {offsets = [8, 0], sizes = [8, 96], strides = [1, 1]} : vector<56x96xf32> to vector<8x96xf32>
    %cst_37 = arith.constant dense<0.000000e+00> : vector<8x96xf32>
    %95 = tpu.matmul %93, %21, %cst_37 {dimension_numbers = #tpu.dot_dimension_numbers<[1], [0], [0], [1], [0, 0, 1, 1], [], []>} : vector<8x32xf32>, vector<32x96xf32>, vector<8x96xf32> -> vector<8x96xf32>
    %96 = arith.addf %94, %95 : vector<8x96xf32>
    %cst_38 = arith.constant dense<0.000000e+00> : vector<8x96xf32>
    %97 = tpu.matmul %73, %22, %cst_38 {dimension_numbers = #tpu.dot_dimension_numbers<[1], [0], [0], [1], [0, 0, 1, 1], [], []>} : vector<8x32xf32>, vector<32x96xf32>, vector<8x96xf32> -> vector<8x96xf32>
    %98 = arith.addf %97, %20 : vector<8x96xf32>
    %99 = vector.extract_strided_slice %96 {offsets = [0, 0], sizes = [8, 32], strides = [1, 1]} : vector<8x96xf32> to vector<8x32xf32>
    %100 = vector.extract_strided_slice %98 {offsets = [0, 0], sizes = [8, 32], strides = [1, 1]} : vector<8x96xf32> to vector<8x32xf32>
    %101 = arith.addf %99, %100 : vector<8x32xf32>
    %102 = arith.negf %101 : vector<8x32xf32>
    %103 = math.exp %102 : vector<8x32xf32>
    %cst_39 = arith.constant 1.000000e+00 : f32
    %104 = vector.broadcast %cst_39 : f32 to vector<8x32xf32>
    %105 = arith.addf %104, %103 : vector<8x32xf32>
    %106 = arith.divf %104, %105 : vector<8x32xf32>
    %107 = vector.extract_strided_slice %96 {offsets = [0, 32], sizes = [8, 32], strides = [1, 1]} : vector<8x96xf32> to vector<8x32xf32>
    %108 = vector.extract_strided_slice %98 {offsets = [0, 32], sizes = [8, 32], strides = [1, 1]} : vector<8x96xf32> to vector<8x32xf32>
    %109 = arith.addf %107, %108 : vector<8x32xf32>
    %110 = arith.negf %109 : vector<8x32xf32>
    %111 = math.exp %110 : vector<8x32xf32>
    %cst_40 = arith.constant 1.000000e+00 : f32
    %112 = vector.broadcast %cst_40 : f32 to vector<8x32xf32>
    %113 = arith.addf %112, %111 : vector<8x32xf32>
    %114 = arith.divf %112, %113 : vector<8x32xf32>
    %115 = vector.extract_strided_slice %96 {offsets = [0, 64], sizes = [8, 32], strides = [1, 1]} : vector<8x96xf32> to vector<8x32xf32>
    %116 = vector.extract_strided_slice %98 {offsets = [0, 64], sizes = [8, 32], strides = [1, 1]} : vector<8x96xf32> to vector<8x32xf32>
    %117 = arith.mulf %106, %116 : vector<8x32xf32>
    %118 = arith.addf %115, %117 : vector<8x32xf32>
    %119 = math.tanh %118 : vector<8x32xf32>
    %cst_41 = arith.constant 1.000000e+00 : f32
    %120 = vector.broadcast %cst_41 : f32 to vector<8x32xf32>
    %121 = arith.subf %120, %114 : vector<8x32xf32>
    %122 = arith.mulf %121, %119 : vector<8x32xf32>
    %123 = arith.mulf %114, %73 : vector<8x32xf32>
    %124 = arith.addf %122, %123 : vector<8x32xf32>
    %c8 = arith.constant 8 : index
    %c0_42 = arith.constant 0 : index
    %125 = vector.load %arg14[%c8, %c0_42] : memref<56x32xf32, #tpu.memory_space<vmem>>, vector<8x32xf32>
    tpu.vector_store %arg14[%c8, %c0_42], %124 {strides = array<i32>} : memref<56x32xf32, #tpu.memory_space<vmem>>, vector<8x32xf32>,
    %126 = arith.mulf %124, %17 : vector<8x32xf32>
    %cst_43 = arith.constant dense<0.000000e+00> : vector<8xf32>
    %127 = vector.multi_reduction <add>, %126, %cst_43 [1] : vector<8x32xf32> to vector<8xf32>
    %128 = vector.shape_cast %127 : vector<8xf32> to vector<8x1xf32>
    %129 = vector.broadcast %128 : vector<8x1xf32> to vector<8x8xf32>
    %130 = arith.addf %8, %129 : vector<8x8xf32>
    %cst_44 = arith.constant dense<0xFF800000> : vector<8xf32>
    %131 = vector.multi_reduction <maximumf>, %130, %cst_44 [1] : vector<8x8xf32> to vector<8xf32>
    %132 = vector.shape_cast %131 : vector<8xf32> to vector<8x1xf32>
    %133 = vector.broadcast %132 : vector<8x1xf32> to vector<8x8xf32>
    %134 = arith.subf %130, %133 : vector<8x8xf32>
    %135 = math.exp %134 : vector<8x8xf32>
    %cst_45 = arith.constant dense<0.000000e+00> : vector<8xf32>
    %136 = vector.multi_reduction <add>, %135, %cst_45 [1] : vector<8x8xf32> to vector<8xf32>
    %137 = vector.shape_cast %136 : vector<8xf32> to vector<8x1xf32>
    %138 = tpu.reciprocal %137 {approx = true} : vector<8x1xf32> -> vector<8x1xf32>
    %139 = vector.broadcast %138 : vector<8x1xf32> to vector<8x8xf32>
    %140 = arith.mulf %135, %139 : vector<8x8xf32>
    %141 = vector.shape_cast %140 : vector<8x8xf32> to vector<8x8x1xf32>
    %142 = vector.broadcast %141 : vector<8x8x1xf32> to vector<8x8x32xf32>
    %143 = arith.mulf %142, %0 : vector<8x8x32xf32>
    %cst_46 = arith.constant dense<0.000000e+00> : vector<8x32xf32>
    %144 = vector.multi_reduction <add>, %143, %cst_46 [1] : vector<8x8x32xf32> to vector<8x32xf32>
    %145 = vector.extract_strided_slice %14 {offsets = [16, 0], sizes = [8, 96], strides = [1, 1]} : vector<56x96xf32> to vector<8x96xf32>
    %cst_47 = arith.constant dense<0.000000e+00> : vector<8x96xf32>
    %146 = tpu.matmul %144, %21, %cst_47 {dimension_numbers = #tpu.dot_dimension_numbers<[1], [0], [0], [1], [0, 0, 1, 1], [], []>} : vector<8x32xf32>, vector<32x96xf32>, vector<8x96xf32> -> vector<8x96xf32>
    %147 = arith.addf %145, %146 : vector<8x96xf32>
    %cst_48 = arith.constant dense<0.000000e+00> : vector<8x96xf32>
    %148 = tpu.matmul %124, %22, %cst_48 {dimension_numbers = #tpu.dot_dimension_numbers<[1], [0], [0], [1], [0, 0, 1, 1], [], []>} : vector<8x32xf32>, vector<32x96xf32>, vector<8x96xf32> -> vector<8x96xf32>
    %149 = arith.addf %148, %20 : vector<8x96xf32>
    %150 = vector.extract_strided_slice %147 {offsets = [0, 0], sizes = [8, 32], strides = [1, 1]} : vector<8x96xf32> to vector<8x32xf32>
    %151 = vector.extract_strided_slice %149 {offsets = [0, 0], sizes = [8, 32], strides = [1, 1]} : vector<8x96xf32> to vector<8x32xf32>
    %152 = arith.addf %150, %151 : vector<8x32xf32>
    %153 = arith.negf %152 : vector<8x32xf32>
    %154 = math.exp %153 : vector<8x32xf32>
    %cst_49 = arith.constant 1.000000e+00 : f32
    %155 = vector.broadcast %cst_49 : f32 to vector<8x32xf32>
    %156 = arith.addf %155, %154 : vector<8x32xf32>
    %157 = arith.divf %155, %156 : vector<8x32xf32>
    %158 = vector.extract_strided_slice %147 {offsets = [0, 32], sizes = [8, 32], strides = [1, 1]} : vector<8x96xf32> to vector<8x32xf32>
    %159 = vector.extract_strided_slice %149 {offsets = [0, 32], sizes = [8, 32], strides = [1, 1]} : vector<8x96xf32> to vector<8x32xf32>
    %160 = arith.addf %158, %159 : vector<8x32xf32>
    %161 = arith.negf %160 : vector<8x32xf32>
    %162 = math.exp %161 : vector<8x32xf32>
    %cst_50 = arith.constant 1.000000e+00 : f32
    %163 = vector.broadcast %cst_50 : f32 to vector<8x32xf32>
    %164 = arith.addf %163, %162 : vector<8x32xf32>
    %165 = arith.divf %163, %164 : vector<8x32xf32>
    %166 = vector.extract_strided_slice %147 {offsets = [0, 64], sizes = [8, 32], strides = [1, 1]} : vector<8x96xf32> to vector<8x32xf32>
    %167 = vector.extract_strided_slice %149 {offsets = [0, 64], sizes = [8, 32], strides = [1, 1]} : vector<8x96xf32> to vector<8x32xf32>
    %168 = arith.mulf %157, %167 : vector<8x32xf32>
    %169 = arith.addf %166, %168 : vector<8x32xf32>
    %170 = math.tanh %169 : vector<8x32xf32>
    %cst_51 = arith.constant 1.000000e+00 : f32
    %171 = vector.broadcast %cst_51 : f32 to vector<8x32xf32>
    %172 = arith.subf %171, %165 : vector<8x32xf32>
    %173 = arith.mulf %172, %170 : vector<8x32xf32>
    %174 = arith.mulf %165, %124 : vector<8x32xf32>
    %175 = arith.addf %173, %174 : vector<8x32xf32>
    %c16 = arith.constant 16 : index
    %c0_52 = arith.constant 0 : index
    %176 = vector.load %arg14[%c16, %c0_52] : memref<56x32xf32, #tpu.memory_space<vmem>>, vector<8x32xf32>
    tpu.vector_store %arg14[%c16, %c0_52], %175 {strides = array<i32>} : memref<56x32xf32, #tpu.memory_space<vmem>>, vector<8x32xf32>,
    %177 = arith.mulf %175, %17 : vector<8x32xf32>
    %cst_53 = arith.constant dense<0.000000e+00> : vector<8xf32>
    %178 = vector.multi_reduction <add>, %177, %cst_53 [1] : vector<8x32xf32> to vector<8xf32>
    %179 = vector.shape_cast %178 : vector<8xf32> to vector<8x1xf32>
    %180 = vector.broadcast %179 : vector<8x1xf32> to vector<8x8xf32>
    %181 = arith.addf %8, %180 : vector<8x8xf32>
    %cst_54 = arith.constant dense<0xFF800000> : vector<8xf32>
    %182 = vector.multi_reduction <maximumf>, %181, %cst_54 [1] : vector<8x8xf32> to vector<8xf32>
    %183 = vector.shape_cast %182 : vector<8xf32> to vector<8x1xf32>
    %184 = vector.broadcast %183 : vector<8x1xf32> to vector<8x8xf32>
    %185 = arith.subf %181, %184 : vector<8x8xf32>
    %186 = math.exp %185 : vector<8x8xf32>
    %cst_55 = arith.constant dense<0.000000e+00> : vector<8xf32>
    %187 = vector.multi_reduction <add>, %186, %cst_55 [1] : vector<8x8xf32> to vector<8xf32>
    %188 = vector.shape_cast %187 : vector<8xf32> to vector<8x1xf32>
    %189 = tpu.reciprocal %188 {approx = true} : vector<8x1xf32> -> vector<8x1xf32>
    %190 = vector.broadcast %189 : vector<8x1xf32> to vector<8x8xf32>
    %191 = arith.mulf %186, %190 : vector<8x8xf32>
    %192 = vector.shape_cast %191 : vector<8x8xf32> to vector<8x8x1xf32>
    %193 = vector.broadcast %192 : vector<8x8x1xf32> to vector<8x8x32xf32>
    %194 = arith.mulf %193, %0 : vector<8x8x32xf32>
    %cst_56 = arith.constant dense<0.000000e+00> : vector<8x32xf32>
    %195 = vector.multi_reduction <add>, %194, %cst_56 [1] : vector<8x8x32xf32> to vector<8x32xf32>
    %196 = vector.extract_strided_slice %14 {offsets = [24, 0], sizes = [8, 96], strides = [1, 1]} : vector<56x96xf32> to vector<8x96xf32>
    %cst_57 = arith.constant dense<0.000000e+00> : vector<8x96xf32>
    %197 = tpu.matmul %195, %21, %cst_57 {dimension_numbers = #tpu.dot_dimension_numbers<[1], [0], [0], [1], [0, 0, 1, 1], [], []>} : vector<8x32xf32>, vector<32x96xf32>, vector<8x96xf32> -> vector<8x96xf32>
    %198 = arith.addf %196, %197 : vector<8x96xf32>
    %cst_58 = arith.constant dense<0.000000e+00> : vector<8x96xf32>
    %199 = tpu.matmul %175, %22, %cst_58 {dimension_numbers = #tpu.dot_dimension_numbers<[1], [0], [0], [1], [0, 0, 1, 1], [], []>} : vector<8x32xf32>, vector<32x96xf32>, vector<8x96xf32> -> vector<8x96xf32>
    %200 = arith.addf %199, %20 : vector<8x96xf32>
    %201 = vector.extract_strided_slice %198 {offsets = [0, 0], sizes = [8, 32], strides = [1, 1]} : vector<8x96xf32> to vector<8x32xf32>
    %202 = vector.extract_strided_slice %200 {offsets = [0, 0], sizes = [8, 32], strides = [1, 1]} : vector<8x96xf32> to vector<8x32xf32>
    %203 = arith.addf %201, %202 : vector<8x32xf32>
    %204 = arith.negf %203 : vector<8x32xf32>
    %205 = math.exp %204 : vector<8x32xf32>
    %cst_59 = arith.constant 1.000000e+00 : f32
    %206 = vector.broadcast %cst_59 : f32 to vector<8x32xf32>
    %207 = arith.addf %206, %205 : vector<8x32xf32>
    %208 = arith.divf %206, %207 : vector<8x32xf32>
    %209 = vector.extract_strided_slice %198 {offsets = [0, 32], sizes = [8, 32], strides = [1, 1]} : vector<8x96xf32> to vector<8x32xf32>
    %210 = vector.extract_strided_slice %200 {offsets = [0, 32], sizes = [8, 32], strides = [1, 1]} : vector<8x96xf32> to vector<8x32xf32>
    %211 = arith.addf %209, %210 : vector<8x32xf32>
    %212 = arith.negf %211 : vector<8x32xf32>
    %213 = math.exp %212 : vector<8x32xf32>
    %cst_60 = arith.constant 1.000000e+00 : f32
    %214 = vector.broadcast %cst_60 : f32 to vector<8x32xf32>
    %215 = arith.addf %214, %213 : vector<8x32xf32>
    %216 = arith.divf %214, %215 : vector<8x32xf32>
    %217 = vector.extract_strided_slice %198 {offsets = [0, 64], sizes = [8, 32], strides = [1, 1]} : vector<8x96xf32> to vector<8x32xf32>
    %218 = vector.extract_strided_slice %200 {offsets = [0, 64], sizes = [8, 32], strides = [1, 1]} : vector<8x96xf32> to vector<8x32xf32>
    %219 = arith.mulf %208, %218 : vector<8x32xf32>
    %220 = arith.addf %217, %219 : vector<8x32xf32>
    %221 = math.tanh %220 : vector<8x32xf32>
    %cst_61 = arith.constant 1.000000e+00 : f32
    %222 = vector.broadcast %cst_61 : f32 to vector<8x32xf32>
    %223 = arith.subf %222, %216 : vector<8x32xf32>
    %224 = arith.mulf %223, %221 : vector<8x32xf32>
    %225 = arith.mulf %216, %175 : vector<8x32xf32>
    %226 = arith.addf %224, %225 : vector<8x32xf32>
    %c24 = arith.constant 24 : index
    %c0_62 = arith.constant 0 : index
    %227 = vector.load %arg14[%c24, %c0_62] : memref<56x32xf32, #tpu.memory_space<vmem>>, vector<8x32xf32>
    tpu.vector_store %arg14[%c24, %c0_62], %226 {strides = array<i32>} : memref<56x32xf32, #tpu.memory_space<vmem>>, vector<8x32xf32>,
    %228 = arith.mulf %226, %17 : vector<8x32xf32>
    %cst_63 = arith.constant dense<0.000000e+00> : vector<8xf32>
    %229 = vector.multi_reduction <add>, %228, %cst_63 [1] : vector<8x32xf32> to vector<8xf32>
    %230 = vector.shape_cast %229 : vector<8xf32> to vector<8x1xf32>
    %231 = vector.broadcast %230 : vector<8x1xf32> to vector<8x8xf32>
    %232 = arith.addf %8, %231 : vector<8x8xf32>
    %cst_64 = arith.constant dense<0xFF800000> : vector<8xf32>
    %233 = vector.multi_reduction <maximumf>, %232, %cst_64 [1] : vector<8x8xf32> to vector<8xf32>
    %234 = vector.shape_cast %233 : vector<8xf32> to vector<8x1xf32>
    %235 = vector.broadcast %234 : vector<8x1xf32> to vector<8x8xf32>
    %236 = arith.subf %232, %235 : vector<8x8xf32>
    %237 = math.exp %236 : vector<8x8xf32>
    %cst_65 = arith.constant dense<0.000000e+00> : vector<8xf32>
    %238 = vector.multi_reduction <add>, %237, %cst_65 [1] : vector<8x8xf32> to vector<8xf32>
    %239 = vector.shape_cast %238 : vector<8xf32> to vector<8x1xf32>
    %240 = tpu.reciprocal %239 {approx = true} : vector<8x1xf32> -> vector<8x1xf32>
    %241 = vector.broadcast %240 : vector<8x1xf32> to vector<8x8xf32>
    %242 = arith.mulf %237, %241 : vector<8x8xf32>
    %243 = vector.shape_cast %242 : vector<8x8xf32> to vector<8x8x1xf32>
    %244 = vector.broadcast %243 : vector<8x8x1xf32> to vector<8x8x32xf32>
    %245 = arith.mulf %244, %0 : vector<8x8x32xf32>
    %cst_66 = arith.constant dense<0.000000e+00> : vector<8x32xf32>
    %246 = vector.multi_reduction <add>, %245, %cst_66 [1] : vector<8x8x32xf32> to vector<8x32xf32>
    %247 = vector.extract_strided_slice %14 {offsets = [32, 0], sizes = [8, 96], strides = [1, 1]} : vector<56x96xf32> to vector<8x96xf32>
    %cst_67 = arith.constant dense<0.000000e+00> : vector<8x96xf32>
    %248 = tpu.matmul %246, %21, %cst_67 {dimension_numbers = #tpu.dot_dimension_numbers<[1], [0], [0], [1], [0, 0, 1, 1], [], []>} : vector<8x32xf32>, vector<32x96xf32>, vector<8x96xf32> -> vector<8x96xf32>
    %249 = arith.addf %247, %248 : vector<8x96xf32>
    %cst_68 = arith.constant dense<0.000000e+00> : vector<8x96xf32>
    %250 = tpu.matmul %226, %22, %cst_68 {dimension_numbers = #tpu.dot_dimension_numbers<[1], [0], [0], [1], [0, 0, 1, 1], [], []>} : vector<8x32xf32>, vector<32x96xf32>, vector<8x96xf32> -> vector<8x96xf32>
    %251 = arith.addf %250, %20 : vector<8x96xf32>
    %252 = vector.extract_strided_slice %249 {offsets = [0, 0], sizes = [8, 32], strides = [1, 1]} : vector<8x96xf32> to vector<8x32xf32>
    %253 = vector.extract_strided_slice %251 {offsets = [0, 0], sizes = [8, 32], strides = [1, 1]} : vector<8x96xf32> to vector<8x32xf32>
    %254 = arith.addf %252, %253 : vector<8x32xf32>
    %255 = arith.negf %254 : vector<8x32xf32>
    %256 = math.exp %255 : vector<8x32xf32>
    %cst_69 = arith.constant 1.000000e+00 : f32
    %257 = vector.broadcast %cst_69 : f32 to vector<8x32xf32>
    %258 = arith.addf %257, %256 : vector<8x32xf32>
    %259 = arith.divf %257, %258 : vector<8x32xf32>
    %260 = vector.extract_strided_slice %249 {offsets = [0, 32], sizes = [8, 32], strides = [1, 1]} : vector<8x96xf32> to vector<8x32xf32>
    %261 = vector.extract_strided_slice %251 {offsets = [0, 32], sizes = [8, 32], strides = [1, 1]} : vector<8x96xf32> to vector<8x32xf32>
    %262 = arith.addf %260, %261 : vector<8x32xf32>
    %263 = arith.negf %262 : vector<8x32xf32>
    %264 = math.exp %263 : vector<8x32xf32>
    %cst_70 = arith.constant 1.000000e+00 : f32
    %265 = vector.broadcast %cst_70 : f32 to vector<8x32xf32>
    %266 = arith.addf %265, %264 : vector<8x32xf32>
    %267 = arith.divf %265, %266 : vector<8x32xf32>
    %268 = vector.extract_strided_slice %249 {offsets = [0, 64], sizes = [8, 32], strides = [1, 1]} : vector<8x96xf32> to vector<8x32xf32>
    %269 = vector.extract_strided_slice %251 {offsets = [0, 64], sizes = [8, 32], strides = [1, 1]} : vector<8x96xf32> to vector<8x32xf32>
    %270 = arith.mulf %259, %269 : vector<8x32xf32>
    %271 = arith.addf %268, %270 : vector<8x32xf32>
    %272 = math.tanh %271 : vector<8x32xf32>
    %cst_71 = arith.constant 1.000000e+00 : f32
    %273 = vector.broadcast %cst_71 : f32 to vector<8x32xf32>
    %274 = arith.subf %273, %267 : vector<8x32xf32>
    %275 = arith.mulf %274, %272 : vector<8x32xf32>
    %276 = arith.mulf %267, %226 : vector<8x32xf32>
    %277 = arith.addf %275, %276 : vector<8x32xf32>
    %c32 = arith.constant 32 : index
    %c0_72 = arith.constant 0 : index
    %278 = vector.load %arg14[%c32, %c0_72] : memref<56x32xf32, #tpu.memory_space<vmem>>, vector<8x32xf32>
    tpu.vector_store %arg14[%c32, %c0_72], %277 {strides = array<i32>} : memref<56x32xf32, #tpu.memory_space<vmem>>, vector<8x32xf32>,
    %279 = arith.mulf %277, %17 : vector<8x32xf32>
    %cst_73 = arith.constant dense<0.000000e+00> : vector<8xf32>
    %280 = vector.multi_reduction <add>, %279, %cst_73 [1] : vector<8x32xf32> to vector<8xf32>
    %281 = vector.shape_cast %280 : vector<8xf32> to vector<8x1xf32>
    %282 = vector.broadcast %281 : vector<8x1xf32> to vector<8x8xf32>
    %283 = arith.addf %8, %282 : vector<8x8xf32>
    %cst_74 = arith.constant dense<0xFF800000> : vector<8xf32>
    %284 = vector.multi_reduction <maximumf>, %283, %cst_74 [1] : vector<8x8xf32> to vector<8xf32>
    %285 = vector.shape_cast %284 : vector<8xf32> to vector<8x1xf32>
    %286 = vector.broadcast %285 : vector<8x1xf32> to vector<8x8xf32>
    %287 = arith.subf %283, %286 : vector<8x8xf32>
    %288 = math.exp %287 : vector<8x8xf32>
    %cst_75 = arith.constant dense<0.000000e+00> : vector<8xf32>
    %289 = vector.multi_reduction <add>, %288, %cst_75 [1] : vector<8x8xf32> to vector<8xf32>
    %290 = vector.shape_cast %289 : vector<8xf32> to vector<8x1xf32>
    %291 = tpu.reciprocal %290 {approx = true} : vector<8x1xf32> -> vector<8x1xf32>
    %292 = vector.broadcast %291 : vector<8x1xf32> to vector<8x8xf32>
    %293 = arith.mulf %288, %292 : vector<8x8xf32>
    %294 = vector.shape_cast %293 : vector<8x8xf32> to vector<8x8x1xf32>
    %295 = vector.broadcast %294 : vector<8x8x1xf32> to vector<8x8x32xf32>
    %296 = arith.mulf %295, %0 : vector<8x8x32xf32>
    %cst_76 = arith.constant dense<0.000000e+00> : vector<8x32xf32>
    %297 = vector.multi_reduction <add>, %296, %cst_76 [1] : vector<8x8x32xf32> to vector<8x32xf32>
    %298 = vector.extract_strided_slice %14 {offsets = [40, 0], sizes = [8, 96], strides = [1, 1]} : vector<56x96xf32> to vector<8x96xf32>
    %cst_77 = arith.constant dense<0.000000e+00> : vector<8x96xf32>
    %299 = tpu.matmul %297, %21, %cst_77 {dimension_numbers = #tpu.dot_dimension_numbers<[1], [0], [0], [1], [0, 0, 1, 1], [], []>} : vector<8x32xf32>, vector<32x96xf32>, vector<8x96xf32> -> vector<8x96xf32>
    %300 = arith.addf %298, %299 : vector<8x96xf32>
    %cst_78 = arith.constant dense<0.000000e+00> : vector<8x96xf32>
    %301 = tpu.matmul %277, %22, %cst_78 {dimension_numbers = #tpu.dot_dimension_numbers<[1], [0], [0], [1], [0, 0, 1, 1], [], []>} : vector<8x32xf32>, vector<32x96xf32>, vector<8x96xf32> -> vector<8x96xf32>
    %302 = arith.addf %301, %20 : vector<8x96xf32>
    %303 = vector.extract_strided_slice %300 {offsets = [0, 0], sizes = [8, 32], strides = [1, 1]} : vector<8x96xf32> to vector<8x32xf32>
    %304 = vector.extract_strided_slice %302 {offsets = [0, 0], sizes = [8, 32], strides = [1, 1]} : vector<8x96xf32> to vector<8x32xf32>
    %305 = arith.addf %303, %304 : vector<8x32xf32>
    %306 = arith.negf %305 : vector<8x32xf32>
    %307 = math.exp %306 : vector<8x32xf32>
    %cst_79 = arith.constant 1.000000e+00 : f32
    %308 = vector.broadcast %cst_79 : f32 to vector<8x32xf32>
    %309 = arith.addf %308, %307 : vector<8x32xf32>
    %310 = arith.divf %308, %309 : vector<8x32xf32>
    %311 = vector.extract_strided_slice %300 {offsets = [0, 32], sizes = [8, 32], strides = [1, 1]} : vector<8x96xf32> to vector<8x32xf32>
    %312 = vector.extract_strided_slice %302 {offsets = [0, 32], sizes = [8, 32], strides = [1, 1]} : vector<8x96xf32> to vector<8x32xf32>
    %313 = arith.addf %311, %312 : vector<8x32xf32>
    %314 = arith.negf %313 : vector<8x32xf32>
    %315 = math.exp %314 : vector<8x32xf32>
    %cst_80 = arith.constant 1.000000e+00 : f32
    %316 = vector.broadcast %cst_80 : f32 to vector<8x32xf32>
    %317 = arith.addf %316, %315 : vector<8x32xf32>
    %318 = arith.divf %316, %317 : vector<8x32xf32>
    %319 = vector.extract_strided_slice %300 {offsets = [0, 64], sizes = [8, 32], strides = [1, 1]} : vector<8x96xf32> to vector<8x32xf32>
    %320 = vector.extract_strided_slice %302 {offsets = [0, 64], sizes = [8, 32], strides = [1, 1]} : vector<8x96xf32> to vector<8x32xf32>
    %321 = arith.mulf %310, %320 : vector<8x32xf32>
    %322 = arith.addf %319, %321 : vector<8x32xf32>
    %323 = math.tanh %322 : vector<8x32xf32>
    %cst_81 = arith.constant 1.000000e+00 : f32
    %324 = vector.broadcast %cst_81 : f32 to vector<8x32xf32>
    %325 = arith.subf %324, %318 : vector<8x32xf32>
    %326 = arith.mulf %325, %323 : vector<8x32xf32>
    %327 = arith.mulf %318, %277 : vector<8x32xf32>
    %328 = arith.addf %326, %327 : vector<8x32xf32>
    %c40 = arith.constant 40 : index
    %c0_82 = arith.constant 0 : index
    %329 = vector.load %arg14[%c40, %c0_82] : memref<56x32xf32, #tpu.memory_space<vmem>>, vector<8x32xf32>
    tpu.vector_store %arg14[%c40, %c0_82], %328 {strides = array<i32>} : memref<56x32xf32, #tpu.memory_space<vmem>>, vector<8x32xf32>,
    %330 = arith.mulf %328, %17 : vector<8x32xf32>
    %cst_83 = arith.constant dense<0.000000e+00> : vector<8xf32>
    %331 = vector.multi_reduction <add>, %330, %cst_83 [1] : vector<8x32xf32> to vector<8xf32>
    %332 = vector.shape_cast %331 : vector<8xf32> to vector<8x1xf32>
    %333 = vector.broadcast %332 : vector<8x1xf32> to vector<8x8xf32>
    %334 = arith.addf %8, %333 : vector<8x8xf32>
    %cst_84 = arith.constant dense<0xFF800000> : vector<8xf32>
    %335 = vector.multi_reduction <maximumf>, %334, %cst_84 [1] : vector<8x8xf32> to vector<8xf32>
    %336 = vector.shape_cast %335 : vector<8xf32> to vector<8x1xf32>
    %337 = vector.broadcast %336 : vector<8x1xf32> to vector<8x8xf32>
    %338 = arith.subf %334, %337 : vector<8x8xf32>
    %339 = math.exp %338 : vector<8x8xf32>
    %cst_85 = arith.constant dense<0.000000e+00> : vector<8xf32>
    %340 = vector.multi_reduction <add>, %339, %cst_85 [1] : vector<8x8xf32> to vector<8xf32>
    %341 = vector.shape_cast %340 : vector<8xf32> to vector<8x1xf32>
    %342 = tpu.reciprocal %341 {approx = true} : vector<8x1xf32> -> vector<8x1xf32>
    %343 = vector.broadcast %342 : vector<8x1xf32> to vector<8x8xf32>
    %344 = arith.mulf %339, %343 : vector<8x8xf32>
    %345 = vector.shape_cast %344 : vector<8x8xf32> to vector<8x8x1xf32>
    %346 = vector.broadcast %345 : vector<8x8x1xf32> to vector<8x8x32xf32>
    %347 = arith.mulf %346, %0 : vector<8x8x32xf32>
    %cst_86 = arith.constant dense<0.000000e+00> : vector<8x32xf32>
    %348 = vector.multi_reduction <add>, %347, %cst_86 [1] : vector<8x8x32xf32> to vector<8x32xf32>
    %349 = vector.extract_strided_slice %14 {offsets = [48, 0], sizes = [8, 96], strides = [1, 1]} : vector<56x96xf32> to vector<8x96xf32>
    %cst_87 = arith.constant dense<0.000000e+00> : vector<8x96xf32>
    %350 = tpu.matmul %348, %21, %cst_87 {dimension_numbers = #tpu.dot_dimension_numbers<[1], [0], [0], [1], [0, 0, 1, 1], [], []>} : vector<8x32xf32>, vector<32x96xf32>, vector<8x96xf32> -> vector<8x96xf32>
    %351 = arith.addf %349, %350 : vector<8x96xf32>
    %cst_88 = arith.constant dense<0.000000e+00> : vector<8x96xf32>
    %352 = tpu.matmul %328, %22, %cst_88 {dimension_numbers = #tpu.dot_dimension_numbers<[1], [0], [0], [1], [0, 0, 1, 1], [], []>} : vector<8x32xf32>, vector<32x96xf32>, vector<8x96xf32> -> vector<8x96xf32>
    %353 = arith.addf %352, %20 : vector<8x96xf32>
    %354 = vector.extract_strided_slice %351 {offsets = [0, 0], sizes = [8, 32], strides = [1, 1]} : vector<8x96xf32> to vector<8x32xf32>
    %355 = vector.extract_strided_slice %353 {offsets = [0, 0], sizes = [8, 32], strides = [1, 1]} : vector<8x96xf32> to vector<8x32xf32>
    %356 = arith.addf %354, %355 : vector<8x32xf32>
    %357 = arith.negf %356 : vector<8x32xf32>
    %358 = math.exp %357 : vector<8x32xf32>
    %cst_89 = arith.constant 1.000000e+00 : f32
    %359 = vector.broadcast %cst_89 : f32 to vector<8x32xf32>
    %360 = arith.addf %359, %358 : vector<8x32xf32>
    %361 = arith.divf %359, %360 : vector<8x32xf32>
    %362 = vector.extract_strided_slice %351 {offsets = [0, 32], sizes = [8, 32], strides = [1, 1]} : vector<8x96xf32> to vector<8x32xf32>
    %363 = vector.extract_strided_slice %353 {offsets = [0, 32], sizes = [8, 32], strides = [1, 1]} : vector<8x96xf32> to vector<8x32xf32>
    %364 = arith.addf %362, %363 : vector<8x32xf32>
    %365 = arith.negf %364 : vector<8x32xf32>
    %366 = math.exp %365 : vector<8x32xf32>
    %cst_90 = arith.constant 1.000000e+00 : f32
    %367 = vector.broadcast %cst_90 : f32 to vector<8x32xf32>
    %368 = arith.addf %367, %366 : vector<8x32xf32>
    %369 = arith.divf %367, %368 : vector<8x32xf32>
    %370 = vector.extract_strided_slice %351 {offsets = [0, 64], sizes = [8, 32], strides = [1, 1]} : vector<8x96xf32> to vector<8x32xf32>
    %371 = vector.extract_strided_slice %353 {offsets = [0, 64], sizes = [8, 32], strides = [1, 1]} : vector<8x96xf32> to vector<8x32xf32>
    %372 = arith.mulf %361, %371 : vector<8x32xf32>
    %373 = arith.addf %370, %372 : vector<8x32xf32>
    %374 = math.tanh %373 : vector<8x32xf32>
    %cst_91 = arith.constant 1.000000e+00 : f32
    %375 = vector.broadcast %cst_91 : f32 to vector<8x32xf32>
    %376 = arith.subf %375, %369 : vector<8x32xf32>
    %377 = arith.mulf %376, %374 : vector<8x32xf32>
    %378 = arith.mulf %369, %328 : vector<8x32xf32>
    %379 = arith.addf %377, %378 : vector<8x32xf32>
    %c48 = arith.constant 48 : index
    %c0_92 = arith.constant 0 : index
    %380 = vector.load %arg14[%c48, %c0_92] : memref<56x32xf32, #tpu.memory_space<vmem>>, vector<8x32xf32>
    tpu.vector_store %arg14[%c48, %c0_92], %379 {strides = array<i32>} : memref<56x32xf32, #tpu.memory_space<vmem>>, vector<8x32xf32>,
    %c0_93 = arith.constant 0 : index
    %c0_94 = arith.constant 0 : index
    %381 = vector.load %arg14[%c0_93, %c0_94] : memref<56x32xf32, #tpu.memory_space<vmem>>, vector<56x32xf32>
    %c0_95 = arith.constant 0 : index
    %c0_96 = arith.constant 0 : index
    %382 = vector.load %arg11[%c0_95, %c0_96] : memref<32x128xf32, #tpu.memory_space<vmem>>, vector<32x128xf32>
    %cst_97 = arith.constant dense<0.000000e+00> : vector<56x128xf32>
    %383 = tpu.matmul %381, %382, %cst_97 {dimension_numbers = #tpu.dot_dimension_numbers<[1], [0], [0], [1], [0, 0, 1, 1], [], []>} : vector<56x32xf32>, vector<32x128xf32>, vector<56x128xf32> -> vector<56x128xf32>
    %c0_98 = arith.constant 0 : index
    %c0_99 = arith.constant 0 : index
    %384 = vector.load %arg12[%c0_98, %c0_99] : memref<1x128xf32, #tpu.memory_space<vmem>>, vector<1x128xf32>
    %385 = vector.broadcast %384 : vector<1x128xf32> to vector<56x128xf32>
    %386 = arith.addf %383, %385 : vector<56x128xf32>
    %c0_100 = arith.constant 0 : index
    %c0_101 = arith.constant 0 : index
    %387 = vector.load %arg13[%c0_100, %c0_101] : memref<56x128xf32, #tpu.memory_space<vmem>>, vector<56x128xf32>
    tpu.vector_store %arg13[%c0_100, %c0_101], %386 {strides = array<i32>} : memref<56x128xf32, #tpu.memory_space<vmem>>, vector<56x128xf32>,
    return
  }
  func.func @transform_0(%arg0: i32) -> (i32, i32, i32) {
    %c0_i32 = arith.constant 0 : i32
    %c0_i32_0 = arith.constant 0 : i32
    %c0_i32_1 = arith.constant 0 : i32
    %c0_i32_2 = arith.constant 0 : i32
    return %c0_i32, %c0_i32_0, %c0_i32_1 : i32, i32, i32
  }
  func.func @transform_1(%arg0: i32) -> (i32, i32) {
    %c0_i32 = arith.constant 0 : i32
    %c0_i32_0 = arith.constant 0 : i32
    %c0_i32_1 = arith.constant 0 : i32
    return %c0_i32, %c0_i32_0 : i32, i32
  }
  func.func @transform_2(%arg0: i32) -> (i32, i32) {
    %c0_i32 = arith.constant 0 : i32
    %c0_i32_0 = arith.constant 0 : i32
    %c0_i32_1 = arith.constant 0 : i32
    return %c0_i32, %c0_i32_0 : i32, i32
  }
  func.func @transform_3(%arg0: i32) -> (i32, i32) {
    %c0_i32 = arith.constant 0 : i32
    %c0_i32_0 = arith.constant 0 : i32
    %c0_i32_1 = arith.constant 0 : i32
    return %c0_i32, %c0_i32_0 : i32, i32
  }
  func.func @transform_4(%arg0: i32) -> (i32, i32) {
    %c0_i32 = arith.constant 0 : i32
    %c0_i32_0 = arith.constant 0 : i32
    %c0_i32_1 = arith.constant 0 : i32
    return %c0_i32, %c0_i32_0 : i32, i32
  }
  func.func @transform_5(%arg0: i32) -> (i32, i32) {
    %c0_i32 = arith.constant 0 : i32
    %c0_i32_0 = arith.constant 0 : i32
    %c0_i32_1 = arith.constant 0 : i32
    return %c0_i32, %c0_i32_0 : i32, i32
  }
  func.func @transform_6(%arg0: i32) -> (i32, i32) {
    %c0_i32 = arith.constant 0 : i32
    %c0_i32_0 = arith.constant 0 : i32
    %c0_i32_1 = arith.constant 0 : i32
    return %c0_i32, %c0_i32_0 : i32, i32
  }
  func.func @transform_7(%arg0: i32) -> (i32, i32) {
    %c0_i32 = arith.constant 0 : i32
    %c0_i32_0 = arith.constant 0 : i32
    %c0_i32_1 = arith.constant 0 : i32
    return %c0_i32, %c0_i32_0 : i32, i32
  }
  func.func @transform_8(%arg0: i32) -> (i32, i32) {
    %c0_i32 = arith.constant 0 : i32
    %c0_i32_0 = arith.constant 0 : i32
    %c0_i32_1 = arith.constant 0 : i32
    return %c0_i32, %c0_i32_0 : i32, i32
  }
  func.func @transform_9(%arg0: i32) -> (i32, i32) {
    %c0_i32 = arith.constant 0 : i32
    %c0_i32_0 = arith.constant 0 : i32
    %c0_i32_1 = arith.constant 0 : i32
    return %c0_i32, %c0_i32_0 : i32, i32
  }
  func.func @transform_10(%arg0: i32) -> (i32, i32) {
    %c0_i32 = arith.constant 0 : i32
    %c0_i32_0 = arith.constant 0 : i32
    %c0_i32_1 = arith.constant 0 : i32
    return %c0_i32, %c0_i32_0 : i32, i32
  }
  func.func @transform_11(%arg0: i32) -> (i32, i32) {
    %c0_i32 = arith.constant 0 : i32
    %c0_i32_0 = arith.constant 0 : i32
    %c0_i32_1 = arith.constant 0 : i32
    return %c0_i32, %c0_i32_0 : i32, i32
  }
  func.func @transform_12(%arg0: i32) -> (i32, i32) {
    %c0_i32 = arith.constant 0 : i32
    %c0_i32_0 = arith.constant 0 : i32
    %c0_i32_1 = arith.constant 0 : i32
    return %c0_i32, %c0_i32_0 : i32, i32
  }
}

</mosaic_0001>

<bundles_post_ra>
// kernel: tpu_custom_call.1
= control target key start
LH: loop header
LB: loop body
LE: loop exit
PB: predicated region body
PF: predicated region fallthrough
CT: control target
= control target key end

     0   :  { %s6968_s0 = inlined_call_operand.vmem [shape: f32[8,8,32], index: 0, kind: input, shape index: {}]   ;;  %s6969_s1 = inlined_call_operand.vmem [shape: f32[56,16], index: 1, kind: input, shape index: {}]   ;;  %s6970_s2 = inlined_call_operand.vmem [shape: f32[1,32], index: 2, kind: input, shape index: {}]   ;;  %s6971_s3 = inlined_call_operand.vmem [shape: f32[1,32], index: 3, kind: input, shape index: {}]   ;;  %s6972_s4 = inlined_call_operand.<no memory space> [shape: f32[1,1], index: 4, kind: input, shape index: {}]   ;;  %s6973_s5 = inlined_call_operand.hbm [shape: f32[16,96], index: 5, kind: input, shape index: {}]   ;;  %s6974_s6 = inlined_call_operand.hbm [shape: f32[32,96], index: 6, kind: input, shape index: {}]   ;;  %s6975_s7 = inlined_call_operand.vmem [shape: f32[32,96], index: 7, kind: input, shape index: {}]   ;;  %s6976_s8 = inlined_call_operand.vmem [shape: f32[1,96], index: 8, kind: input, shape index: {}]   ;;  %s6977_s9 = inlined_call_operand.vmem [shape: f32[1,96], index: 9, kind: input, shape index: {}]   ;;  %s6978_s10 = inlined_call_operand.hbm [shape: f32[32,128], index: 10, kind: input, shape index: {}]   ;;  %s6979_s11 = inlined_call_operand.vmem [shape: f32[1,128], index: 11, kind: input, shape index: {}]   ;;  %s6980_s12 = inlined_call_operand.hbm [shape: f32[56,128], index: 12, kind: output, shape index: {}]  }
   0x1   :  { %v17_v0 = vstv %s6972_s4 }
   0x2   :  { %18 = vst [vmem:[#allocation3] sm:$0x1] %v17_v0 }
   0x3   :  { %19 = vsyncpa [#allocation5], 0 }
   0x4   :  { %20 = vsyncpa [#allocation8], 0 }
   0x5   :  { %21 = vsyncpa [#allocation6], 0  ;;  %s5498_s23 = smov [#allocation7]   ;;  %s5499_s25 = smov [#allocation4]  }
   0x6   :  { %s49_s24 = sshll.u32 %s5498_s23, 4  ;;  %s37_s26 = sshll.u32 %s5499_s25, 4  ;;  %s50_s24 = int_to_ptr.vmem [resolvable:$true] %s49_s24  ;;  %s5579_s26 = int_to_ptr.vmem [resolvable:$true] %s37_s26 }
   0x7   :  { %s5404_s29 = scalar_lea.hbm %s6974_s6, 512 }
   0x8   :  { %p5405_p0 = scmp.ne.s32.totalorder %s6974_s6, %s5404_s29  ;;  %p5408_p1 = scmp.lt.u32.totalorder %s5404_s29, %s6974_s6 }
   0xa   :  { %p5410_p2 = pnand %p5408_p1, %p5405_p0 }
   0xc   :  { %5413 = shalt.err (!%p5410_p2)
}
   0xd   :  { %s5414_s15 = scalar_lea.vmem %s50_s24, 512  ;;  %p5419_p4 = scmp.lt.s32.totalorder %s50_s24, %s50_s24 }
   0xe   :  { %p5415_p3 = scmp.ne.s32.totalorder %s50_s24, %s5414_s15  ;;  %p5420_p5 = scmp.lt.s32.totalorder %s5414_s15, %s5414_s15 }
  0x10   :  { %p5421_p6 = por %p5420_p5, %p5419_p4 }
  0x12   :  { %p5422_p7 = pnand %p5421_p6, %p5415_p3 }
  0x14   :  { %5425 = shalt.err (!%p5422_p7)
}
  0x15   :  { %s5500_s16 = smov 128   ;;  %s5501_s17 = smov 8  }
  0x16   :  { %55 = dma.hbm_to_vmem [thread:$0]  %s6974_s6, 512, %s50_s24, [#allocation8], %s5500_s16, %s5500_s16, %s5501_s17  }
  0x17   :  { %s5426_s22 = scalar_lea.hbm %s6973_s5, 256 }
  0x18   :  { %p5427_p8 = scmp.ne.s32.totalorder %s6973_s5, %s5426_s22  ;;  %p5430_p9 = scmp.lt.u32.totalorder %s5426_s22, %s6973_s5 }
  0x1a   :  { %p5432_p10 = pnand %p5430_p9, %p5427_p8 }
  0x1c   :  { %5435 = shalt.err (!%p5432_p10)
}
  0x1d   :  { %s5436_s29 = scalar_lea.vmem %s5579_s26, 256  ;;  %p5441_p12 = scmp.lt.s32.totalorder %s5579_s26, %s5579_s26 }
  0x1e   :  { %p5437_p11 = scmp.ne.s32.totalorder %s5579_s26, %s5436_s29  ;;  %p5442_p13 = scmp.lt.s32.totalorder %s5436_s29, %s5436_s29 }
  0x20   :  { %p5443_p0 = por %p5442_p13, %p5441_p12 }
  0x22   :  { %p5444_p1 = pnand %p5443_p0, %p5437_p11 }
  0x24   :  { %5447 = shalt.err (!%p5444_p1)
}
  0x25   :  { %43 = dma.hbm_to_vmem [thread:$0]  %s6973_s5, 256, %s5579_s26, [#allocation5], %s5500_s16, %s5500_s16, %s5501_s17  }
  0x26   :  { %s5502_s30 = smov [#allocation9]   ;;  %s5448_s15 = scalar_lea.hbm %s6978_s10, 512 }
  0x27   :  { %s67_s13 = sshll.u32 %s5502_s30, 4  ;;  %p5449_p2 = scmp.ne.s32.totalorder %s6978_s10, %s5448_s15  ;;  %s68_s13 = int_to_ptr.vmem [resolvable:$true] %s67_s13 }
  0x28   :  { %p5452_p3 = scmp.lt.u32.totalorder %s5448_s15, %s6978_s10 }
  0x2a   :  { %p5454_p4 = pnand %p5452_p3, %p5449_p2 }
  0x2c   :  { %5457 = shalt.err (!%p5454_p4)
}
  0x2d   :  { %s5458_s22 = scalar_lea.vmem %s68_s13, 512  ;;  %p5463_p6 = scmp.lt.s32.totalorder %s68_s13, %s68_s13 }
  0x2e   :  { %p5459_p5 = scmp.ne.s32.totalorder %s68_s13, %s5458_s22  ;;  %p5464_p7 = scmp.lt.s32.totalorder %s5458_s22, %s5458_s22 }
  0x30   :  { %p5465_p8 = por %p5464_p7, %p5463_p6 }
  0x32   :  { %p5466_p9 = pnand %p5465_p8, %p5459_p5 }
  0x34   :  { %5469 = shalt.err (!%p5466_p9)
}
  0x35   :  { %73 = dma.hbm_to_vmem [thread:$0]  %s6978_s10, 512, %s68_s13, [#allocation8], %s5500_s16, %s5500_s16, %s5501_s17  }
  0x36   :  { %5492 = dma.done.wait [#allocation5], 256  }
  0x37   :  { %5493 = vsyncadd [#allocation5], 4294967040 }
  0x38   :  { %5494 = dma.done.wait [#allocation8], 1024  }
  0x39   :  { %5495 = vsyncadd [#allocation8], 4294966272  ;;  %v5503_v1 = vmov 0   ;;  %v5634_v2 = vld [vmem:[%s6968_s0 + $0x10] sm:$0xff]  ;;  %v4739_v3 = vld [vmem:[%s6970_s2] ss:$0 sm:$0xff]  ;;  %v331_v37 = vlaneseq }
  0x3a   :  { %5204 = vset.pattern.permute.xlu1 %v5503_v1  ;;  %5205 = vset.pattern.permute.xlu0 %v5503_v1  ;;  %vm108_vm0 = vcmask 261120   ;;  %v5642_v4 = vld [vmem:[%s6968_s0] sm:$0xff]  ;;  %v102_v5 = vmul.f32 %v4739_v3, %v5634_v2  ;;  %v5649_v7 = vld [vmem:[%s6968_s0 + $0x18] sm:$0xff]  ;;  %v5654_v8 = vld [vmem:[%s6968_s0 + $0x8] sm:$0xff]  ;;  %vm365_vm1 = vcmask 1041409   ;;  %vm367_vm2 = vcmask 1042434  }
  0x3b   :  { %v100_v6 = vmul.f32 %v4739_v3, %v5642_v4  ;;  %v103_v9 = vmul.f32 %v4739_v3, %v5649_v7  ;;  %v101_v10 = vmul.f32 %v4739_v3, %v5654_v8  ;;  %v5661_v11 = vld [vmem:[%s6968_s0 + $0x20] sm:$0xff]  ;;  %v5677_v19 = vld [vmem:[%s6968_s0 + $0x30] sm:$0xff]  ;;  %v5682_v20 = vld [vmem:[%s6968_s0 + $0x28] sm:$0xff]  ;;  %v332_v40 = vand.u32 127, %v331_v37  ;;  %s5507_s26 = smov 64   ;;  %s5508_s25 = smov 96  }
  0x3c   :  { %v5666_v12 = vld [vmem:[%s6971_s3] ss:$0 sm:$0xff]  ;;  %v115_v13 = vsel %vm108_vm0, %v102_v5, 0.0  ;;  %v104_v17 = vmul.f32 %v4739_v3, %v5661_v11  ;;  %v106_v23 = vmul.f32 %v4739_v3, %v5677_v19  ;;  %v105_v24 = vmul.f32 %v4739_v3, %v5682_v20  ;;  %v5691_v25 = vld [vmem:[%s6968_s0 + $0x38] sm:$0xff]  ;;  %s5509_s27 = smov 32  }
  0x3d   :  { %v109_v14 = vsel %vm108_vm0, %v100_v6, 0.0  ;;  %116 = vadd.xlane.f32.xlu1 %v115_v13  ;;  %v118_v15 = vsel %vm108_vm0, %v103_v9, 0.0  ;;  %v112_v16 = vsel %vm108_vm0, %v101_v10, 0.0  ;;  %v311_v18 = vmul.f32 0.0, %v5666_v12  ;;  %v4740_v30 = vld [vmem:[#allocation3] ss:$0 sm:$0xff] }
  0x3e   :  { %110 = vadd.xlane.f32.xlu0 %v109_v14  ;;  %v121_v21 = vsel %vm108_vm0, %v104_v17, 0.0  ;;  %v127_v26 = vsel %vm108_vm0, %v106_v23, 0.0  ;;  %v124_v27 = vsel %vm108_vm0, %v105_v24, 0.0  ;;  %v107_v28 = vmul.f32 %v4739_v3, %v5691_v25 }
  0x3f   :  { %v312_v22 = vsel %vm108_vm0, %v311_v18, 0.0  ;;  %v5697_v41 = vshrl.u32 %v331_v37, 7  ;;  %vm369_vm3 = vcmask 1043459   ;;  %vm371_vm4 = vcmask 1044484  }
  0x40   :  { %v130_v29 = vsel %vm108_vm0, %v107_v28, 0.0  ;;  %vm373_vm5 = vcmask 1045509   ;;  %vm375_vm6 = vcmask 1046534   ;;  %vm377_vm7 = vcmask 1047559  }
  0x41   :  { %119 = vadd.xlane.f32.xlu1 %v118_v15  ;;  %v5700_v44 = vsub.s32 %v332_v40, %v5697_v41  ;;  %vm380_vm8 = vcmask 64512   ;;  %v5752_v23 = vsub.s32 2, %v5697_v41  ;;  %v5755_v24 = vsub.s32 3, %v5697_v41 }
  0x42   :  { %113 = vadd.xlane.f32.xlu0 %v112_v16  ;;  %v5765_v37 = vsub.s32 5, %v5697_v41  ;;  %vm5505_vm9 = vmmov 0   ;;  %vm167_vm10 = vcmask 130048  }
  0x45   :  { %122 = vadd.xlane.f32.xlu1 %v121_v21  ;;  %v5746_v21 = vsub.s32 0, %v5697_v41 }
  0x46   :  { %313 = vadd.xlane.f32.xlu0 %v312_v22  ;;  %v5749_v22 = vsub.s32 1, %v5697_v41 }
  0x49   :  { %128 = vadd.xlane.f32.xlu1 %v127_v26 }
  0x4a   :  { %125 = vadd.xlane.f32.xlu0 %v124_v27 }
  0x4e   :  { %131 = vadd.xlane.f32.xlu0 %v130_v29 }
  0x5a   :  { %140 = vperm.xlu1 %5204, %v4740_v30   ;;  %v5761_v30 = vsub.s32 4, %v5697_v41 }
  0xca   :  { %v117_v31 = vpop.xlane.xlu1 %116 }
  0xcb   :  { %v111_v32 = vpop.xlane.xlu0 %110 }
  0xce   :  { %v120_v33 = vpop.xlane.xlu1 %119 }
  0xcf   :  { %v114_v34 = vpop.xlane.xlu0 %113 }
  0xd2   :  { %v123_v35 = vpop.xlane.xlu1 %122 }
  0xd3   :  { %v314_v36 = vpop.xlane.xlu0 %313 }
  0xd6   :  { %v129_v38 = vpop.xlane.xlu1 %128 }
  0xd7   :  { %v126_v39 = vpop.xlane.xlu0 %125 }
  0xda   :  { %v141_v42 = vpop.permute.xlu1 %140 }
  0xdb   :  { %v132_v43 = vpop.xlane.xlu0 %131  ;;  %v5702_v45 = vadd.f32 %v141_v42, %v111_v32  ;;  %v5704_v46 = vadd.f32 %v141_v42, %v114_v34  ;;  %v5706_v47 = vadd.f32 %v141_v42, %v117_v31  ;;  %v5708_v48 = vadd.f32 %v141_v42, %v120_v33 }
  0xdc   :  { %v5710_v49 = vadd.f32 %v141_v42, %v123_v35  ;;  %v5712_v50 = vadd.f32 %v141_v42, %v126_v39  ;;  %v5714_v51 = vadd.f32 %v141_v42, %v129_v38  ;;  %v5716_v52 = vadd.f32 %v141_v42, %v132_v43 }
  0xdd   :  { %v315_v53 = vadd.f32 %v314_v36, %v5702_v45  ;;  %v316_v54 = vadd.f32 %v314_v36, %v5704_v46  ;;  %v317_v55 = vadd.f32 %v314_v36, %v5706_v47  ;;  %v318_v56 = vadd.f32 %v314_v36, %v5708_v48 }
  0xde   :  { %v319_v57 = vadd.f32 %v314_v36, %v5710_v49  ;;  %v320_v58 = vadd.f32 %v314_v36, %v5712_v50  ;;  %v321_v62 = vadd.f32 %v314_v36, %v5714_v51  ;;  %v5729_v63 = vadd.f32 %v314_v36, %v5716_v52 }
  0xdf   :  { %v336_v59 = vrot.slane %v315_v53, %v5700_v44  ;;  %v340_v60 = vrot.slane %v316_v54, %v5700_v44  ;;  %v344_v61 = vrot.slane %v317_v55, %v5700_v44  ;;  %v348_v0 = vrot.slane %v318_v56, %v5700_v44 }
  0xe0   :  { %v352_v3 = vrot.slane %v319_v57, %v5700_v44  ;;  %v356_v6 = vrot.slane %v320_v58, %v5700_v44  ;;  %v360_v10 = vrot.slane %v321_v62, %v5700_v44  ;;  %v364_v14 = vrot.slane %v5729_v63, %v5700_v44 }
  0xe1   :  { %v366_v1 = vsel %vm365_vm1, %v340_v60, %v336_v59  ;;  %v5769_v42 = vsub.s32 6, %v5697_v41 }
  0xe2   :  { %v368_v5 = vsel %vm367_vm2, %v344_v61, %v366_v1 }
  0xe3   :  { %v370_v9 = vsel %vm369_vm3, %v348_v0, %v368_v5 }
  0xe4   :  { %v372_v13 = vsel %vm371_vm4, %v352_v3, %v370_v9 }
  0xe5   :  { %v374_v15 = vsel %vm373_vm5, %v356_v6, %v372_v13 }
  0xe6   :  { %v376_v16 = vsel %vm375_vm6, %v360_v10, %v374_v15 }
  0xe7   :  { %v378_v17 = vsel %vm377_vm7, %v364_v14, %v376_v16 }
  0xe8   :  { %v381_v18 = vsel %vm380_vm8, %v378_v17, -inf }
  0xe9   :  { %382 = vmax.xlane.f32.xlu0 %v381_v18 }
 0x176   :  { %v383_v26 = vpop.xlane.xlu0 %382 }
 0x177   :  { %v388_v27 = vrot.slane %v383_v26, %v5746_v21  ;;  %v392_v28 = vrot.slane %v383_v26, %v5749_v22  ;;  %v396_v29 = vrot.slane %v383_v26, %v5752_v23  ;;  %v400_v31 = vrot.slane %v383_v26, %v5755_v24 }
 0x178   :  { %v404_v38 = vrot.slane %v383_v26, %v5761_v30  ;;  %v408_v43 = vrot.slane %v383_v26, %v5765_v37  ;;  %v412_v59 = vrot.slane %v383_v26, %v5769_v42 }
 0x179   :  { %v426_v32 = vsub.f32 %v316_v54, %v392_v28  ;;  %v425_v33 = vsub.f32 %v315_v53, %v388_v27  ;;  %v427_v34 = vsub.f32 %v317_v55, %v396_v29  ;;  %v428_v40 = vsub.f32 %v318_v56, %v400_v31 }
 0x17a   :  { %v429_v53 = vsub.f32 %v319_v57, %v404_v38  ;;  %v5773_v55 = vsub.s32 7, %v5697_v41  ;;  %v430_v61 = vsub.f32 %v320_v58, %v408_v43  ;;  %v431_v3 = vsub.f32 %v321_v62, %v412_v59 }
 0x17b   :  { %v435_v35 = vmul.f32 1.442695, %v426_v32  ;;  %v433_v36 = vmul.f32 1.442695, %v425_v33  ;;  %v437_v39 = vmul.f32 1.442695, %v427_v34 }
 0x17c   :  { %v439_v54 = vmul.f32 1.442695, %v428_v40  ;;  %v441_v60 = vmul.f32 1.442695, %v429_v53  ;;  %v416_v1 = vrot.slane %v383_v26, %v5773_v55  ;;  %v443_v57 = vmul.f32 1.442695, %v430_v61 }
 0x17d   :  { %5206 = vpow2.f32 %v435_v35  ;;  %v445_v5 = vmul.f32 1.442695, %v431_v3  ;;  %v309_v3 = vld [vmem:[%s6975_s7 + $0x10] sm:$0xff] }
 0x17e   :  { %5208 = vpow2.f32 %v433_v36  ;;  %v432_v58 = vsub.f32 %v5729_v63, %v416_v1  ;;  %v307_v1 = vld [vmem:[%s6975_s7] sm:$0xff] }
 0x17f   :  { %5210 = vpow2.f32 %v437_v39 }
 0x180   :  { %5212 = vpow2.f32 %v439_v54  ;;  %v447_v9 = vmul.f32 1.442695, %v432_v58 }
 0x181   :  { %5214 = vpow2.f32 %v441_v60 }
 0x182   :  { %5216 = vpow2.f32 %v443_v57  ;;  %v308_v57 = vld [vmem:[%s6975_s7 + $0x8] sm:$0xff] }
 0x183   :  { %5218 = vpow2.f32 %v445_v5  ;;  %v6981_v5 = vmov 0.0|0.0   ;;  %v5828_v58 = vpack.c.bf16 %v308_v57, %v307_v1  ;;  %v306_v1 = vld [vmem:[#allocation7 + $0x18] sm:$0xff] }
 0x184   :  { %5220 = vpow2.f32 %v447_v9  ;;  %5086 = vmatprep.subr.bf16.mxu1 %v6981_v5  ;;  %v310_v9 = vld [vmem:[%s6975_s7 + $0x18] sm:$0xff]  ;;  %5077 = vmatprep.subr.bf16.mxu0 %v6981_v5  ;;  %v156_v57 = vld [vmem:[%s6969_s1 + $0x28] sm:$0xff] }
 0x185   :  { %5088 = vmatpush3.bf16.msra.mxu1 %v5828_v58 }
 0x186   :  { %5089 = vmatprep.subr.bf16.mxu1 %v6981_v5 }
 0x187   :  { %v5776_v0 = vpop.eup %5206 }
 0x188   :  { %v5778_v56 = vpop.eup %5208  ;;  %461 = vperm.xlu1 %5204, %v5776_v0  }
 0x189   :  { %458 = vperm.xlu0 %5205, %v5778_v56   ;;  %v5783_v41 = vpop.eup %5210 }
 0x18a   :  { %v5787_v6 = vpop.eup %5212 }
 0x18b   :  { %v5790_v10 = vpop.eup %5214 }
 0x18c   :  { %464 = vperm.xlu1 %5204, %v5783_v41   ;;  %v5793_v62 = vpop.eup %5216 }
 0x18d   :  { %v5796_v13 = vpop.eup %5218 }
 0x18e   :  { %v5799_v63 = vpop.eup %5220 }
 0x190   :  { %467 = vperm.xlu1 %5204, %v5787_v6  }
 0x194   :  { %470 = vperm.xlu1 %5204, %v5790_v10  }
 0x198   :  { %473 = vperm.xlu1 %5204, %v5793_v62  }
 0x19c   :  { %476 = vperm.xlu1 %5204, %v5796_v13  }
 0x1a0   :  { %479 = vperm.xlu1 %5204, %v5799_v63  }
 0x207   :  { %v462_v14 = vpop.permute.xlu1 %461 }
 0x208   :  { %v459_v18 = vpop.permute.xlu0 %458  ;;  %v488_v27 = vrot.slane %v462_v14, %v5700_v44  ;;  %v6983_v14 = vmov 0.0  }
 0x209   :  { %v484_v28 = vrot.slane %v459_v18, %v5700_v44  ;;  %4913 = vmatprep.mubr.msk.f32.mxu1 %vm5505_vm9, %v6983_v14  ;;  %4873 = vmatprep.mubr.msk.f32.mxu0 %vm5505_vm9, %v6983_v14 }
 0x20b   :  { %v465_v15 = vpop.permute.xlu1 %464  ;;  %v513_v34 = vsel %vm365_vm1, %v488_v27, %v484_v28 }
 0x20c   :  { %v492_v29 = vrot.slane %v465_v15, %v5700_v44  ;;  %v5839_v15 = vpack.c.bf16 %v310_v9, %v309_v3  ;;  %v157_v9 = vld [vmem:[%s6969_s1 + $0x30] sm:$0xff] }
 0x20e   :  { %v514_v36 = vsel %vm367_vm2, %v492_v29, %v513_v34  ;;  %5091 = vmatpush3.bf16.msra.mxu1 %v5839_v15 }
 0x20f   :  { %v468_v16 = vpop.permute.xlu1 %467  ;;  %5098 = vmatprep.subr.bf16.mxu1 %v6981_v5 }
 0x210   :  { %v496_v31 = vrot.slane %v468_v16, %v5700_v44 }
 0x211   :  { %4914 = vmatmul.mubr.f32.vlgmr.msra.gmra.mrb[0].mxu1 %v6983_v14 }
 0x212   :  { %v515_v39 = vsel %vm369_vm3, %v496_v31, %v514_v36  ;;  %5100 = vmatpush3.bf16.msra.mxu1 %v5828_v58  ;;  %4935 = vmatprep.mubr.msk.f32.mxu1 %vm5505_vm9, %v6983_v14  ;;  %v158_v36 = vld [vmem:[#allocation4] sm:$0xff] }
 0x213   :  { %v471_v17 = vpop.permute.xlu1 %470  ;;  %5101 = vmatprep.subr.bf16.mxu1 %v6981_v5 }
 0x214   :  { %v500_v32 = vrot.slane %v471_v17, %v5700_v44 }
 0x216   :  { %v516_v40 = vsel %vm371_vm4, %v500_v32, %v515_v39  ;;  %5103 = vmatpush3.bf16.msra.mxu1 %v5839_v15 }
 0x217   :  { %v474_v26 = vpop.permute.xlu1 %473  ;;  %5110 = vmatprep.subr.bf16.mxu1 %v6981_v5 }
 0x218   :  { %v504_v35 = vrot.slane %v474_v26, %v5700_v44 }
 0x21a   :  { %v517_v53 = vsel %vm373_vm5, %v504_v35, %v516_v40 }
 0x21b   :  { %v477_v33 = vpop.permute.xlu1 %476 }
 0x21c   :  { %v508_v38 = vrot.slane %v477_v33, %v5700_v44 }
 0x21e   :  { %v518_v59 = vsel %vm375_vm6, %v508_v38, %v517_v53  ;;  %v304_v53 = vld [vmem:[#allocation7 + $0x8] sm:$0xff] }
 0x21f   :  { %v480_v43 = vpop.permute.xlu1 %479 }
 0x220   :  { %v512_v54 = vrot.slane %v480_v43, %v5700_v44  ;;  %v152_v43 = vld [vmem:[%s6969_s1 + $0x8] sm:$0xff] }
 0x222   :  { %v519_v60 = vsel %vm377_vm7, %v512_v54, %v518_v59  ;;  %v303_v54 = vld [vmem:[#allocation7] sm:$0xff] }
 0x223   :  { %v521_v61 = vsel %vm380_vm8, %v519_v60, 0.0  ;;  %v5884_v59 = vpack.c.bf16 %v304_v53, %v303_v54  ;;  %v155_v60 = vld [vmem:[%s6969_s1 + $0x20] sm:$0xff] }
 0x224   :  { %522 = vadd.xlane.f32.xlu1 %v521_v61  ;;  %v305_v61 = vld [vmem:[#allocation7 + $0x10] sm:$0xff] }
 0x225   :  { %v5905_v3 = vpack.c.bf16 %v306_v1, %v305_v61 }
 0x2b1   :  { %v523_v16 = vpop.xlane.xlu1 %522 }
 0x2b2   :  { %5222 = vrcp.f32 %v523_v16  ;;  %v5921_v16 = vld [vmem:[%s6977_s9] ss:$0 sm:$0xff] }
 0x2bc   :  { %v5223_v17 = vpop.eup %5222 }
 0x2bd   :  { %v529_v18 = vrot.slane %v5223_v17, %v5746_v21  ;;  %v533_v27 = vrot.slane %v5223_v17, %v5749_v22  ;;  %v537_v29 = vrot.slane %v5223_v17, %v5752_v23  ;;  %v541_v32 = vrot.slane %v5223_v17, %v5755_v24 }
 0x2be   :  { %v545_v34 = vrot.slane %v5223_v17, %v5761_v30  ;;  %v549_v35 = vrot.slane %v5223_v17, %v5765_v37  ;;  %v553_v39 = vrot.slane %v5223_v17, %v5769_v42  ;;  %v557_v40 = vrot.slane %v5223_v17, %v5773_v55 }
 0x2bf   :  { %v566_v26 = vmul.f32 %v5778_v56, %v529_v18  ;;  %v567_v28 = vmul.f32 %v5776_v0, %v533_v27  ;;  %v568_v31 = vmul.f32 %v5783_v41, %v537_v29  ;;  %v569_v33 = vmul.f32 %v5787_v6, %v541_v32  ;;  %v159_v0 = vld [vmem:[#allocation4 + $0x8] sm:$0xff] }
 0x2c0   :  { %v570_v56 = vmul.f32 %v5790_v10, %v545_v34  ;;  %v571_v38 = vmul.f32 %v5793_v62, %v549_v35  ;;  %v5078_v41 = vpack.c.bf16 %v159_v0, %v158_v36  ;;  %v572_v6 = vmul.f32 %v5796_v13, %v553_v39  ;;  %v151_v10 = vld [vmem:[%s6969_s1] sm:$0xff]  ;;  %v153_v13 = vld [vmem:[%s6969_s1 + $0x10] sm:$0xff] }
 0x2c1   :  { %576 = vperm.xlu0 %5205, %v566_v26   ;;  %v573_v62 = vmul.f32 %v5799_v63, %v557_v40  ;;  %v154_v63 = vld [vmem:[%s6969_s1 + $0x18] sm:$0xff] }
 0x2c2   :  { %5079 = vmatpush3.bf16.msra.mxu0 %v5078_v41 }
 0x2c3   :  { %5080 = vmatprep.subr.bf16.mxu0 %v6981_v5 }
 0x2c5   :  { %581 = vperm.xlu0 %5205, %v567_v28   ;;  %4874 = vmatmul.mubr.msk.f32.vlgmr.msra.gmra.mrb[0].mxu0 %vm167_vm10, %v151_v10 }
 0x2c6   :  { %4876 = vmatprep.mubr.msk.f32.mxu0 %vm5505_vm9, %v6983_v14  ;;  %5082 = vmatpush3.bf16.msra.mxu0 %v5884_v59 }
 0x2c7   :  { %5083 = vmatprep.subr.bf16.mxu0 %v6981_v5 }
 0x2c9   :  { %586 = vperm.xlu0 %5205, %v568_v31   ;;  %4877 = vmatmul.mubr.msk.f32.gmra.mrb[2].mxu0 %vm167_vm10, %v152_v43 }
 0x2ca   :  { %4879 = vmatprep.mubr.msk.f32.mxu0 %vm5505_vm9, %v6983_v14  ;;  %5085 = vmatpush3.bf16.msra.mxu0 %v5905_v3 }
 0x2cb   :  { %5092 = vmatprep.subr.bf16.mxu0 %v6981_v5 }
 0x2cd   :  { %591 = vperm.xlu0 %5205, %v569_v33   ;;  %4880 = vmatmul.mubr.msk.f32.gmra.mrb[4].mxu0 %vm167_vm10, %v153_v13 }
 0x2ce   :  { %4882 = vmatprep.mubr.msk.f32.mxu0 %vm5505_vm9, %v6983_v14 }
 0x2d1   :  { %596 = vperm.xlu0 %5205, %v570_v56   ;;  %4883 = vmatmul.mubr.msk.f32.gmra.mrb[6].mxu0 %vm167_vm10, %v154_v63 }
 0x2d2   :  { %4885 = vmatprep.mubr.msk.f32.mxu0 %vm5505_vm9, %v6983_v14 }
 0x2d5   :  { %601 = vperm.xlu0 %5205, %v571_v38   ;;  %4886 = vmatmul.mubr.msk.f32.gmra.mrb[8].mxu0 %vm167_vm10, %v155_v60 }
 0x2d6   :  { %4888 = vmatprep.mubr.msk.f32.mxu0 %vm5505_vm9, %v6983_v14 }
 0x2d9   :  { %606 = vperm.xlu0 %5205, %v572_v6   ;;  %4889 = vmatmul.mubr.msk.f32.gmra.mrb[10].mxu0 %vm167_vm10, %v156_v57 }
 0x2da   :  { %4891 = vmatprep.mubr.msk.f32.mxu0 %vm5505_vm9, %v6983_v14 }
 0x2dd   :  { %611 = vperm.xlu0 %5205, %v573_v62   ;;  %4892 = vmatmul.mubr.msk.f32.gmra.mrb[12].mxu0 %vm167_vm10, %v157_v9 }
 0x2de   :  { %4902 = vmatprep.mubr.msk.f32.mxu0 %vm5505_vm9, %v6983_v14 }
 0x2e4   :  { %v835_v17 = vpop.f32.mrb[0].mxu1 }
 0x2e5   :  { %v5924_v18 = vadd.f32 %v5921_v16, %v835_v17  ;;  %v4915_v26 = vpop.f32.mrb[1].mxu1 }
 0x2e7   :  { %847 = vrot.lane.b32.xlu1 %v5924_v18, %s5507_s26 }
 0x340   :  { %v577_v27 = vpop.permute.xlu0 %576 }
 0x341   :  { %v614_v32 = vmul.f32 %v577_v27, %v5642_v4 }
 0x343   :  { %v622_v36 = vsel %vm108_vm0, %v614_v32, 0.0 }
 0x344   :  { %v582_v28 = vpop.permute.xlu0 %581  ;;  %v623_v6 = vrot.slane %v622_v36, 4 }
 0x345   :  { %v615_v29 = vmul.f32 %v582_v28, %v5654_v8 }
 0x346   :  { %v624_v43 = vadd.f32 %v623_v6, %v622_v36 }
 0x347   :  { %v629_v34 = vsel %vm108_vm0, %v615_v29, 0.0 }
 0x348   :  { %v587_v31 = vpop.permute.xlu0 %586  ;;  %v630_v38 = vrot.slane %v629_v34, 4  ;;  %v625_v57 = vrot.slane %v624_v43, 2 }
 0x349   :  { %v616_v33 = vmul.f32 %v587_v31, %v5634_v2 }
 0x34a   :  { %v631_v10 = vadd.f32 %v630_v38, %v629_v34 }
 0x34b   :  { %v636_v56 = vsel %vm108_vm0, %v616_v33, 0.0  ;;  %v626_v33 = vadd.f32 %v625_v57, %v624_v43 }
 0x34c   :  { %v592_v35 = vpop.permute.xlu0 %591  ;;  %v637_v39 = vrot.slane %v636_v56, 4 }
 0x34d   :  { %v617_v0 = vmul.f32 %v592_v35, %v5649_v7  ;;  %v632_v7 = vrot.slane %v631_v10, 2 }
 0x34e   :  { %v638_v2 = vadd.f32 %v637_v39, %v636_v56 }
 0x34f   :  { %v643_v41 = vsel %vm108_vm0, %v617_v0, 0.0  ;;  %v633_v28 = vadd.f32 %v632_v7, %v631_v10 }
 0x350   :  { %v644_v8 = vrot.slane %v643_v41, 4  ;;  %v597_v40 = vpop.permute.xlu0 %596  ;;  %v639_v61 = vrot.slane %v638_v2, 2 }
 0x351   :  { %v618_v4 = vmul.f32 %v597_v40, %v5661_v11  ;;  %v634_v38 = vrot.slane %v633_v28, 1 }
 0x352   :  { %v645_v13 = vadd.f32 %v644_v8, %v643_v41  ;;  %v640_v31 = vadd.f32 %v639_v61, %v638_v2 }
 0x353   :  { %v650_v62 = vsel %vm108_vm0, %v618_v4, 0.0 }
 0x354   :  { %v651_v54 = vrot.slane %v650_v62, 4  ;;  %v602_v53 = vpop.permute.xlu0 %601  ;;  %v646_v9 = vrot.slane %v645_v13, 2  ;;  %v641_v6 = vrot.slane %v640_v31, 1 }
 0x355   :  { %v619_v63 = vmul.f32 %v602_v53, %v5682_v20 }
 0x356   :  { %v652_v60 = vadd.f32 %v651_v54, %v650_v62  ;;  %v647_v34 = vadd.f32 %v646_v9, %v645_v13  ;;  %v635_v62 = vadd.f32 %v634_v38, %v633_v28  ;;  %v642_v53 = vadd.f32 %v641_v6, %v640_v31 }
 0x357   :  { %v657_v1 = vsel %vm108_vm0, %v619_v63, 0.0 }
 0x358   :  { %v658_v17 = vrot.slane %v657_v1, 4  ;;  %v607_v26 = vpop.permute.xlu0 %606  ;;  %v653_v11 = vrot.slane %v652_v60, 2  ;;  %v648_v40 = vrot.slane %v647_v34, 1 }
 0x359   :  { %v620_v27 = vmul.f32 %v607_v26, %v5677_v19  ;;  %v627_v19 = vrot.slane %v626_v33, 1 }
 0x35a   :  { %v659_v29 = vadd.f32 %v658_v17, %v657_v1  ;;  %v654_v36 = vadd.f32 %v653_v11, %v652_v60  ;;  %v649_v7 = vadd.f32 %v648_v40, %v647_v34  ;;  %v5961_v34 = vld [vmem:[%s6976_s8] ss:$0 sm:$0xff] }
 0x35b   :  { %v664_v32 = vsel %vm108_vm0, %v620_v27, 0.0  ;;  %v628_v63 = vadd.f32 %v627_v19, %v626_v33 }
 0x35c   :  { %v660_v20 = vrot.slane %v659_v29, 2  ;;  %v665_v56 = vrot.slane %v664_v32, 4  ;;  %v612_v35 = vpop.permute.xlu0 %611  ;;  %v655_v2 = vrot.slane %v654_v36, 1 }
 0x35d   :  { %v621_v0 = vmul.f32 %v612_v35, %v5691_v25  ;;  %v686_v1 = vsel %vm365_vm1, %v635_v62, %v628_v63 }
 0x35e   :  { %v661_v39 = vadd.f32 %v660_v20, %v659_v29  ;;  %v666_v41 = vadd.f32 %v665_v56, %v664_v32  ;;  %v656_v61 = vadd.f32 %v655_v2, %v654_v36  ;;  %v687_v17 = vsel %vm367_vm2, %v642_v53, %v686_v1 }
 0x35f   :  { %v671_v8 = vsel %vm108_vm0, %v621_v0, 0.0  ;;  %v688_v11 = vsel %vm369_vm3, %v649_v7, %v687_v17 }
 0x360   :  { %v667_v4 = vrot.slane %v666_v41, 2  ;;  %v672_v10 = vrot.slane %v671_v8, 4  ;;  %v662_v43 = vrot.slane %v661_v39, 1  ;;  %v689_v28 = vsel %vm371_vm4, %v656_v61, %v688_v11 }
 0x362   :  { %v668_v13 = vadd.f32 %v667_v4, %v666_v41  ;;  %v673_v54 = vadd.f32 %v672_v10, %v671_v8  ;;  %v663_v57 = vadd.f32 %v662_v43, %v661_v39  ;;  %v848_v41 = vpop.permute.xlu1 %847 }
 0x364   :  { %v669_v60 = vrot.slane %v668_v13, 1  ;;  %v674_v25 = vrot.slane %v673_v54, 2  ;;  %v690_v31 = vsel %vm373_vm5, %v663_v57, %v689_v28 }
 0x366   :  { %v675_v9 = vadd.f32 %v674_v25, %v673_v54  ;;  %v670_v26 = vadd.f32 %v669_v60, %v668_v13 }
 0x368   :  { %v676_v27 = vrot.slane %v675_v9, 1  ;;  %v691_v32 = vsel %vm375_vm6, %v670_v26, %v690_v31 }
 0x36a   :  { %v677_v29 = vadd.f32 %v676_v27, %v675_v9 }
 0x36c   :  { %v692_v33 = vsel %vm377_vm7, %v677_v29, %v691_v32 }
 0x36d   :  { %4903 = vmatmul.mubr.msk.f32.vlgmr.msra.gmra.mrb[0].mxu0 %vm108_vm0, %v692_v33 }
 0x36e   :  { %5094 = vmatpush3.bf16.msra.mxu0 %v5884_v59  ;;  %4924 = vmatprep.mubr.msk.f32.mxu0 %vm5505_vm9, %v6983_v14 }
 0x36f   :  { %5095 = vmatprep.subr.bf16.mxu0 %v6981_v5 }
 0x372   :  { %5097 = vmatpush3.bf16.msra.mxu0 %v5905_v3 }
 0x373   :  { %5104 = vmatprep.subr.bf16.mxu0 %v6981_v5 }
 0x440   :  { %v761_v20 = vpop.f32.mrb[0].mxu0 }
 0x441   :  { %v5170_v56 = vadd.f32 %v5961_v34, %v761_v20  ;;  %v4904_v35 = vpop.f32.mrb[1].mxu0 }
 0x443   :  { %v839_v36 = vadd.f32 %v5170_v56, %v5924_v18 }
 0x445   :  { %v4752_v0 = vmul.f32 -1.442695, %v839_v36 }
 0x447   :  { %5224 = vpow2.f32 %v4752_v0 }
 0x451   :  { %v5225_v38 = vpop.eup %5224 }
 0x452   :  { %v843_v39 = vadd.f32 1.0, %v5225_v38 }
 0x454   :  { %5226 = vrcp.f32 %v843_v39 }
 0x45e   :  { %v5227_v6 = vpop.eup %5226 }
 0x45f   :  { %v850_v8 = vmul.f32 %v5227_v6, %v848_v41  ;;  %v857_v18 = vsub.f32 1.0, %v5227_v6  ;;  %v863_v2 = vmul.f32 0.0, %v5227_v6 }
 0x461   :  { %852 = vrot.lane.b32.xlu0 %v850_v8, %s5507_s26 }
 0x4d3   :  { %v853_v19 = vpop.permute.xlu0 %852 }
 0x4d4   :  { %v855_v40 = vadd.f32 %v5170_v56, %v853_v19 }
 0x4d6   :  { %5228 = vtanh.f32 %v855_v40 }
 0x4e0   :  { %v5229_v4 = vpop.eup %5228 }
 0x4e1   :  { %859 = vrot.lane.b32.xlu0 %v5229_v4, %s5508_s25 }
 0x4e5   :  { %870 = vrot.lane.b32.xlu0 %v5666_v12, %s5509_s27 }
 0x553   :  { %v860_v10 = vpop.permute.xlu0 %859 }
 0x554   :  { %v862_v62 = vmul.f32 %v860_v10, %v857_v18 }
 0x556   :  { %v5968_v43 = vadd.f32 %v863_v2, %v862_v62 }
 0x557   :  { %v5970_v13 = vpop.permute.xlu0 %870 }
 0x558   :  { %v873_v54 = vmul.f32 %v5970_v13, %v5968_v43 }
 0x55a   :  { %875 = vrot.lane.b32.xlu0 %v873_v54, %s5508_s25 }
 0x5cc   :  { %v876_v53 = vpop.permute.xlu0 %875 }
 0x5cd   :  { %v878_v63 = vsel %vm108_vm0, %v876_v53, 0.0 }
 0x5ce   :  { %879 = vadd.xlane.f32.xlu1 %v878_v63 }
 0x65b   :  { %v880_v7 = vpop.xlane.xlu1 %879 }
 0x65c   :  { %v885_v12 = vrot.slane %v880_v7, %v5746_v21  ;;  %v889_v25 = vrot.slane %v880_v7, %v5749_v22  ;;  %v893_v1 = vrot.slane %v880_v7, %v5752_v23  ;;  %v897_v9 = vrot.slane %v880_v7, %v5755_v24 }
 0x65d   :  { %v901_v26 = vrot.slane %v880_v7, %v5761_v30  ;;  %v905_v27 = vrot.slane %v880_v7, %v5765_v37  ;;  %v909_v29 = vrot.slane %v880_v7, %v5769_v42  ;;  %v913_v32 = vrot.slane %v880_v7, %v5773_v55 }
 0x65e   :  { %v922_v60 = vadd.f32 %v885_v12, %v5702_v45  ;;  %v923_v61 = vadd.f32 %v889_v25, %v5704_v46  ;;  %v924_v57 = vadd.f32 %v893_v1, %v5706_v47  ;;  %v925_v17 = vadd.f32 %v897_v9, %v5708_v48 }
 0x65f   :  { %v926_v11 = vadd.f32 %v901_v26, %v5710_v49  ;;  %v927_v28 = vadd.f32 %v905_v27, %v5712_v50  ;;  %v928_v31 = vadd.f32 %v909_v29, %v5714_v51  ;;  %v5992_v33 = vadd.f32 %v913_v32, %v5716_v52 }
 0x660   :  { %939 = vperm.xlu0 %5205, %v922_v60  }
 0x664   :  { %942 = vperm.xlu0 %5205, %v923_v61  }
 0x668   :  { %945 = vperm.xlu0 %5205, %v924_v57  }
 0x66c   :  { %948 = vperm.xlu0 %5205, %v925_v17  }
 0x670   :  { %951 = vperm.xlu0 %5205, %v926_v11  }
 0x674   :  { %954 = vperm.xlu0 %5205, %v927_v28  }
 0x678   :  { %957 = vperm.xlu0 %5205, %v928_v31  }
 0x67c   :  { %960 = vperm.xlu0 %5205, %v5992_v33  }
 0x6df   :  { %v940_v20 = vpop.permute.xlu0 %939 }
 0x6e0   :  { %v965_v6 = vrot.slane %v940_v20, %v5700_v44 }
 0x6e3   :  { %v943_v56 = vpop.permute.xlu0 %942 }
 0x6e4   :  { %v969_v39 = vrot.slane %v943_v56, %v5700_v44 }
 0x6e6   :  { %v994_v4 = vsel %vm365_vm1, %v969_v39, %v965_v6 }
 0x6e7   :  { %v946_v35 = vpop.permute.xlu0 %945 }
 0x6e8   :  { %v973_v41 = vrot.slane %v946_v35, %v5700_v44 }
 0x6ea   :  { %v995_v10 = vsel %vm367_vm2, %v973_v41, %v994_v4 }
 0x6eb   :  { %v949_v36 = vpop.permute.xlu0 %948 }
 0x6ec   :  { %v977_v8 = vrot.slane %v949_v36, %v5700_v44 }
 0x6ee   :  { %v996_v62 = vsel %vm369_vm3, %v977_v8, %v995_v10 }
 0x6ef   :  { %v952_v0 = vpop.permute.xlu0 %951 }
 0x6f0   :  { %v981_v19 = vrot.slane %v952_v0, %v5700_v44 }
 0x6f2   :  { %v997_v54 = vsel %vm371_vm4, %v981_v19, %v996_v62 }
 0x6f3   :  { %v955_v38 = vpop.permute.xlu0 %954 }
 0x6f4   :  { %v985_v18 = vrot.slane %v955_v38, %v5700_v44 }
 0x6f6   :  { %v998_v7 = vsel %vm373_vm5, %v985_v18, %v997_v54 }
 0x6f7   :  { %v958_v40 = vpop.permute.xlu0 %957 }
 0x6f8   :  { %v989_v2 = vrot.slane %v958_v40, %v5700_v44 }
 0x6fa   :  { %v999_v12 = vsel %vm375_vm6, %v989_v2, %v998_v7 }
 0x6fb   :  { %v961_v53 = vpop.permute.xlu0 %960 }
 0x6fc   :  { %v993_v63 = vrot.slane %v961_v53, %v5700_v44 }
 0x6fe   :  { %v1000_v25 = vsel %vm377_vm7, %v993_v63, %v999_v12 }
 0x6ff   :  { %v1002_v1 = vsel %vm380_vm8, %v1000_v25, -inf }
 0x700   :  { %1003 = vmax.xlane.f32.xlu0 %v1002_v1 }
 0x78d   :  { %v1004_v9 = vpop.xlane.xlu0 %1003 }
 0x78e   :  { %v1009_v26 = vrot.slane %v1004_v9, %v5746_v21  ;;  %v1013_v27 = vrot.slane %v1004_v9, %v5749_v22  ;;  %v1025_v29 = vrot.slane %v1004_v9, %v5761_v30  ;;  %v1017_v32 = vrot.slane %v1004_v9, %v5752_v23 }
 0x78f   :  { %v1021_v38 = vrot.slane %v1004_v9, %v5755_v24  ;;  %v1029_v6 = vrot.slane %v1004_v9, %v5765_v37  ;;  %v1033_v40 = vrot.slane %v1004_v9, %v5769_v42  ;;  %v1037_v18 = vrot.slane %v1004_v9, %v5773_v55 }
 0x790   :  { %v1046_v20 = vsub.f32 %v922_v60, %v1009_v26  ;;  %v1047_v56 = vsub.f32 %v923_v61, %v1013_v27  ;;  %v1050_v35 = vsub.f32 %v926_v11, %v1025_v29  ;;  %v1048_v41 = vsub.f32 %v924_v57, %v1017_v32 }
 0x791   :  { %v1049_v19 = vsub.f32 %v925_v17, %v1021_v38  ;;  %v1051_v60 = vsub.f32 %v927_v28, %v1029_v6  ;;  %v1052_v10 = vsub.f32 %v928_v31, %v1033_v40  ;;  %v1053_v28 = vsub.f32 %v5992_v33, %v1037_v18 }
 0x792   :  { %v1054_v36 = vmul.f32 1.442695, %v1046_v20  ;;  %v1062_v0 = vmul.f32 1.442695, %v1050_v35  ;;  %v1056_v39 = vmul.f32 1.442695, %v1047_v56 }
 0x793   :  { %v1058_v8 = vmul.f32 1.442695, %v1048_v41  ;;  %v1060_v4 = vmul.f32 1.442695, %v1049_v19  ;;  %v1064_v57 = vmul.f32 1.442695, %v1051_v60 }
 0x794   :  { %5230 = vpow2.f32 %v1054_v36  ;;  %v1066_v17 = vmul.f32 1.442695, %v1052_v10  ;;  %v1068_v54 = vmul.f32 1.442695, %v1053_v28 }
 0x795   :  { %5232 = vpow2.f32 %v1062_v0 }
 0x796   :  { %5234 = vpow2.f32 %v1056_v39 }
 0x797   :  { %5236 = vpow2.f32 %v1058_v8 }
 0x798   :  { %5238 = vpow2.f32 %v1060_v4 }
 0x799   :  { %5240 = vpow2.f32 %v1064_v57 }
 0x79a   :  { %5242 = vpow2.f32 %v1066_v17 }
 0x79b   :  { %5244 = vpow2.f32 %v1068_v54 }
 0x79e   :  { %v6018_v61 = vpop.eup %5230 }
 0x79f   :  { %v6020_v11 = vpop.eup %5232  ;;  %1079 = vperm.xlu1 %5204, %v6018_v61  }
 0x7a0   :  { %1091 = vperm.xlu0 %5205, %v6020_v11   ;;  %v5235_v2 = vpop.eup %5234 }
 0x7a1   :  { %v5237_v62 = vpop.eup %5236 }
 0x7a2   :  { %v5239_v53 = vpop.eup %5238 }
 0x7a3   :  { %1082 = vperm.xlu1 %5204, %v5235_v2   ;;  %v5241_v63 = vpop.eup %5240 }
 0x7a4   :  { %866 = vrot.lane.b32.xlu0 %v5968_v43, %s5508_s25  ;;  %v5243_v7 = vpop.eup %5242 }
 0x7a5   :  { %v5245_v31 = vpop.eup %5244 }
 0x7a7   :  { %1085 = vperm.xlu1 %5204, %v5237_v62  }
 0x7ab   :  { %1088 = vperm.xlu1 %5204, %v5239_v53  }
 0x7af   :  { %1094 = vperm.xlu1 %5204, %v5241_v63  }
 0x7b3   :  { %1097 = vperm.xlu1 %5204, %v5243_v7  }
 0x7b7   :  { %1100 = vperm.xlu1 %5204, %v5245_v31  }
 0x81e   :  { %v1080_v12 = vpop.permute.xlu1 %1079 }
 0x81f   :  { %v1092_v25 = vpop.permute.xlu0 %1091  ;;  %v1105_v20 = vrot.slane %v1080_v12, %v5700_v44 }
 0x820   :  { %v1121_v41 = vrot.slane %v1092_v25, %v5700_v44 }
 0x822   :  { %v1083_v1 = vpop.permute.xlu1 %1082 }
 0x823   :  { %v867_v9 = vpop.permute.xlu0 %866  ;;  %v1109_v27 = vrot.slane %v1083_v1, %v5700_v44 }
 0x824   :  { %869 = vst.msk [vmem:[#allocation2] sm:$0xff] %vm108_vm0, %v867_v9  ;;  %4936 = vmatmul.mubr.msk.f32.vlgmr.msra.gmra.mrb[2].mxu1 %vm108_vm0, %v867_v9 }
 0x825   :  { %5112 = vmatpush3.bf16.msra.mxu1 %v5828_v58  ;;  %4957 = vmatprep.mubr.msk.f32.mxu1 %vm5505_vm9, %v6983_v14  ;;  %v1134_v35 = vsel %vm365_vm1, %v1109_v27, %v1105_v20 }
 0x826   :  { %v1086_v33 = vpop.permute.xlu1 %1085  ;;  %5113 = vmatprep.subr.bf16.mxu1 %v6981_v5 }
 0x827   :  { %v1113_v29 = vrot.slane %v1086_v33, %v5700_v44 }
 0x829   :  { %5115 = vmatpush3.bf16.msra.mxu1 %v5839_v15  ;;  %v1135_v36 = vsel %vm367_vm2, %v1113_v29, %v1134_v35 }
 0x82a   :  { %v1089_v26 = vpop.permute.xlu1 %1088  ;;  %5122 = vmatprep.subr.bf16.mxu1 %v6981_v5 }
 0x82b   :  { %v1117_v56 = vrot.slane %v1089_v26, %v5700_v44 }
 0x82d   :  { %v1136_v38 = vsel %vm369_vm3, %v1117_v56, %v1135_v36 }
 0x82e   :  { %v1095_v32 = vpop.permute.xlu1 %1094  ;;  %v1137_v19 = vsel %vm371_vm4, %v1121_v41, %v1136_v38 }
 0x82f   :  { %v1125_v39 = vrot.slane %v1095_v32, %v5700_v44 }
 0x831   :  { %v1138_v4 = vsel %vm373_vm5, %v1125_v39, %v1137_v19  ;;  %v6084_v19 = vld [vmem:[%s6968_s0 + $0x10] sm:$0xff] }
 0x832   :  { %v1098_v0 = vpop.permute.xlu1 %1097 }
 0x833   :  { %v1129_v6 = vrot.slane %v1098_v0, %v5700_v44 }
 0x835   :  { %v1139_v60 = vsel %vm375_vm6, %v1129_v6, %v1138_v4  ;;  %v6090_v4 = vld [vmem:[%s6968_s0 + $0x30] sm:$0xff] }
 0x836   :  { %v1101_v8 = vpop.permute.xlu1 %1100 }
 0x837   :  { %v1133_v40 = vrot.slane %v1101_v8, %v5700_v44 }
 0x839   :  { %v1140_v18 = vsel %vm377_vm7, %v1133_v40, %v1139_v60 }
 0x83a   :  { %v1142_v57 = vsel %vm380_vm8, %v1140_v18, 0.0 }
 0x83b   :  { %1143 = vadd.xlane.f32.xlu1 %v1142_v57 }
 0x8c8   :  { %v1144_v10 = vpop.xlane.xlu1 %1143 }
 0x8c9   :  { %5246 = vrcp.f32 %v1144_v10 }
 0x8d3   :  { %v5247_v17 = vpop.eup %5246 }
 0x8d4   :  { %v1174_v28 = vrot.slane %v5247_v17, %v5769_v42  ;;  %v1150_v54 = vrot.slane %v5247_v17, %v5746_v21  ;;  %v1154_v1 = vrot.slane %v5247_v17, %v5749_v22  ;;  %v1158_v33 = vrot.slane %v5247_v17, %v5752_v23 }
 0x8d5   :  { %v1162_v27 = vrot.slane %v5247_v17, %v5755_v24  ;;  %v1166_v32 = vrot.slane %v5247_v17, %v5761_v30  ;;  %v1178_v56 = vrot.slane %v5247_v17, %v5773_v55 }
 0x8d6   :  { %v1193_v12 = vmul.f32 %v5243_v7, %v1174_v28  ;;  %v1187_v25 = vmul.f32 %v6018_v61, %v1150_v54  ;;  %v1188_v9 = vmul.f32 %v5235_v2, %v1154_v1  ;;  %v1189_v26 = vmul.f32 %v5237_v62, %v1158_v33  ;;  %v6097_v54 = vld [vmem:[%s6968_s0 + $0x18] sm:$0xff] }
 0x8d7   :  { %v1190_v29 = vmul.f32 %v5239_v53, %v1162_v27  ;;  %v1191_v7 = vmul.f32 %v6020_v11, %v1166_v32  ;;  %v1170_v61 = vrot.slane %v5247_v17, %v5765_v37  ;;  %v1194_v2 = vmul.f32 %v5245_v31, %v1178_v56  ;;  %v6070_v11 = vld [vmem:[%s6968_s0] sm:$0xff]  ;;  %v6076_v31 = vld [vmem:[%s6968_s0 + $0x8] sm:$0xff] }
 0x8d8   :  { %1227 = vperm.xlu1 %5204, %v1193_v12   ;;  %1197 = vperm.xlu0 %5205, %v1187_v25  }
 0x8d9   :  { %v1192_v20 = vmul.f32 %v5241_v63, %v1170_v61  ;;  %v6105_v61 = vld [vmem:[%s6968_s0 + $0x20] sm:$0xff] }
 0x8dc   :  { %1202 = vperm.xlu0 %5205, %v1188_v9  }
 0x8e0   :  { %1207 = vperm.xlu0 %5205, %v1189_v26  }
 0x8e4   :  { %1212 = vperm.xlu0 %5205, %v1190_v29  }
 0x8e8   :  { %1217 = vperm.xlu0 %5205, %v1191_v7  }
 0x8ec   :  { %1222 = vperm.xlu0 %5205, %v1192_v20  }
 0x8f0   :  { %1232 = vperm.xlu0 %5205, %v1194_v2  }
 0x8f7   :  { %v1455_v35 = vpop.f32.mrb[2].mxu1 }
 0x8f8   :  { %v6063_v62 = vadd.f32 %v5921_v16, %v1455_v35  ;;  %v4937_v36 = vpop.f32.mrb[3].mxu1 }
 0x8fa   :  { %1467 = vrot.lane.b32.xlu0 %v6063_v62, %s5507_s26 }
 0x957   :  { %v1198_v53 = vpop.permute.xlu0 %1197  ;;  %v1228_v38 = vpop.permute.xlu1 %1227 }
 0x958   :  { %v1235_v63 = vmul.f32 %v6070_v11, %v1198_v53  ;;  %v1241_v60 = vmul.f32 %v6090_v4, %v1228_v38 }
 0x95a   :  { %v1243_v39 = vsel %vm108_vm0, %v1235_v63, 0.0  ;;  %v1285_v25 = vsel %vm108_vm0, %v1241_v60, 0.0 }
 0x95b   :  { %v1203_v0 = vpop.permute.xlu0 %1202  ;;  %v1244_v18 = vrot.slane %v1243_v39, 4  ;;  %v1286_v32 = vrot.slane %v1285_v25, 4 }
 0x95c   :  { %v1236_v16 = vmul.f32 %v6076_v31, %v1203_v0 }
 0x95d   :  { %v1245_v1 = vadd.f32 %v1244_v18, %v1243_v39  ;;  %v6112_v39 = vld [vmem:[%s6968_s0 + $0x28] sm:$0xff] }
 0x95e   :  { %v1250_v41 = vsel %vm108_vm0, %v1236_v16, 0.0  ;;  %v1287_v16 = vadd.f32 %v1286_v32, %v1285_v25  ;;  %6993 = vst [vmem:[#allocation14_spill] sm:$0xff] %v6112_v39  ;;  %v6119_v25 = vld [vmem:[%s6968_s0 + $0x38] sm:$0xff] }
 0x95f   :  { %v1251_v6 = vrot.slane %v1250_v41, 4  ;;  %v1208_v8 = vpop.permute.xlu0 %1207  ;;  %v1246_v56 = vrot.slane %v1245_v1, 2  ;;  %6994 = vst [vmem:[#allocation15_spill] sm:$0xff] %v6119_v25 }
 0x960   :  { %v1237_v40 = vmul.f32 %v6084_v19, %v1208_v8 }
 0x961   :  { %v1252_v10 = vadd.f32 %v1251_v6, %v1250_v41  ;;  %v1247_v6 = vadd.f32 %v1246_v56, %v1245_v1 }
 0x962   :  { %v1257_v57 = vsel %vm108_vm0, %v1237_v40, 0.0 }
 0x963   :  { %v1258_v17 = vrot.slane %v1257_v57, 4  ;;  %v1213_v28 = vpop.permute.xlu0 %1212  ;;  %v1253_v26 = vrot.slane %v1252_v10, 2 }
 0x964   :  { %v1238_v12 = vmul.f32 %v6097_v54, %v1213_v28  ;;  %v1288_v28 = vrot.slane %v1287_v16, 2 }
 0x965   :  { %v1259_v9 = vadd.f32 %v1258_v17, %v1257_v57  ;;  %v1254_v36 = vadd.f32 %v1253_v26, %v1252_v10 }
 0x966   :  { %v1264_v33 = vsel %vm108_vm0, %v1238_v12, 0.0 }
 0x967   :  { %v1265_v27 = vrot.slane %v1264_v33, 4  ;;  %v1218_v29 = vpop.permute.xlu0 %1217  ;;  %v1260_v7 = vrot.slane %v1259_v9, 2  ;;  %v1255_v18 = vrot.slane %v1254_v36, 1 }
 0x968   :  { %v1239_v20 = vmul.f32 %v6105_v61, %v1218_v29 }
 0x969   :  { %v1266_v2 = vadd.f32 %v1265_v27, %v1264_v33  ;;  %v1261_v38 = vadd.f32 %v1260_v7, %v1259_v9  ;;  %v1248_v33 = vrot.slane %v1247_v6, 1  ;;  %v1256_v32 = vadd.f32 %v1255_v18, %v1254_v36 }
 0x96a   :  { %v1271_v35 = vsel %vm108_vm0, %v1239_v20, 0.0 }
 0x96b   :  { %v1267_v53 = vrot.slane %v1266_v2, 2  ;;  %v1272_v63 = vrot.slane %v1271_v35, 4  ;;  %v1223_v0 = vpop.permute.xlu0 %1222  ;;  %v1262_v12 = vrot.slane %v1261_v38, 1 }
 0x96c   :  { %v1240_v41 = vmul.f32 %v6112_v39, %v1223_v0 }
 0x96d   :  { %v1268_v8 = vadd.f32 %v1267_v53, %v1266_v2  ;;  %v1273_v40 = vadd.f32 %v1272_v63, %v1271_v35  ;;  %v1289_v2 = vadd.f32 %v1288_v28, %v1287_v16  ;;  %v1263_v35 = vadd.f32 %v1262_v12, %v1261_v38 }
 0x96e   :  { %v1278_v60 = vsel %vm108_vm0, %v1240_v41, 0.0  ;;  %v1249_v53 = vadd.f32 %v1248_v33, %v1247_v6  ;;  %v6996_v12 = vmov 0.0|0.0  }
 0x96f   :  { %v1274_v57 = vrot.slane %v1273_v40, 2  ;;  %v1279_v10 = vrot.slane %v1278_v60, 4  ;;  %v1233_v17 = vpop.permute.xlu0 %1232  ;;  %v1269_v26 = vrot.slane %v1268_v8, 1  ;;  %v1290_v39 = vrot.slane %v1289_v2, 1 }
 0x970   :  { %v1242_v9 = vmul.f32 %v6119_v25, %v1233_v17  ;;  %v1307_v14 = vsel %vm365_vm1, %v1256_v32, %v1249_v53 }
 0x971   :  { %v1275_v1 = vadd.f32 %v1274_v57, %v1273_v40  ;;  %v1280_v27 = vadd.f32 %v1279_v10, %v1278_v60  ;;  %v1270_v63 = vadd.f32 %v1269_v26, %v1268_v8  ;;  %v1308_v40 = vsel %vm367_vm2, %v1263_v35, %v1307_v14 }
 0x972   :  { %v1292_v29 = vsel %vm108_vm0, %v1242_v9, 0.0  ;;  %v1291_v6 = vadd.f32 %v1290_v39, %v1289_v2  ;;  %v6995_v14 = vmov 0.0  }
 0x973   :  { %v1276_v7 = vrot.slane %v1275_v1, 1  ;;  %v1281_v20 = vrot.slane %v1280_v27, 2  ;;  %v1293_v56 = vrot.slane %v1292_v29, 4  ;;  %v1309_v60 = vsel %vm369_vm3, %v1270_v63, %v1308_v40 }
 0x975   :  { %v1282_v0 = vadd.f32 %v1281_v20, %v1280_v27  ;;  %v1294_v41 = vadd.f32 %v1293_v56, %v1292_v29  ;;  %v1277_v5 = vadd.f32 %v1276_v7, %v1275_v1  ;;  %v1468_v29 = vpop.permute.xlu0 %1467 }
 0x977   :  { %v1283_v17 = vrot.slane %v1282_v0, 1  ;;  %v1295_v25 = vrot.slane %v1294_v41, 2  ;;  %v1310_v57 = vsel %vm371_vm4, %v1277_v5, %v1309_v60 }
 0x979   :  { %v1284_v36 = vadd.f32 %v1283_v17, %v1282_v0  ;;  %v1296_v18 = vadd.f32 %v1295_v25, %v1294_v41 }
 0x97b   :  { %v1297_v16 = vrot.slane %v1296_v18, 1  ;;  %v1311_v38 = vsel %vm373_vm5, %v1284_v36, %v1310_v57 }
 0x97c   :  { %v1312_v10 = vsel %vm375_vm6, %v1291_v6, %v1311_v38 }
 0x97d   :  { %v1298_v8 = vadd.f32 %v1297_v16, %v1296_v18 }
 0x97f   :  { %v1313_v28 = vsel %vm377_vm7, %v1298_v8, %v1312_v10 }
 0x980   :  { %4925 = vmatmul.mubr.msk.f32.vlgmr.msra.gmra.mrb[2].mxu0 %vm108_vm0, %v1313_v28 }
 0x981   :  { %5106 = vmatpush3.bf16.msra.mxu0 %v5884_v59  ;;  %4946 = vmatprep.mubr.msk.f32.mxu0 %vm5505_vm9, %v6995_v14 }
 0x982   :  { %5107 = vmatprep.subr.bf16.mxu0 %v6996_v12 }
 0x985   :  { %5109 = vmatpush3.bf16.msra.mxu0 %v5905_v3 }
 0x986   :  { %5116 = vmatprep.subr.bf16.mxu0 %v6996_v12 }
 0xa53   :  { %v1382_v5 = vpop.f32.mrb[2].mxu0 }
 0xa54   :  { %v5171_v39 = vadd.f32 %v5961_v34, %v1382_v5  ;;  %v4926_v25 = vpop.f32.mrb[3].mxu0 }
 0xa56   :  { %v1459_v9 = vadd.f32 %v5171_v39, %v6063_v62 }
 0xa58   :  { %v4755_v33 = vmul.f32 -1.442695, %v1459_v9 }
 0xa5a   :  { %5248 = vpow2.f32 %v4755_v33 }
 0xa64   :  { %v5249_v26 = vpop.eup %5248 }
 0xa65   :  { %v1463_v1 = vadd.f32 1.0, %v5249_v26 }
 0xa67   :  { %5250 = vrcp.f32 %v1463_v1 }
 0xa71   :  { %v5251_v27 = vpop.eup %5250 }
 0xa72   :  { %v1470_v32 = vmul.f32 %v5251_v27, %v1468_v29  ;;  %v1477_v34 = vsub.f32 1.0, %v5251_v27  ;;  %v1483_v62 = vmul.f32 %v5251_v27, %v5968_v43 }
 0xa74   :  { %1472 = vrot.lane.b32.xlu0 %v1470_v32, %s5507_s26 }
 0xae6   :  { %v1473_v7 = vpop.permute.xlu0 %1472 }
 0xae7   :  { %v1475_v20 = vadd.f32 %v5171_v39, %v1473_v7 }
 0xae9   :  { %5252 = vtanh.f32 %v1475_v20 }
 0xaf3   :  { %v5253_v56 = vpop.eup %5252 }
 0xaf4   :  { %1479 = vrot.lane.b32.xlu0 %v5253_v56, %s5508_s25 }
 0xb66   :  { %v1480_v2 = vpop.permute.xlu0 %1479 }
 0xb67   :  { %v1482_v35 = vmul.f32 %v1480_v2, %v1477_v34 }
 0xb69   :  { %v6142_v53 = vadd.f32 %v1483_v62, %v1482_v35 }
 0xb6b   :  { %v1490_v63 = vmul.f32 %v6142_v53, %v5970_v13 }
 0xb6d   :  { %1492 = vrot.lane.b32.xlu1 %v1490_v63, %s5508_s25 }
 0xbdf   :  { %v1493_v0 = vpop.permute.xlu1 %1492 }
 0xbe0   :  { %v1495_v41 = vsel %vm108_vm0, %v1493_v0, 0.0 }
 0xbe1   :  { %1496 = vadd.xlane.f32.xlu0 %v1495_v41 }
 0xc6e   :  { %v1497_v17 = vpop.xlane.xlu0 %1496 }
 0xc6f   :  { %v1530_v40 = vrot.slane %v1497_v17, %v5773_v55  ;;  %v1502_v60 = vrot.slane %v1497_v17, %v5746_v21  ;;  %v1506_v18 = vrot.slane %v1497_v17, %v5749_v22  ;;  %v1510_v16 = vrot.slane %v1497_v17, %v5752_v23 }
 0xc70   :  { %v1514_v6 = vrot.slane %v1497_v17, %v5755_v24  ;;  %v1518_v10 = vrot.slane %v1497_v17, %v5761_v30  ;;  %v1522_v5 = vrot.slane %v1497_v17, %v5765_v37  ;;  %v1526_v25 = vrot.slane %v1497_v17, %v5769_v42 }
 0xc71   :  { %v6151_v36 = vadd.f32 %v1530_v40, %v5716_v52  ;;  %v1539_v43 = vadd.f32 %v1502_v60, %v5702_v45  ;;  %v1540_v57 = vadd.f32 %v1506_v18, %v5704_v46  ;;  %v1541_v38 = vadd.f32 %v1510_v16, %v5706_v47 }
 0xc72   :  { %v1542_v8 = vadd.f32 %v1514_v6, %v5708_v48  ;;  %v1543_v28 = vadd.f32 %v1518_v10, %v5710_v49  ;;  %v1544_v39 = vadd.f32 %v1522_v5, %v5712_v50  ;;  %v1545_v9 = vadd.f32 %v1526_v25, %v5714_v51 }
 0xc73   :  { %1577 = vperm.xlu0 %5205, %v6151_v36   ;;  %1556 = vperm.xlu1 %5204, %v1539_v43  }
 0xc77   :  { %1559 = vperm.xlu1 %5204, %v1540_v57  }
 0xc7b   :  { %1562 = vperm.xlu1 %5204, %v1541_v38  }
 0xc7f   :  { %1565 = vperm.xlu1 %5204, %v1542_v8  }
 0xc83   :  { %1568 = vperm.xlu1 %5204, %v1543_v28  }
 0xc87   :  { %1571 = vperm.xlu1 %5204, %v1544_v39  }
 0xc8b   :  { %1574 = vperm.xlu1 %5204, %v1545_v9  }
 0xcf2   :  { %v1557_v33 = vpop.permute.xlu1 %1556  ;;  %v1578_v63 = vpop.permute.xlu0 %1577 }
 0xcf3   :  { %v1582_v20 = vrot.slane %v1557_v33, %v5700_v44  ;;  %v1610_v18 = vrot.slane %v1578_v63, %v5700_v44 }
 0xcf6   :  { %v1560_v26 = vpop.permute.xlu1 %1559 }
 0xcf7   :  { %v1586_v32 = vrot.slane %v1560_v26, %v5700_v44 }
 0xcf9   :  { %v1611_v62 = vsel %vm365_vm1, %v1586_v32, %v1582_v20 }
 0xcfa   :  { %v1563_v1 = vpop.permute.xlu1 %1562 }
 0xcfb   :  { %v1590_v7 = vrot.slane %v1563_v1, %v5700_v44 }
 0xcfd   :  { %v1612_v0 = vsel %vm367_vm2, %v1590_v7, %v1611_v62 }
 0xcfe   :  { %v1566_v27 = vpop.permute.xlu1 %1565 }
 0xcff   :  { %v1594_v56 = vrot.slane %v1566_v27, %v5700_v44 }
 0xd01   :  { %v1613_v41 = vsel %vm369_vm3, %v1594_v56, %v1612_v0 }
 0xd02   :  { %v1569_v29 = vpop.permute.xlu1 %1568 }
 0xd03   :  { %v1598_v2 = vrot.slane %v1569_v29, %v5700_v44 }
 0xd05   :  { %v1614_v40 = vsel %vm371_vm4, %v1598_v2, %v1613_v41 }
 0xd06   :  { %v1572_v34 = vpop.permute.xlu1 %1571 }
 0xd07   :  { %v1602_v35 = vrot.slane %v1572_v34, %v5700_v44 }
 0xd09   :  { %v1615_v16 = vsel %vm373_vm5, %v1602_v35, %v1614_v40 }
 0xd0a   :  { %v1575_v17 = vpop.permute.xlu1 %1574 }
 0xd0b   :  { %v1606_v60 = vrot.slane %v1575_v17, %v5700_v44 }
 0xd0d   :  { %v1616_v6 = vsel %vm375_vm6, %v1606_v60, %v1615_v16 }
 0xd0e   :  { %v1617_v10 = vsel %vm377_vm7, %v1610_v18, %v1616_v6 }
 0xd0f   :  { %v1619_v5 = vsel %vm380_vm8, %v1617_v10, -inf }
 0xd10   :  { %1620 = vmax.xlane.f32.xlu1 %v1619_v5 }
 0xd9d   :  { %v1621_v25 = vpop.xlane.xlu1 %1620 }
 0xd9e   :  { %v1626_v33 = vrot.slane %v1621_v25, %v5746_v21  ;;  %v1630_v26 = vrot.slane %v1621_v25, %v5749_v22  ;;  %v1642_v1 = vrot.slane %v1621_v25, %v5761_v30  ;;  %v1634_v27 = vrot.slane %v1621_v25, %v5752_v23 }
 0xd9f   :  { %v1638_v34 = vrot.slane %v1621_v25, %v5755_v24  ;;  %v1646_v35 = vrot.slane %v1621_v25, %v5765_v37  ;;  %v1650_v41 = vrot.slane %v1621_v25, %v5769_v42  ;;  %v1654_v40 = vrot.slane %v1621_v25, %v5773_v55 }
 0xda0   :  { %v1663_v29 = vsub.f32 %v1539_v43, %v1626_v33  ;;  %v1664_v32 = vsub.f32 %v1540_v57, %v1630_v26  ;;  %v1667_v7 = vsub.f32 %v1543_v28, %v1642_v1  ;;  %v1665_v62 = vsub.f32 %v1541_v38, %v1634_v27 }
 0xda1   :  { %v1666_v0 = vsub.f32 %v1542_v8, %v1638_v34  ;;  %v1668_v43 = vsub.f32 %v1544_v39, %v1646_v35  ;;  %v1669_v60 = vsub.f32 %v1545_v9, %v1650_v41  ;;  %v1670_v39 = vsub.f32 %v6151_v36, %v1654_v40 }
 0xda2   :  { %v1671_v20 = vmul.f32 1.442695, %v1663_v29  ;;  %v1679_v56 = vmul.f32 1.442695, %v1667_v7  ;;  %v1673_v2 = vmul.f32 1.442695, %v1664_v32 }
 0xda3   :  { %v1675_v63 = vmul.f32 1.442695, %v1665_v62  ;;  %v1677_v17 = vmul.f32 1.442695, %v1666_v0  ;;  %v1681_v38 = vmul.f32 1.442695, %v1668_v43 }
 0xda4   :  { %5254 = vpow2.f32 %v1671_v20  ;;  %v1683_v8 = vmul.f32 1.442695, %v1669_v60  ;;  %v1685_v6 = vmul.f32 1.442695, %v1670_v39 }
 0xda5   :  { %5256 = vpow2.f32 %v1679_v56 }
 0xda6   :  { %5258 = vpow2.f32 %v1673_v2 }
 0xda7   :  { %5260 = vpow2.f32 %v1675_v63 }
 0xda8   :  { %5262 = vpow2.f32 %v1677_v17 }
 0xda9   :  { %5264 = vpow2.f32 %v1681_v38 }
 0xdaa   :  { %5266 = vpow2.f32 %v1683_v8 }
 0xdab   :  { %5268 = vpow2.f32 %v1685_v6 }
 0xdae   :  { %v6190_v57 = vpop.eup %5254 }
 0xdaf   :  { %v6192_v28 = vpop.eup %5256  ;;  %1696 = vperm.xlu0 %5205, %v6190_v57  }
 0xdb0   :  { %1708 = vperm.xlu1 %5204, %v6192_v28   ;;  %v5259_v18 = vpop.eup %5258 }
 0xdb1   :  { %v5261_v16 = vpop.eup %5260 }
 0xdb2   :  { %v5263_v10 = vpop.eup %5262 }
 0xdb3   :  { %1699 = vperm.xlu0 %5205, %v5259_v18   ;;  %v5265_v5 = vpop.eup %5264 }
 0xdb4   :  { %1486 = vrot.lane.b32.xlu1 %v6142_v53, %s5508_s25  ;;  %v5267_v25 = vpop.eup %5266 }
 0xdb5   :  { %v5269_v9 = vpop.eup %5268 }
 0xdb7   :  { %1702 = vperm.xlu0 %5205, %v5261_v16  }
 0xdbb   :  { %1705 = vperm.xlu0 %5205, %v5263_v10  }
 0xdbf   :  { %1711 = vperm.xlu0 %5205, %v5265_v5  }
 0xdc3   :  { %1714 = vperm.xlu0 %5205, %v5267_v25  }
 0xdc7   :  { %1717 = vperm.xlu0 %5205, %v5269_v9  }
 0xe2e   :  { %v1697_v33 = vpop.permute.xlu0 %1696 }
 0xe2f   :  { %v1709_v26 = vpop.permute.xlu1 %1708  ;;  %v1722_v56 = vrot.slane %v1697_v33, %v5700_v44 }
 0xe30   :  { %v1738_v41 = vrot.slane %v1709_v26, %v5700_v44 }
 0xe32   :  { %v1700_v1 = vpop.permute.xlu0 %1699 }
 0xe33   :  { %v1487_v27 = vpop.permute.xlu1 %1486  ;;  %v1726_v32 = vrot.slane %v1700_v1, %v5700_v44 }
 0xe34   :  { %1489 = vst.msk [vmem:[#allocation2 + $0x8] sm:$0xff] %vm108_vm0, %v1487_v27  ;;  %4958 = vmatmul.mubr.msk.f32.vlgmr.msra.gmra.mrb[4].mxu1 %vm108_vm0, %v1487_v27 }
 0xe35   :  { %5124 = vmatpush3.bf16.msra.mxu1 %v5828_v58  ;;  %4979 = vmatprep.mubr.msk.f32.mxu1 %vm5505_vm9, %v6995_v14  ;;  %v1751_v2 = vsel %vm365_vm1, %v1726_v32, %v1722_v56 }
 0xe36   :  { %v1703_v36 = vpop.permute.xlu0 %1702  ;;  %5125 = vmatprep.subr.bf16.mxu1 %v6996_v12 }
 0xe37   :  { %v1730_v7 = vrot.slane %v1703_v36, %v5700_v44 }
 0xe39   :  { %5127 = vmatpush3.bf16.msra.mxu1 %v5839_v15  ;;  %v1752_v62 = vsel %vm367_vm2, %v1730_v7, %v1751_v2 }
 0xe3a   :  { %v1706_v29 = vpop.permute.xlu0 %1705  ;;  %5134 = vmatprep.subr.bf16.mxu1 %v6996_v12 }
 0xe3b   :  { %v1734_v34 = vrot.slane %v1706_v29, %v5700_v44 }
 0xe3d   :  { %v1753_v63 = vsel %vm369_vm3, %v1734_v34, %v1752_v62 }
 0xe3e   :  { %v1712_v20 = vpop.permute.xlu0 %1711  ;;  %v1754_v43 = vsel %vm371_vm4, %v1738_v41, %v1753_v63 }
 0xe3f   :  { %v1742_v0 = vrot.slane %v1712_v20, %v5700_v44 }
 0xe41   :  { %v1755_v38 = vsel %vm373_vm5, %v1742_v0, %v1754_v43 }
 0xe42   :  { %v1715_v35 = vpop.permute.xlu0 %1714 }
 0xe43   :  { %v1746_v17 = vrot.slane %v1715_v35, %v5700_v44 }
 0xe45   :  { %v1756_v8 = vsel %vm375_vm6, %v1746_v17, %v1755_v38 }
 0xe46   :  { %v1718_v40 = vpop.permute.xlu0 %1717 }
 0xe47   :  { %v1750_v60 = vrot.slane %v1718_v40, %v5700_v44 }
 0xe49   :  { %v1757_v39 = vsel %vm377_vm7, %v1750_v60, %v1756_v8 }
 0xe4a   :  { %v1759_v6 = vsel %vm380_vm8, %v1757_v39, 0.0 }
 0xe4b   :  { %1760 = vadd.xlane.f32.xlu0 %v1759_v6 }
 0xed8   :  { %v1761_v33 = vpop.xlane.xlu0 %1760 }
 0xed9   :  { %5270 = vrcp.f32 %v1761_v33 }
 0xee3   :  { %v5271_v1 = vpop.eup %5270 }
 0xee4   :  { %v1791_v26 = vrot.slane %v5271_v1, %v5769_v42  ;;  %v1767_v27 = vrot.slane %v5271_v1, %v5746_v21  ;;  %v1771_v32 = vrot.slane %v5271_v1, %v5749_v22  ;;  %v1775_v20 = vrot.slane %v5271_v1, %v5752_v23 }
 0xee5   :  { %v1779_v34 = vrot.slane %v5271_v1, %v5755_v24  ;;  %v1783_v62 = vrot.slane %v5271_v1, %v5761_v30  ;;  %v1795_v63 = vrot.slane %v5271_v1, %v5773_v55 }
 0xee6   :  { %v1810_v36 = vmul.f32 %v5267_v25, %v1791_v26  ;;  %v1804_v29 = vmul.f32 %v6190_v57, %v1767_v27  ;;  %v1805_v7 = vmul.f32 %v5259_v18, %v1771_v32  ;;  %v1806_v56 = vmul.f32 %v5261_v16, %v1775_v20  ;;  %v6237_v16 = vld [vmem:[%s6977_s9] ss:$0 sm:$0xff] }
 0xee7   :  { %v1807_v2 = vmul.f32 %v5263_v10, %v1779_v34  ;;  %v1808_v25 = vmul.f32 %v6192_v28, %v1783_v62  ;;  %v1787_v57 = vrot.slane %v5271_v1, %v5765_v37  ;;  %v1811_v18 = vmul.f32 %v5269_v9, %v1795_v63 }
 0xee8   :  { %1844 = vperm.xlu0 %5205, %v1810_v36   ;;  %1814 = vperm.xlu1 %5204, %v1804_v29  }
 0xee9   :  { %v1809_v35 = vmul.f32 %v5265_v5, %v1787_v57 }
 0xeec   :  { %1819 = vperm.xlu1 %5204, %v1805_v7  }
 0xef0   :  { %1824 = vperm.xlu1 %5204, %v1806_v56  }
 0xef4   :  { %1829 = vperm.xlu1 %5204, %v1807_v2  }
 0xef8   :  { %1834 = vperm.xlu1 %5204, %v1808_v25  }
 0xefc   :  { %1839 = vperm.xlu1 %5204, %v1809_v35  }
 0xf00   :  { %1849 = vperm.xlu1 %5204, %v1811_v18  }
 0xf07   :  { %v2072_v0 = vpop.f32.mrb[4].mxu1 }
 0xf08   :  { %v6240_v10 = vadd.f32 %v6237_v16, %v2072_v0  ;;  %v4959_v41 = vpop.f32.mrb[5].mxu1 }
 0xf0a   :  { %2084 = vrot.lane.b32.xlu1 %v6240_v10, %s5507_s26 }
 0xf67   :  { %v1815_v28 = vpop.permute.xlu1 %1814  ;;  %v1845_v43 = vpop.permute.xlu0 %1844 }
 0xf68   :  { %v1852_v5 = vmul.f32 %v6070_v11, %v1815_v28  ;;  %v1858_v6 = vmul.f32 %v6090_v4, %v1845_v43  ;;  %v6997_v28 = vld [vmem:[#allocation14_spill] sm:$0xff] }
 0xf6a   :  { %v1860_v40 = vsel %vm108_vm0, %v1852_v5, 0.0 }
 0xf6b   :  { %v1820_v17 = vpop.permute.xlu1 %1819  ;;  %v1861_v33 = vrot.slane %v1860_v40, 4 }
 0xf6c   :  { %v1853_v9 = vmul.f32 %v6076_v31, %v1820_v17  ;;  %v1902_v31 = vsel %vm108_vm0, %v1858_v6, 0.0 }
 0xf6d   :  { %v1862_v29 = vadd.f32 %v1861_v33, %v1860_v40  ;;  %v6998_v33 = vld [vmem:[#allocation15_spill] sm:$0xff] }
 0xf6e   :  { %v1867_v38 = vsel %vm108_vm0, %v1853_v9, 0.0 }
 0xf6f   :  { %v1868_v60 = vrot.slane %v1867_v38, 4  ;;  %v1825_v8 = vpop.permute.xlu1 %1824  ;;  %v1863_v62 = vrot.slane %v1862_v29, 2 }
 0xf70   :  { %v1854_v39 = vmul.f32 %v6084_v19, %v1825_v8  ;;  %v1903_v19 = vrot.slane %v1902_v31, 4 }
 0xf71   :  { %v1869_v26 = vadd.f32 %v1868_v60, %v1867_v38  ;;  %v1864_v17 = vadd.f32 %v1863_v62, %v1862_v29 }
 0xf72   :  { %v1874_v1 = vsel %vm108_vm0, %v1854_v39, 0.0  ;;  %v1904_v0 = vadd.f32 %v1903_v19, %v1902_v31 }
 0xf73   :  { %v1875_v27 = vrot.slane %v1874_v1, 4  ;;  %v1830_v11 = vpop.permute.xlu1 %1829  ;;  %v1870_v20 = vrot.slane %v1869_v26, 2 }
 0xf74   :  { %v1855_v36 = vmul.f32 %v6097_v54, %v1830_v11  ;;  %v1905_v39 = vrot.slane %v1904_v0, 2 }
 0xf75   :  { %v1876_v32 = vadd.f32 %v1875_v27, %v1874_v1  ;;  %v1871_v35 = vadd.f32 %v1870_v20, %v1869_v26  ;;  %v1865_v26 = vrot.slane %v1864_v17, 1 }
 0xf76   :  { %v1881_v7 = vsel %vm108_vm0, %v1855_v36, 0.0 }
 0xf77   :  { %v1882_v56 = vrot.slane %v1881_v7, 4  ;;  %v1835_v34 = vpop.permute.xlu1 %1834  ;;  %v1877_v2 = vrot.slane %v1876_v32, 2  ;;  %v1872_v38 = vrot.slane %v1871_v35, 1  ;;  %v1866_v19 = vadd.f32 %v1865_v26, %v1864_v17 }
 0xf78   :  { %v1856_v4 = vmul.f32 %v6105_v61, %v1835_v34 }
 0xf79   :  { %v1883_v25 = vadd.f32 %v1882_v56, %v1881_v7  ;;  %v1878_v41 = vadd.f32 %v1877_v2, %v1876_v32  ;;  %v1873_v32 = vadd.f32 %v1872_v38, %v1871_v35  ;;  %v1906_v56 = vadd.f32 %v1905_v39, %v1904_v0 }
 0xf7a   :  { %v1888_v57 = vsel %vm108_vm0, %v1856_v4, 0.0 }
 0xf7b   :  { %v1884_v63 = vrot.slane %v1883_v25, 2  ;;  %v1889_v54 = vrot.slane %v1888_v57, 4  ;;  %v1840_v18 = vpop.permute.xlu1 %1839  ;;  %v1879_v6 = vrot.slane %v1878_v41, 1 }
 0xf7c   :  { %v1857_v5 = vmul.f32 %v6997_v28, %v1840_v18  ;;  %v1907_v18 = vrot.slane %v1906_v56, 1 }
 0xf7d   :  { %v1885_v9 = vadd.f32 %v1884_v63, %v1883_v25  ;;  %v1890_v43 = vadd.f32 %v1889_v54, %v1888_v57  ;;  %v1880_v34 = vadd.f32 %v1879_v6, %v1878_v41  ;;  %v1924_v57 = vsel %vm365_vm1, %v1873_v32, %v1866_v19 }
 0xf7e   :  { %v1895_v40 = vsel %vm108_vm0, %v1857_v5, 0.0  ;;  %v1908_v17 = vadd.f32 %v1907_v18, %v1906_v56 }
 0xf7f   :  { %v1891_v60 = vrot.slane %v1890_v43, 2  ;;  %v1896_v61 = vrot.slane %v1895_v40, 4  ;;  %v1850_v8 = vpop.permute.xlu1 %1849  ;;  %v1886_v27 = vrot.slane %v1885_v9, 1  ;;  %v1925_v28 = vsel %vm367_vm2, %v1880_v34, %v1924_v57 }
 0xf80   :  { %v1859_v1 = vmul.f32 %v6998_v33, %v1850_v8  ;;  %v6277_v8 = vld [vmem:[%s6976_s8] ss:$0 sm:$0xff] }
 0xf81   :  { %v1892_v11 = vadd.f32 %v1891_v60, %v1890_v43  ;;  %v1897_v36 = vadd.f32 %v1896_v61, %v1895_v40  ;;  %v1887_v2 = vadd.f32 %v1886_v27, %v1885_v9 }
 0xf82   :  { %v1909_v31 = vsel %vm108_vm0, %v1859_v1, 0.0 }
 0xf83   :  { %v1893_v29 = vrot.slane %v1892_v11, 1  ;;  %v1898_v7 = vrot.slane %v1897_v36, 2  ;;  %v1910_v20 = vrot.slane %v1909_v31, 4  ;;  %v1926_v5 = vsel %vm369_vm3, %v1887_v2, %v1925_v28 }
 0xf85   :  { %v1899_v4 = vadd.f32 %v1898_v7, %v1897_v36  ;;  %v1911_v62 = vadd.f32 %v1910_v20, %v1909_v31  ;;  %v1894_v25 = vadd.f32 %v1893_v29, %v1892_v11  ;;  %v2085_v36 = vpop.permute.xlu1 %2084 }
 0xf87   :  { %v1900_v63 = vrot.slane %v1899_v4, 1  ;;  %v1912_v54 = vrot.slane %v1911_v62, 2  ;;  %v1927_v40 = vsel %vm371_vm4, %v1894_v25, %v1926_v5 }
 0xf89   :  { %v1901_v35 = vadd.f32 %v1900_v63, %v1899_v4  ;;  %v1913_v43 = vadd.f32 %v1912_v54, %v1911_v62 }
 0xf8b   :  { %v1914_v0 = vrot.slane %v1913_v43, 1  ;;  %v1928_v41 = vsel %vm373_vm5, %v1901_v35, %v1927_v40 }
 0xf8c   :  { %v1929_v38 = vsel %vm375_vm6, %v1908_v17, %v1928_v41 }
 0xf8d   :  { %v1915_v9 = vadd.f32 %v1914_v0, %v1913_v43 }
 0xf8f   :  { %v1930_v60 = vsel %vm377_vm7, %v1915_v9, %v1929_v38 }
 0xf90   :  { %4947 = vmatmul.mubr.msk.f32.vlgmr.msra.gmra.mrb[4].mxu0 %vm108_vm0, %v1930_v60 }
 0xf91   :  { %5118 = vmatpush3.bf16.msra.mxu0 %v5884_v59  ;;  %4968 = vmatprep.mubr.msk.f32.mxu0 %vm5505_vm9, %v6995_v14 }
 0xf92   :  { %5119 = vmatprep.subr.bf16.mxu0 %v6996_v12 }
 0xf95   :  { %5121 = vmatpush3.bf16.msra.mxu0 %v5905_v3 }
 0xf96   :  { %5128 = vmatprep.subr.bf16.mxu0 %v6996_v12 }
0x1063   :  { %v1999_v61 = vpop.f32.mrb[4].mxu0 }
0x1064   :  { %v5172_v39 = vadd.f32 %v6277_v8, %v1999_v61  ;;  %v4948_v6 = vpop.f32.mrb[5].mxu0 }
0x1066   :  { %v2076_v33 = vadd.f32 %v5172_v39, %v6240_v10 }
0x1068   :  { %v4758_v1 = vmul.f32 -1.442695, %v2076_v33 }
0x106a   :  { %5272 = vpow2.f32 %v4758_v1 }
0x1074   :  { %v5273_v26 = vpop.eup %5272 }
0x1075   :  { %v2080_v27 = vadd.f32 1.0, %v5273_v26 }
0x1077   :  { %5274 = vrcp.f32 %v2080_v27 }
0x1081   :  { %v5275_v11 = vpop.eup %5274 }
0x1082   :  { %v2087_v31 = vmul.f32 %v5275_v11, %v2085_v36  ;;  %v2094_v20 = vsub.f32 1.0, %v5275_v11  ;;  %v2100_v10 = vmul.f32 %v5275_v11, %v6142_v53 }
0x1084   :  { %2089 = vrot.lane.b32.xlu1 %v2087_v31, %s5507_s26 }
0x10f6   :  { %v2090_v32 = vpop.permute.xlu1 %2089 }
0x10f7   :  { %v2092_v29 = vadd.f32 %v5172_v39, %v2090_v32 }
0x10f9   :  { %5276 = vtanh.f32 %v2092_v29 }
0x1103   :  { %v5277_v7 = vpop.eup %5276 }
0x1104   :  { %2096 = vrot.lane.b32.xlu1 %v5277_v7, %s5508_s25 }
0x1176   :  { %v2097_v56 = vpop.permute.xlu1 %2096 }
0x1177   :  { %v2099_v34 = vmul.f32 %v2097_v56, %v2094_v20 }
0x1179   :  { %v6284_v19 = vadd.f32 %v2100_v10, %v2099_v34 }
0x117b   :  { %v2107_v2 = vmul.f32 %v6284_v19, %v5970_v13 }
0x117d   :  { %2109 = vrot.lane.b32.xlu1 %v2107_v2, %s5508_s25 }
0x11ef   :  { %v2110_v4 = vpop.permute.xlu1 %2109 }
0x11f0   :  { %v2112_v62 = vsel %vm108_vm0, %v2110_v4, 0.0 }
0x11f1   :  { %2113 = vadd.xlane.f32.xlu1 %v2112_v62 }
0x127e   :  { %v2114_v25 = vpop.xlane.xlu1 %2113 }
0x127f   :  { %v2119_v57 = vrot.slane %v2114_v25, %v5746_v21  ;;  %v2123_v54 = vrot.slane %v2114_v25, %v5749_v22  ;;  %v2127_v18 = vrot.slane %v2114_v25, %v5752_v23  ;;  %v2131_v5 = vrot.slane %v2114_v25, %v5755_v24 }
0x1280   :  { %v2135_v43 = vrot.slane %v2114_v25, %v5761_v30  ;;  %v2139_v0 = vrot.slane %v2114_v25, %v5765_v37  ;;  %v2143_v17 = vrot.slane %v2114_v25, %v5769_v42  ;;  %v2147_v38 = vrot.slane %v2114_v25, %v5773_v55 }
0x1281   :  { %v2156_v63 = vadd.f32 %v2119_v57, %v5702_v45  ;;  %v2157_v53 = vadd.f32 %v2123_v54, %v5704_v46  ;;  %v2158_v28 = vadd.f32 %v2127_v18, %v5706_v47  ;;  %v2159_v35 = vadd.f32 %v2131_v5, %v5708_v48 }
0x1282   :  { %v2160_v40 = vadd.f32 %v2135_v43, %v5710_v49  ;;  %v2161_v41 = vadd.f32 %v2139_v0, %v5712_v50  ;;  %v2162_v9 = vadd.f32 %v2143_v17, %v5714_v51  ;;  %v2163_v60 = vadd.f32 %v2147_v38, %v5716_v52 }
0x1283   :  { %2173 = vperm.xlu0 %5205, %v2156_v63  }
0x1287   :  { %2176 = vperm.xlu0 %5205, %v2157_v53  }
0x128b   :  { %2179 = vperm.xlu0 %5205, %v2158_v28  }
0x128f   :  { %2182 = vperm.xlu0 %5205, %v2159_v35  }
0x1293   :  { %2185 = vperm.xlu0 %5205, %v2160_v40  }
0x1297   :  { %2188 = vperm.xlu0 %5205, %v2161_v41  }
0x129b   :  { %2191 = vperm.xlu0 %5205, %v2162_v9  }
0x129f   :  { %2194 = vperm.xlu0 %5205, %v2163_v60  }
0x1302   :  { %v2174_v61 = vpop.permute.xlu0 %2173 }
0x1303   :  { %v2199_v36 = vrot.slane %v2174_v61, %v5700_v44 }
0x1306   :  { %v2177_v39 = vpop.permute.xlu0 %2176 }
0x1307   :  { %v2203_v27 = vrot.slane %v2177_v39, %v5700_v44 }
0x1309   :  { %v2228_v7 = vsel %vm365_vm1, %v2203_v27, %v2199_v36 }
0x130a   :  { %v2180_v6 = vpop.permute.xlu0 %2179 }
0x130b   :  { %v2207_v11 = vrot.slane %v2180_v6, %v5700_v44 }
0x130d   :  { %v2229_v56 = vsel %vm367_vm2, %v2207_v11, %v2228_v7 }
0x130e   :  { %v2183_v33 = vpop.permute.xlu0 %2182 }
0x130f   :  { %v2211_v31 = vrot.slane %v2183_v33, %v5700_v44 }
0x1311   :  { %v2230_v34 = vsel %vm369_vm3, %v2211_v31, %v2229_v56 }
0x1312   :  { %v2186_v1 = vpop.permute.xlu0 %2185 }
0x1313   :  { %v2215_v32 = vrot.slane %v2186_v1, %v5700_v44 }
0x1315   :  { %v2231_v2 = vsel %vm371_vm4, %v2215_v32, %v2230_v34 }
0x1316   :  { %v2189_v26 = vpop.permute.xlu0 %2188 }
0x1317   :  { %v2219_v20 = vrot.slane %v2189_v26, %v5700_v44 }
0x1319   :  { %v2232_v62 = vsel %vm373_vm5, %v2219_v20, %v2231_v2 }
0x131a   :  { %v2192_v29 = vpop.permute.xlu0 %2191 }
0x131b   :  { %v2223_v10 = vrot.slane %v2192_v29, %v5700_v44 }
0x131d   :  { %v2233_v57 = vsel %vm375_vm6, %v2223_v10, %v2232_v62 }
0x131e   :  { %v2195_v4 = vpop.permute.xlu0 %2194 }
0x131f   :  { %v2227_v25 = vrot.slane %v2195_v4, %v5700_v44 }
0x1321   :  { %v2234_v54 = vsel %vm377_vm7, %v2227_v25, %v2233_v57 }
0x1322   :  { %v2236_v18 = vsel %vm380_vm8, %v2234_v54, -inf }
0x1323   :  { %2237 = vmax.xlane.f32.xlu0 %v2236_v18 }
0x13b0   :  { %v2238_v5 = vpop.xlane.xlu0 %2237 }
0x13b1   :  { %v2243_v43 = vrot.slane %v2238_v5, %v5746_v21  ;;  %v2259_v0 = vrot.slane %v2238_v5, %v5761_v30  ;;  %v2247_v38 = vrot.slane %v2238_v5, %v5749_v22  ;;  %v2251_v6 = vrot.slane %v2238_v5, %v5752_v23 }
0x13b2   :  { %v2255_v26 = vrot.slane %v2238_v5, %v5755_v24  ;;  %v2263_v36 = vrot.slane %v2238_v5, %v5765_v37 }
0x13b3   :  { %v2284_v17 = vsub.f32 %v2160_v40, %v2259_v0  ;;  %v2280_v61 = vsub.f32 %v2156_v63, %v2243_v43  ;;  %v2281_v1 = vsub.f32 %v2157_v53, %v2247_v38  ;;  %v2282_v27 = vsub.f32 %v2158_v28, %v2251_v6 }
0x13b4   :  { %v2283_v31 = vsub.f32 %v2159_v35, %v2255_v26  ;;  %v2267_v63 = vrot.slane %v2238_v5, %v5769_v42  ;;  %v2285_v29 = vsub.f32 %v2161_v41, %v2263_v36  ;;  %v2271_v28 = vrot.slane %v2238_v5, %v5773_v55 }
0x13b5   :  { %v2296_v39 = vmul.f32 1.442695, %v2284_v17  ;;  %v2288_v33 = vmul.f32 1.442695, %v2280_v61  ;;  %v2290_v11 = vmul.f32 1.442695, %v2281_v1 }
0x13b6   :  { %v2292_v32 = vmul.f32 1.442695, %v2282_v27  ;;  %v2294_v7 = vmul.f32 1.442695, %v2283_v31  ;;  %v2286_v35 = vsub.f32 %v2162_v9, %v2267_v63  ;;  %v2298_v20 = vmul.f32 1.442695, %v2285_v29 }
0x13b7   :  { %5278 = vpow2.f32 %v2296_v39  ;;  %v2287_v10 = vsub.f32 %v2163_v60, %v2271_v28 }
0x13b8   :  { %5280 = vpow2.f32 %v2288_v33  ;;  %v2300_v34 = vmul.f32 1.442695, %v2286_v35 }
0x13b9   :  { %5282 = vpow2.f32 %v2290_v11  ;;  %v2302_v2 = vmul.f32 1.442695, %v2287_v10 }
0x13ba   :  { %5284 = vpow2.f32 %v2292_v32 }
0x13bb   :  { %5286 = vpow2.f32 %v2294_v7 }
0x13bc   :  { %5288 = vpow2.f32 %v2298_v20 }
0x13bd   :  { %5290 = vpow2.f32 %v2300_v34 }
0x13be   :  { %5292 = vpow2.f32 %v2302_v2 }
0x13c1   :  { %v6328_v40 = vpop.eup %5278 }
0x13c2   :  { %2325 = vperm.xlu0 %5205, %v6328_v40   ;;  %v6332_v53 = vpop.eup %5280 }
0x13c3   :  { %2313 = vperm.xlu1 %5204, %v6332_v53   ;;  %v5283_v56 = vpop.eup %5282 }
0x13c4   :  { %v5285_v41 = vpop.eup %5284 }
0x13c5   :  { %v5287_v4 = vpop.eup %5286 }
0x13c6   :  { %2103 = vrot.lane.b32.xlu0 %v6284_v19, %s5508_s25  ;;  %v5289_v62 = vpop.eup %5288 }
0x13c7   :  { %2316 = vperm.xlu1 %5204, %v5283_v56   ;;  %v5291_v25 = vpop.eup %5290 }
0x13c8   :  { %v5293_v57 = vpop.eup %5292 }
0x13cb   :  { %2319 = vperm.xlu1 %5204, %v5285_v41  }
0x13cf   :  { %2322 = vperm.xlu1 %5204, %v5287_v4  }
0x13d3   :  { %2328 = vperm.xlu1 %5204, %v5289_v62  }
0x13d7   :  { %2331 = vperm.xlu1 %5204, %v5291_v25  }
0x13db   :  { %2334 = vperm.xlu1 %5204, %v5293_v57  }
0x1441   :  { %v2326_v9 = vpop.permute.xlu0 %2325 }
0x1442   :  { %v2314_v54 = vpop.permute.xlu1 %2313  ;;  %v2355_v11 = vrot.slane %v2326_v9, %v5700_v44 }
0x1443   :  { %v2339_v61 = vrot.slane %v2314_v54, %v5700_v44 }
0x1445   :  { %v2104_v18 = vpop.permute.xlu0 %2103 }
0x1446   :  { %2106 = vst.msk [vmem:[#allocation2 + $0x10] sm:$0xff] %vm108_vm0, %v2104_v18  ;;  %4980 = vmatmul.mubr.msk.f32.vlgmr.msra.gmra.mrb[6].mxu1 %vm108_vm0, %v2104_v18  ;;  %v2317_v60 = vpop.permute.xlu1 %2316 }
0x1447   :  { %5136 = vmatpush3.bf16.msra.mxu1 %v5828_v58  ;;  %5001 = vmatprep.mubr.msk.f32.mxu1 %vm5505_vm9, %v6995_v14  ;;  %v2343_v0 = vrot.slane %v2317_v60, %v5700_v44 }
0x1448   :  { %5137 = vmatprep.subr.bf16.mxu1 %v6996_v12 }
0x1449   :  { %v2368_v6 = vsel %vm365_vm1, %v2343_v0, %v2339_v61 }
0x144a   :  { %v2320_v5 = vpop.permute.xlu1 %2319 }
0x144b   :  { %5139 = vmatpush3.bf16.msra.mxu1 %v5839_v15  ;;  %v2347_v17 = vrot.slane %v2320_v5, %v5700_v44 }
0x144c   :  { %5146 = vmatprep.subr.bf16.mxu1 %v6996_v12 }
0x144d   :  { %v2369_v33 = vsel %vm367_vm2, %v2347_v17, %v2368_v6 }
0x144e   :  { %v2323_v43 = vpop.permute.xlu1 %2322 }
0x144f   :  { %v2351_v39 = vrot.slane %v2323_v43, %v5700_v44 }
0x1451   :  { %v2370_v26 = vsel %vm369_vm3, %v2351_v39, %v2369_v33 }
0x1452   :  { %v2329_v38 = vpop.permute.xlu1 %2328  ;;  %v2371_v31 = vsel %vm371_vm4, %v2355_v11, %v2370_v26 }
0x1453   :  { %v2359_v27 = vrot.slane %v2329_v38, %v5700_v44 }
0x1455   :  { %v2372_v63 = vsel %vm373_vm5, %v2359_v27, %v2371_v31 }
0x1456   :  { %v2332_v1 = vpop.permute.xlu1 %2331 }
0x1457   :  { %v2363_v36 = vrot.slane %v2332_v1, %v5700_v44 }
0x1459   :  { %v2373_v7 = vsel %vm375_vm6, %v2363_v36, %v2372_v63 }
0x145a   :  { %v2335_v32 = vpop.permute.xlu1 %2334 }
0x145b   :  { %v2367_v29 = vrot.slane %v2335_v32, %v5700_v44  ;;  %v6394_v32 = vld [vmem:[%s6968_s0 + $0x10] sm:$0xff] }
0x145d   :  { %v2374_v28 = vsel %vm377_vm7, %v2367_v29, %v2373_v7  ;;  %v6400_v29 = vld [vmem:[%s6968_s0 + $0x30] sm:$0xff] }
0x145e   :  { %v2376_v35 = vsel %vm380_vm8, %v2374_v28, 0.0 }
0x145f   :  { %2377 = vadd.xlane.f32.xlu1 %v2376_v35 }
0x14ec   :  { %v2378_v20 = vpop.xlane.xlu1 %2377 }
0x14ed   :  { %5294 = vrcp.f32 %v2378_v20 }
0x14f7   :  { %v5295_v10 = vpop.eup %5294 }
0x14f8   :  { %v2408_v34 = vrot.slane %v5295_v10, %v5769_v42  ;;  %v2384_v2 = vrot.slane %v5295_v10, %v5746_v21  ;;  %v2388_v18 = vrot.slane %v5295_v10, %v5749_v22  ;;  %v2392_v5 = vrot.slane %v5295_v10, %v5752_v23 }
0x14f9   :  { %v2396_v0 = vrot.slane %v5295_v10, %v5755_v24  ;;  %v2400_v38 = vrot.slane %v5295_v10, %v5761_v30  ;;  %v2412_v39 = vrot.slane %v5295_v10, %v5773_v55 }
0x14fa   :  { %v2427_v9 = vmul.f32 %v5291_v25, %v2408_v34  ;;  %v2421_v54 = vmul.f32 %v6332_v53, %v2384_v2  ;;  %v2422_v60 = vmul.f32 %v5283_v56, %v2388_v18  ;;  %v2423_v43 = vmul.f32 %v5285_v41, %v2392_v5  ;;  %v6407_v2 = vld [vmem:[%s6968_s0 + $0x18] sm:$0xff] }
0x14fb   :  { %v2424_v17 = vmul.f32 %v5287_v4, %v2396_v0  ;;  %v2425_v25 = vmul.f32 %v6328_v40, %v2400_v38  ;;  %v2404_v53 = vrot.slane %v5295_v10, %v5765_v37  ;;  %v2428_v56 = vmul.f32 %v5293_v57, %v2412_v39  ;;  %v6380_v40 = vld [vmem:[%s6968_s0] sm:$0xff]  ;;  %v6386_v57 = vld [vmem:[%s6968_s0 + $0x8] sm:$0xff]  ;;  %6999 = vst [vmem:[#allocation14_spill] sm:$0xff] %v6407_v2 }
0x14fc   :  { %2461 = vperm.xlu1 %5204, %v2427_v9   ;;  %2431 = vperm.xlu0 %5205, %v2421_v54  }
0x14fd   :  { %v2426_v61 = vmul.f32 %v5289_v62, %v2404_v53  ;;  %v6415_v53 = vld [vmem:[%s6968_s0 + $0x20] sm:$0xff] }
0x14fe   :  { %7000 = vst [vmem:[#allocation15_spill] sm:$0xff] %v6415_v53 }
0x1500   :  { %2436 = vperm.xlu0 %5205, %v2422_v60  }
0x1504   :  { %2441 = vperm.xlu0 %5205, %v2423_v43  }
0x1508   :  { %2446 = vperm.xlu0 %5205, %v2424_v17  }
0x150c   :  { %2451 = vperm.xlu0 %5205, %v2425_v25  }
0x1510   :  { %2456 = vperm.xlu0 %5205, %v2426_v61  }
0x1514   :  { %2466 = vperm.xlu0 %5205, %v2428_v56  }
0x1519   :  { %v2689_v6 = vpop.f32.mrb[6].mxu1 }
0x151a   :  { %v6373_v41 = vadd.f32 %v6237_v16, %v2689_v6  ;;  %v4981_v33 = vpop.f32.mrb[7].mxu1 }
0x151c   :  { %2701 = vrot.lane.b32.xlu0 %v6373_v41, %s5507_s26 }
0x157b   :  { %v2432_v4 = vpop.permute.xlu0 %2431  ;;  %v2462_v26 = vpop.permute.xlu1 %2461 }
0x157c   :  { %v2469_v62 = vmul.f32 %v6380_v40, %v2432_v4  ;;  %v2475_v7 = vmul.f32 %v6400_v29, %v2462_v26 }
0x157e   :  { %v2477_v27 = vsel %vm108_vm0, %v2469_v62, 0.0  ;;  %v2519_v54 = vsel %vm108_vm0, %v2475_v7, 0.0 }
0x157f   :  { %v2437_v1 = vpop.permute.xlu0 %2436  ;;  %v2478_v28 = vrot.slane %v2477_v27, 4  ;;  %v2520_v38 = vrot.slane %v2519_v54, 4 }
0x1580   :  { %v2470_v16 = vmul.f32 %v6386_v57, %v2437_v1 }
0x1581   :  { %v2479_v18 = vadd.f32 %v2478_v28, %v2477_v27  ;;  %v6422_v27 = vld [vmem:[%s6968_s0 + $0x28] sm:$0xff] }
0x1582   :  { %v2484_v11 = vsel %vm108_vm0, %v2470_v16, 0.0  ;;  %v2521_v16 = vadd.f32 %v2520_v38, %v2519_v54  ;;  %7001 = vst [vmem:[#allocation16_spill] sm:$0xff] %v6422_v27  ;;  %v6429_v54 = vld [vmem:[%s6968_s0 + $0x38] sm:$0xff] }
0x1583   :  { %v2485_v36 = vrot.slane %v2484_v11, 4  ;;  %v2442_v31 = vpop.permute.xlu0 %2441  ;;  %v2480_v39 = vrot.slane %v2479_v18, 2  ;;  %7002 = vst [vmem:[#allocation17_spill] sm:$0xff] %v6429_v54 }
0x1584   :  { %v2471_v63 = vmul.f32 %v6394_v32, %v2442_v31 }
0x1585   :  { %v2486_v20 = vadd.f32 %v2485_v36, %v2484_v11  ;;  %v2481_v36 = vadd.f32 %v2480_v39, %v2479_v18 }
0x1586   :  { %v2491_v35 = vsel %vm108_vm0, %v2471_v63, 0.0 }
0x1587   :  { %v2492_v10 = vrot.slane %v2491_v35, 4  ;;  %v2447_v34 = vpop.permute.xlu0 %2446  ;;  %v2487_v43 = vrot.slane %v2486_v20, 2 }
0x1588   :  { %v2472_v9 = vmul.f32 %v6407_v2, %v2447_v34  ;;  %v2522_v34 = vrot.slane %v2521_v16, 2 }
0x1589   :  { %v2493_v60 = vadd.f32 %v2492_v10, %v2491_v35  ;;  %v2488_v33 = vadd.f32 %v2487_v43, %v2486_v20 }
0x158a   :  { %v2498_v5 = vsel %vm108_vm0, %v2472_v9, 0.0 }
0x158b   :  { %v2499_v0 = vrot.slane %v2498_v5, 4  ;;  %v2452_v17 = vpop.permute.xlu0 %2451  ;;  %v2494_v25 = vrot.slane %v2493_v60, 2  ;;  %v2489_v28 = vrot.slane %v2488_v33, 1 }
0x158c   :  { %v2473_v61 = vmul.f32 %v6415_v53, %v2452_v17 }
0x158d   :  { %v2500_v56 = vadd.f32 %v2499_v0, %v2498_v5  ;;  %v2495_v26 = vadd.f32 %v2494_v25, %v2493_v60  ;;  %v2482_v5 = vrot.slane %v2481_v36, 1  ;;  %v2490_v38 = vadd.f32 %v2489_v28, %v2488_v33 }
0x158e   :  { %v2505_v6 = vsel %vm108_vm0, %v2473_v61, 0.0 }
0x158f   :  { %v2501_v4 = vrot.slane %v2500_v56, 2  ;;  %v2506_v62 = vrot.slane %v2505_v6, 4  ;;  %v2457_v1 = vpop.permute.xlu0 %2456  ;;  %v2496_v9 = vrot.slane %v2495_v26, 1 }
0x1590   :  { %v2474_v11 = vmul.f32 %v6422_v27, %v2457_v1 }
0x1591   :  { %v2502_v31 = vadd.f32 %v2501_v4, %v2500_v56  ;;  %v2507_v63 = vadd.f32 %v2506_v62, %v2505_v6  ;;  %v2523_v56 = vadd.f32 %v2522_v34, %v2521_v16  ;;  %v2497_v6 = vadd.f32 %v2496_v9, %v2495_v26 }
0x1592   :  { %v2512_v7 = vsel %vm108_vm0, %v2474_v11, 0.0  ;;  %v2483_v4 = vadd.f32 %v2482_v5, %v2481_v36 }
0x1593   :  { %v2508_v35 = vrot.slane %v2507_v63, 2  ;;  %v2513_v20 = vrot.slane %v2512_v7, 4  ;;  %v2467_v10 = vpop.permute.xlu0 %2466  ;;  %v2503_v43 = vrot.slane %v2502_v31, 1  ;;  %v2524_v2 = vrot.slane %v2523_v56, 1 }
0x1594   :  { %v2476_v60 = vmul.f32 %v6429_v54, %v2467_v10  ;;  %v2541_v53 = vsel %vm365_vm1, %v2490_v38, %v2483_v4 }
0x1595   :  { %v2509_v18 = vadd.f32 %v2508_v35, %v2507_v63  ;;  %v2514_v0 = vadd.f32 %v2513_v20, %v2512_v7  ;;  %v2504_v62 = vadd.f32 %v2503_v43, %v2502_v31  ;;  %v2542_v63 = vsel %vm367_vm2, %v2497_v6, %v2541_v53 }
0x1596   :  { %v2526_v17 = vsel %vm108_vm0, %v2476_v60, 0.0  ;;  %v2525_v36 = vadd.f32 %v2524_v2, %v2523_v56 }
0x1597   :  { %v2510_v25 = vrot.slane %v2509_v18, 1  ;;  %v2515_v61 = vrot.slane %v2514_v0, 2  ;;  %v2527_v39 = vrot.slane %v2526_v17, 4  ;;  %v2543_v7 = vsel %vm369_vm3, %v2504_v62, %v2542_v63 }
0x1599   :  { %v2516_v1 = vadd.f32 %v2515_v61, %v2514_v0  ;;  %v2528_v11 = vadd.f32 %v2527_v39, %v2526_v17  ;;  %v2511_v27 = vadd.f32 %v2510_v25, %v2509_v18  ;;  %v2702_v18 = vpop.permute.xlu0 %2701 }
0x159b   :  { %v2517_v10 = vrot.slane %v2516_v1, 1  ;;  %v2529_v54 = vrot.slane %v2528_v11, 2  ;;  %v2544_v35 = vsel %vm371_vm4, %v2511_v27, %v2543_v7 }
0x159d   :  { %v2518_v33 = vadd.f32 %v2517_v10, %v2516_v1  ;;  %v2530_v28 = vadd.f32 %v2529_v54, %v2528_v11 }
0x159f   :  { %v2531_v16 = vrot.slane %v2530_v28, 1  ;;  %v2545_v26 = vsel %vm373_vm5, %v2518_v33, %v2544_v35 }
0x15a0   :  { %v2546_v20 = vsel %vm375_vm6, %v2525_v36, %v2545_v26 }
0x15a1   :  { %v2532_v31 = vadd.f32 %v2531_v16, %v2530_v28 }
0x15a3   :  { %v2547_v34 = vsel %vm377_vm7, %v2532_v31, %v2546_v20 }
0x15a4   :  { %4969 = vmatmul.mubr.msk.f32.vlgmr.msra.gmra.mrb[6].mxu0 %vm108_vm0, %v2547_v34 }
0x15a5   :  { %5130 = vmatpush3.bf16.msra.mxu0 %v5884_v59  ;;  %4990 = vmatprep.mubr.msk.f32.mxu0 %vm5505_vm9, %v6995_v14 }
0x15a6   :  { %5131 = vmatprep.subr.bf16.mxu0 %v6996_v12 }
0x15a9   :  { %5133 = vmatpush3.bf16.msra.mxu0 %v5905_v3 }
0x15aa   :  { %5140 = vmatprep.subr.bf16.mxu0 %v6996_v12 }
0x1677   :  { %v2616_v53 = vpop.f32.mrb[6].mxu0 }
0x1678   :  { %v5173_v2 = vadd.f32 %v6277_v8, %v2616_v53  ;;  %v4970_v27 = vpop.f32.mrb[7].mxu0 }
0x167a   :  { %v2693_v9 = vadd.f32 %v5173_v2, %v6373_v41 }
0x167c   :  { %v4761_v54 = vmul.f32 -1.442695, %v2693_v9 }
0x167e   :  { %5296 = vpow2.f32 %v4761_v54 }
0x1688   :  { %v5297_v60 = vpop.eup %5296 }
0x1689   :  { %v2697_v5 = vadd.f32 1.0, %v5297_v60 }
0x168b   :  { %5298 = vrcp.f32 %v2697_v5 }
0x1695   :  { %v5299_v43 = vpop.eup %5298 }
0x1696   :  { %v2704_v0 = vmul.f32 %v5299_v43, %v2702_v18  ;;  %v2711_v8 = vsub.f32 1.0, %v5299_v43  ;;  %v2717_v41 = vmul.f32 %v5299_v43, %v6284_v19 }
0x1698   :  { %2706 = vrot.lane.b32.xlu0 %v2704_v0, %s5507_s26 }
0x170a   :  { %v2707_v17 = vpop.permute.xlu0 %2706 }
0x170b   :  { %v2709_v38 = vadd.f32 %v5173_v2, %v2707_v17 }
0x170d   :  { %5300 = vtanh.f32 %v2709_v38 }
0x1717   :  { %v5301_v25 = vpop.eup %5300 }
0x1718   :  { %2713 = vrot.lane.b32.xlu0 %v5301_v25, %s5508_s25 }
0x178a   :  { %v2714_v61 = vpop.permute.xlu0 %2713 }
0x178b   :  { %v2716_v39 = vmul.f32 %v2714_v61, %v2711_v8 }
0x178d   :  { %v6452_v56 = vadd.f32 %v2717_v41, %v2716_v39 }
0x178f   :  { %v2724_v6 = vmul.f32 %v6452_v56, %v5970_v13 }
0x1791   :  { %2726 = vrot.lane.b32.xlu1 %v2724_v6, %s5508_s25 }
0x1803   :  { %v2727_v4 = vpop.permute.xlu1 %2726 }
0x1804   :  { %v2729_v62 = vsel %vm108_vm0, %v2727_v4, 0.0 }
0x1805   :  { %2730 = vadd.xlane.f32.xlu0 %v2729_v62 }
0x1892   :  { %v2731_v1 = vpop.xlane.xlu0 %2730 }
0x1893   :  { %v2764_v11 = vrot.slane %v2731_v1, %v5773_v55  ;;  %v2736_v10 = vrot.slane %v2731_v1, %v5746_v21  ;;  %v2740_v7 = vrot.slane %v2731_v1, %v5749_v22  ;;  %v2744_v28 = vrot.slane %v2731_v1, %v5752_v23 }
0x1894   :  { %v2748_v16 = vrot.slane %v2731_v1, %v5755_v24  ;;  %v2752_v36 = vrot.slane %v2731_v1, %v5761_v30  ;;  %v2756_v20 = vrot.slane %v2731_v1, %v5765_v37  ;;  %v2760_v53 = vrot.slane %v2731_v1, %v5769_v42 }
0x1895   :  { %v6461_v63 = vadd.f32 %v2764_v11, %v5716_v52  ;;  %v2773_v19 = vadd.f32 %v2736_v10, %v5702_v45  ;;  %v2774_v33 = vadd.f32 %v2740_v7, %v5704_v46  ;;  %v2775_v35 = vadd.f32 %v2744_v28, %v5706_v47 }
0x1896   :  { %v2776_v26 = vadd.f32 %v2748_v16, %v5708_v48  ;;  %v2777_v31 = vadd.f32 %v2752_v36, %v5710_v49  ;;  %v2778_v34 = vadd.f32 %v2756_v20, %v5712_v50  ;;  %v2779_v2 = vadd.f32 %v2760_v53, %v5714_v51 }
0x1897   :  { %2811 = vperm.xlu0 %5205, %v6461_v63   ;;  %2790 = vperm.xlu1 %5204, %v2773_v19  }
0x189b   :  { %2793 = vperm.xlu1 %5204, %v2774_v33  }
0x189f   :  { %2796 = vperm.xlu1 %5204, %v2775_v35  }
0x18a3   :  { %2799 = vperm.xlu1 %5204, %v2776_v26  }
0x18a7   :  { %2802 = vperm.xlu1 %5204, %v2777_v31  }
0x18ab   :  { %2805 = vperm.xlu1 %5204, %v2778_v34  }
0x18af   :  { %2808 = vperm.xlu1 %5204, %v2779_v2  }
0x1916   :  { %v2791_v27 = vpop.permute.xlu1 %2790  ;;  %v2812_v41 = vpop.permute.xlu0 %2811 }
0x1917   :  { %v2816_v0 = vrot.slane %v2791_v27, %v5700_v44  ;;  %v2844_v11 = vrot.slane %v2812_v41, %v5700_v44 }
0x191a   :  { %v2794_v9 = vpop.permute.xlu1 %2793 }
0x191b   :  { %v2820_v43 = vrot.slane %v2794_v9, %v5700_v44 }
0x191d   :  { %v2845_v8 = vsel %vm365_vm1, %v2820_v43, %v2816_v0 }
0x191e   :  { %v2797_v54 = vpop.permute.xlu1 %2796 }
0x191f   :  { %v2824_v18 = vrot.slane %v2797_v54, %v5700_v44 }
0x1921   :  { %v2846_v39 = vsel %vm367_vm2, %v2824_v18, %v2845_v8 }
0x1922   :  { %v2800_v60 = vpop.permute.xlu1 %2799 }
0x1923   :  { %v2828_v17 = vrot.slane %v2800_v60, %v5700_v44 }
0x1925   :  { %v2847_v6 = vsel %vm369_vm3, %v2828_v17, %v2846_v39 }
0x1926   :  { %v2803_v5 = vpop.permute.xlu1 %2802 }
0x1927   :  { %v2832_v25 = vrot.slane %v2803_v5, %v5700_v44 }
0x1929   :  { %v2848_v62 = vsel %vm371_vm4, %v2832_v25, %v2847_v6 }
0x192a   :  { %v2806_v38 = vpop.permute.xlu1 %2805 }
0x192b   :  { %v2836_v61 = vrot.slane %v2806_v38, %v5700_v44 }
0x192d   :  { %v2849_v10 = vsel %vm373_vm5, %v2836_v61, %v2848_v62 }
0x192e   :  { %v2809_v4 = vpop.permute.xlu1 %2808 }
0x192f   :  { %v2840_v1 = vrot.slane %v2809_v4, %v5700_v44 }
0x1931   :  { %v2850_v7 = vsel %vm375_vm6, %v2840_v1, %v2849_v10 }
0x1932   :  { %v2851_v28 = vsel %vm377_vm7, %v2844_v11, %v2850_v7 }
0x1933   :  { %v2853_v16 = vsel %vm380_vm8, %v2851_v28, -inf }
0x1934   :  { %2854 = vmax.xlane.f32.xlu1 %v2853_v16 }
0x19c1   :  { %v2855_v36 = vpop.xlane.xlu1 %2854 }
0x19c2   :  { %v2860_v20 = vrot.slane %v2855_v36, %v5746_v21  ;;  %v2864_v53 = vrot.slane %v2855_v36, %v5749_v22  ;;  %v2876_v27 = vrot.slane %v2855_v36, %v5761_v30  ;;  %v2868_v9 = vrot.slane %v2855_v36, %v5752_v23 }
0x19c3   :  { %v2872_v0 = vrot.slane %v2855_v36, %v5755_v24  ;;  %v2880_v25 = vrot.slane %v2855_v36, %v5765_v37  ;;  %v2884_v41 = vrot.slane %v2855_v36, %v5769_v42 }
0x19c4   :  { %v2897_v54 = vsub.f32 %v2773_v19, %v2860_v20  ;;  %v2898_v60 = vsub.f32 %v2774_v33, %v2864_v53  ;;  %v2901_v5 = vsub.f32 %v2777_v31, %v2876_v27  ;;  %v2899_v17 = vsub.f32 %v2775_v35, %v2868_v9 }
0x19c5   :  { %v2900_v8 = vsub.f32 %v2776_v26, %v2872_v0  ;;  %v2902_v39 = vsub.f32 %v2778_v34, %v2880_v25  ;;  %v2888_v31 = vrot.slane %v2855_v36, %v5773_v55  ;;  %v2903_v35 = vsub.f32 %v2779_v2, %v2884_v41 }
0x19c6   :  { %v2905_v43 = vmul.f32 1.442695, %v2897_v54  ;;  %v2907_v18 = vmul.f32 1.442695, %v2898_v60  ;;  %v2913_v38 = vmul.f32 1.442695, %v2901_v5 }
0x19c7   :  { %v2909_v61 = vmul.f32 1.442695, %v2899_v17  ;;  %v2911_v19 = vmul.f32 1.442695, %v2900_v8  ;;  %v2915_v6 = vmul.f32 1.442695, %v2902_v39  ;;  %v2904_v26 = vsub.f32 %v6461_v63, %v2888_v31 }
0x19c8   :  { %5302 = vpow2.f32 %v2905_v43  ;;  %v2917_v34 = vmul.f32 1.442695, %v2903_v35 }
0x19c9   :  { %5304 = vpow2.f32 %v2907_v18  ;;  %v2919_v2 = vmul.f32 1.442695, %v2904_v26 }
0x19ca   :  { %5306 = vpow2.f32 %v2913_v38 }
0x19cb   :  { %5308 = vpow2.f32 %v2909_v61 }
0x19cc   :  { %5310 = vpow2.f32 %v2911_v19 }
0x19cd   :  { %5312 = vpow2.f32 %v2915_v6 }
0x19ce   :  { %5314 = vpow2.f32 %v2917_v34 }
0x19cf   :  { %5316 = vpow2.f32 %v2919_v2 }
0x19d2   :  { %v6500_v33 = vpop.eup %5302 }
0x19d3   :  { %2930 = vperm.xlu0 %5205, %v6500_v33   ;;  %v6504_v4 = vpop.eup %5304 }
0x19d4   :  { %v6506_v62 = vpop.eup %5306 }
0x19d5   :  { %2942 = vperm.xlu1 %5204, %v6506_v62   ;;  %v5309_v1 = vpop.eup %5308 }
0x19d6   :  { %v5311_v11 = vpop.eup %5310 }
0x19d7   :  { %2933 = vperm.xlu0 %5205, %v6504_v4   ;;  %v5313_v10 = vpop.eup %5312 }
0x19d8   :  { %v5315_v7 = vpop.eup %5314 }
0x19d9   :  { %2720 = vrot.lane.b32.xlu1 %v6452_v56, %s5508_s25  ;;  %v5317_v28 = vpop.eup %5316 }
0x19db   :  { %2936 = vperm.xlu0 %5205, %v5309_v1  }
0x19df   :  { %2939 = vperm.xlu0 %5205, %v5311_v11  }
0x19e3   :  { %2945 = vperm.xlu0 %5205, %v5313_v10  }
0x19e7   :  { %2948 = vperm.xlu0 %5205, %v5315_v7  }
0x19eb   :  { %2951 = vperm.xlu0 %5205, %v5317_v28  }
0x1a52   :  { %v2931_v16 = vpop.permute.xlu0 %2930 }
0x1a53   :  { %v2956_v5 = vrot.slane %v2931_v16, %v5700_v44 }
0x1a54   :  { %v2943_v63 = vpop.permute.xlu1 %2942 }
0x1a55   :  { %v2972_v8 = vrot.slane %v2943_v63, %v5700_v44 }
0x1a56   :  { %v2934_v36 = vpop.permute.xlu0 %2933 }
0x1a57   :  { %v2960_v9 = vrot.slane %v2934_v36, %v5700_v44 }
0x1a58   :  { %v2721_v20 = vpop.permute.xlu1 %2720 }
0x1a59   :  { %2723 = vst.msk [vmem:[#allocation2 + $0x18] sm:$0xff] %vm108_vm0, %v2721_v20  ;;  %5002 = vmatmul.mubr.msk.f32.vlgmr.msra.gmra.mrb[8].mxu1 %vm108_vm0, %v2721_v20  ;;  %v2985_v18 = vsel %vm365_vm1, %v2960_v9, %v2956_v5 }
0x1a5a   :  { %v2937_v53 = vpop.permute.xlu0 %2936  ;;  %5148 = vmatpush3.bf16.msra.mxu1 %v5828_v58  ;;  %5023 = vmatprep.mubr.msk.f32.mxu1 %vm5505_vm9, %v6995_v14 }
0x1a5b   :  { %5149 = vmatprep.subr.bf16.mxu1 %v6996_v12  ;;  %v2964_v54 = vrot.slane %v2937_v53, %v5700_v44 }
0x1a5d   :  { %v2986_v0 = vsel %vm367_vm2, %v2964_v54, %v2985_v18 }
0x1a5e   :  { %v2940_v27 = vpop.permute.xlu0 %2939  ;;  %5151 = vmatpush3.bf16.msra.mxu1 %v5839_v15 }
0x1a5f   :  { %5158 = vmatprep.subr.bf16.mxu1 %v6996_v12  ;;  %v2968_v43 = vrot.slane %v2940_v27, %v5700_v44 }
0x1a61   :  { %v2987_v38 = vsel %vm369_vm3, %v2968_v43, %v2986_v0 }
0x1a62   :  { %v2946_v60 = vpop.permute.xlu0 %2945  ;;  %v2988_v41 = vsel %vm371_vm4, %v2972_v8, %v2987_v38 }
0x1a63   :  { %v2976_v25 = vrot.slane %v2946_v60, %v5700_v44 }
0x1a65   :  { %v2989_v19 = vsel %vm373_vm5, %v2976_v25, %v2988_v41 }
0x1a66   :  { %v2949_v17 = vpop.permute.xlu0 %2948 }
0x1a67   :  { %v2980_v61 = vrot.slane %v2949_v17, %v5700_v44 }
0x1a69   :  { %v2990_v35 = vsel %vm375_vm6, %v2980_v61, %v2989_v19 }
0x1a6a   :  { %v2952_v39 = vpop.permute.xlu0 %2951 }
0x1a6b   :  { %v2984_v31 = vrot.slane %v2952_v39, %v5700_v44 }
0x1a6d   :  { %v2991_v6 = vsel %vm377_vm7, %v2984_v31, %v2990_v35 }
0x1a6e   :  { %v2993_v26 = vsel %vm380_vm8, %v2991_v6, 0.0 }
0x1a6f   :  { %2994 = vadd.xlane.f32.xlu0 %v2993_v26 }
0x1afc   :  { %v2995_v34 = vpop.xlane.xlu0 %2994 }
0x1afd   :  { %5318 = vrcp.f32 %v2995_v34 }
0x1b07   :  { %v5319_v2 = vpop.eup %5318 }
0x1b08   :  { %v3025_v16 = vrot.slane %v5319_v2, %v5769_v42  ;;  %v3001_v63 = vrot.slane %v5319_v2, %v5746_v21  ;;  %v3005_v53 = vrot.slane %v5319_v2, %v5749_v22  ;;  %v3009_v9 = vrot.slane %v5319_v2, %v5752_v23 }
0x1b09   :  { %v3013_v60 = vrot.slane %v5319_v2, %v5755_v24  ;;  %v3017_v43 = vrot.slane %v5319_v2, %v5761_v30  ;;  %v3029_v0 = vrot.slane %v5319_v2, %v5773_v55 }
0x1b0a   :  { %v3044_v36 = vmul.f32 %v5315_v7, %v3025_v16  ;;  %v3038_v20 = vmul.f32 %v6500_v33, %v3001_v63  ;;  %v3039_v27 = vmul.f32 %v6504_v4, %v3005_v53  ;;  %v3040_v54 = vmul.f32 %v5309_v1, %v3009_v9  ;;  %v6551_v1 = vld [vmem:[%s6977_s9] ss:$0 sm:$0xff]  ;;  %v7003_v16 = vld [vmem:[#allocation14_spill] sm:$0xff] }
0x1b0b   :  { %v3041_v5 = vmul.f32 %v5311_v11, %v3013_v60  ;;  %v3042_v7 = vmul.f32 %v6506_v62, %v3017_v43  ;;  %v3021_v33 = vrot.slane %v5319_v2, %v5765_v37  ;;  %v3045_v4 = vmul.f32 %v5317_v28, %v3029_v0 }
0x1b0c   :  { %3078 = vperm.xlu0 %5205, %v3044_v36   ;;  %3048 = vperm.xlu1 %5204, %v3038_v20  }
0x1b0d   :  { %v3043_v18 = vmul.f32 %v5313_v10, %v3021_v33 }
0x1b10   :  { %3053 = vperm.xlu1 %5204, %v3039_v27  }
0x1b14   :  { %3058 = vperm.xlu1 %5204, %v3040_v54  }
0x1b18   :  { %3063 = vperm.xlu1 %5204, %v3041_v5  }
0x1b1c   :  { %3068 = vperm.xlu1 %5204, %v3042_v7  }
0x1b20   :  { %3073 = vperm.xlu1 %5204, %v3043_v18  }
0x1b24   :  { %3083 = vperm.xlu1 %5204, %v3045_v4  }
0x1b2c   :  { %v3306_v17 = vpop.f32.mrb[8].mxu1 }
0x1b2d   :  { %v6554_v11 = vadd.f32 %v6551_v1, %v3306_v17  ;;  %v5003_v38 = vpop.f32.mrb[9].mxu1 }
0x1b2f   :  { %3318 = vrot.lane.b32.xlu1 %v6554_v11, %s5507_s26 }
0x1b8b   :  { %v3049_v62 = vpop.permute.xlu1 %3048  ;;  %v3079_v8 = vpop.permute.xlu0 %3078 }
0x1b8c   :  { %v3086_v10 = vmul.f32 %v6380_v40, %v3049_v62  ;;  %v3092_v35 = vmul.f32 %v6400_v29, %v3079_v8  ;;  %v7004_v29 = vld [vmem:[#allocation15_spill] sm:$0xff] }
0x1b8e   :  { %v3094_v61 = vsel %vm108_vm0, %v3086_v10, 0.0  ;;  %v7005_v10 = vld [vmem:[#allocation16_spill] sm:$0xff] }
0x1b8f   :  { %v3054_v25 = vpop.permute.xlu1 %3053  ;;  %v3095_v6 = vrot.slane %v3094_v61, 4 }
0x1b90   :  { %v3087_v28 = vmul.f32 %v6386_v57, %v3054_v25  ;;  %v3136_v57 = vsel %vm108_vm0, %v3092_v35, 0.0 }
0x1b91   :  { %v3096_v36 = vadd.f32 %v3095_v6, %v3094_v61 }
0x1b92   :  { %v3101_v41 = vsel %vm108_vm0, %v3087_v28, 0.0 }
0x1b93   :  { %v3102_v39 = vrot.slane %v3101_v41, 4  ;;  %v3059_v19 = vpop.permute.xlu1 %3058  ;;  %v3097_v43 = vrot.slane %v3096_v36, 2 }
0x1b94   :  { %v3088_v31 = vmul.f32 %v6394_v32, %v3059_v19  ;;  %v3137_v32 = vrot.slane %v3136_v57, 4 }
0x1b95   :  { %v3103_v34 = vadd.f32 %v3102_v39, %v3101_v41  ;;  %v3098_v28 = vadd.f32 %v3097_v43, %v3096_v36 }
0x1b96   :  { %v3108_v26 = vsel %vm108_vm0, %v3088_v31, 0.0  ;;  %v3138_v38 = vadd.f32 %v3137_v32, %v3136_v57 }
0x1b97   :  { %v3109_v2 = vrot.slane %v3108_v26, 4  ;;  %v3064_v40 = vpop.permute.xlu1 %3063  ;;  %v3104_v27 = vrot.slane %v3103_v34, 2 }
0x1b98   :  { %v3089_v63 = vmul.f32 %v7003_v16, %v3064_v40  ;;  %v3139_v6 = vrot.slane %v3138_v38, 2  ;;  %v3099_v40 = vrot.slane %v3098_v28, 1 }
0x1b99   :  { %v3110_v20 = vadd.f32 %v3109_v2, %v3108_v26  ;;  %v3105_v18 = vadd.f32 %v3104_v27, %v3103_v34  ;;  %v7006_v2 = vld [vmem:[#allocation17_spill] sm:$0xff] }
0x1b9a   :  { %v3115_v53 = vsel %vm108_vm0, %v3089_v63, 0.0 }
0x1b9b   :  { %v3116_v9 = vrot.slane %v3115_v53, 4  ;;  %v3069_v54 = vpop.permute.xlu1 %3068  ;;  %v3111_v60 = vrot.slane %v3110_v20, 2  ;;  %v3106_v39 = vrot.slane %v3105_v18, 1 }
0x1b9c   :  { %v3090_v5 = vmul.f32 %v7004_v29, %v3069_v54  ;;  %v3140_v54 = vadd.f32 %v3139_v6, %v3138_v38 }
0x1b9d   :  { %v3117_v7 = vadd.f32 %v3116_v9, %v3115_v53  ;;  %v3112_v62 = vadd.f32 %v3111_v60, %v3110_v20  ;;  %v3107_v53 = vadd.f32 %v3106_v39, %v3105_v18  ;;  %v3100_v60 = vadd.f32 %v3099_v40, %v3098_v28 }
0x1b9e   :  { %v3122_v33 = vsel %vm108_vm0, %v3090_v5, 0.0 }
0x1b9f   :  { %v3118_v0 = vrot.slane %v3117_v7, 2  ;;  %v3123_v4 = vrot.slane %v3122_v33, 4  ;;  %v3074_v17 = vpop.permute.xlu1 %3073  ;;  %v3113_v26 = vrot.slane %v3112_v62, 1 }
0x1ba0   :  { %v3091_v25 = vmul.f32 %v7005_v10, %v3074_v17  ;;  %v3141_v17 = vrot.slane %v3140_v54, 1 }
0x1ba1   :  { %v3119_v8 = vadd.f32 %v3118_v0, %v3117_v7  ;;  %v3124_v61 = vadd.f32 %v3123_v4, %v3122_v33  ;;  %v3114_v32 = vadd.f32 %v3113_v26, %v3112_v62  ;;  %v3158_v33 = vsel %vm365_vm1, %v3107_v53, %v3100_v60 }
0x1ba2   :  { %v3129_v41 = vsel %vm108_vm0, %v3091_v25, 0.0  ;;  %v3142_v28 = vadd.f32 %v3141_v17, %v3140_v54 }
0x1ba3   :  { %v3125_v19 = vrot.slane %v3124_v61, 2  ;;  %v3130_v31 = vrot.slane %v3129_v41, 4  ;;  %v3084_v35 = vpop.permute.xlu1 %3083  ;;  %v3120_v16 = vrot.slane %v3119_v8, 1  ;;  %v3159_v10 = vsel %vm367_vm2, %v3114_v32, %v3158_v33 }
0x1ba4   :  { %v3093_v34 = vmul.f32 %v7006_v2, %v3084_v35  ;;  %v6591_v35 = vld [vmem:[%s6976_s8] ss:$0 sm:$0xff] }
0x1ba5   :  { %v3126_v63 = vadd.f32 %v3125_v19, %v3124_v61  ;;  %v3131_v57 = vadd.f32 %v3130_v31, %v3129_v41  ;;  %v3121_v29 = vadd.f32 %v3120_v16, %v3119_v8 }
0x1ba6   :  { %v3143_v20 = vsel %vm108_vm0, %v3093_v34, 0.0 }
0x1ba7   :  { %v3127_v36 = vrot.slane %v3126_v63, 1  ;;  %v3132_v27 = vrot.slane %v3131_v57, 2  ;;  %v3144_v9 = vrot.slane %v3143_v20, 4  ;;  %v3160_v25 = vsel %vm369_vm3, %v3121_v29, %v3159_v10 }
0x1ba9   :  { %v3133_v5 = vadd.f32 %v3132_v27, %v3131_v57  ;;  %v3145_v43 = vadd.f32 %v3144_v9, %v3143_v20  ;;  %v3128_v7 = vadd.f32 %v3127_v36, %v3126_v63  ;;  %v3319_v57 = vpop.permute.xlu1 %3318 }
0x1bab   :  { %v3134_v0 = vrot.slane %v3133_v5, 1  ;;  %v3146_v4 = vrot.slane %v3145_v43, 2  ;;  %v3161_v41 = vsel %vm371_vm4, %v3128_v7, %v3160_v25 }
0x1bad   :  { %v3135_v18 = vadd.f32 %v3134_v0, %v3133_v5  ;;  %v3147_v61 = vadd.f32 %v3146_v4, %v3145_v43 }
0x1baf   :  { %v3148_v38 = vrot.slane %v3147_v61, 1  ;;  %v3162_v62 = vsel %vm373_vm5, %v3135_v18, %v3161_v41 }
0x1bb0   :  { %v3163_v39 = vsel %vm375_vm6, %v3142_v28, %v3162_v62 }
0x1bb1   :  { %v3149_v8 = vadd.f32 %v3148_v38, %v3147_v61 }
0x1bb3   :  { %v3164_v19 = vsel %vm377_vm7, %v3149_v8, %v3163_v39 }
0x1bb4   :  { %4991 = vmatmul.mubr.msk.f32.vlgmr.msra.gmra.mrb[8].mxu0 %vm108_vm0, %v3164_v19 }
0x1bb5   :  { %5142 = vmatpush3.bf16.msra.mxu0 %v5884_v59  ;;  %5012 = vmatprep.mubr.msk.f32.mxu0 %vm5505_vm9, %v6995_v14 }
0x1bb6   :  { %5143 = vmatprep.subr.bf16.mxu0 %v6996_v12 }
0x1bb9   :  { %5145 = vmatpush3.bf16.msra.mxu0 %v5905_v3 }
0x1bba   :  { %5152 = vmatprep.subr.bf16.mxu0 %v6996_v12 }
0x1c87   :  { %v3233_v31 = vpop.f32.mrb[8].mxu0 }
0x1c88   :  { %v5174_v6 = vadd.f32 %v6591_v35, %v3233_v31  ;;  %v4992_v26 = vpop.f32.mrb[9].mxu0 }
0x1c8a   :  { %v3310_v2 = vadd.f32 %v5174_v6, %v6554_v11 }
0x1c8c   :  { %v4764_v34 = vmul.f32 -1.442695, %v3310_v2 }
0x1c8e   :  { %5320 = vpow2.f32 %v4764_v34 }
0x1c98   :  { %v5321_v40 = vpop.eup %5320 }
0x1c99   :  { %v3314_v16 = vadd.f32 1.0, %v5321_v40 }
0x1c9b   :  { %5322 = vrcp.f32 %v3314_v16 }
0x1ca5   :  { %v5323_v63 = vpop.eup %5322 }
0x1ca6   :  { %v3321_v20 = vmul.f32 %v5323_v63, %v3319_v57  ;;  %v3328_v9 = vsub.f32 1.0, %v5323_v63  ;;  %v3334_v11 = vmul.f32 %v5323_v63, %v6452_v56 }
0x1ca8   :  { %3323 = vrot.lane.b32.xlu1 %v3321_v20, %s5507_s26 }
0x1d1a   :  { %v3324_v53 = vpop.permute.xlu1 %3323 }
0x1d1b   :  { %v3326_v36 = vadd.f32 %v5174_v6, %v3324_v53 }
0x1d1d   :  { %5324 = vtanh.f32 %v3326_v36 }
0x1d27   :  { %v5325_v27 = vpop.eup %5324 }
0x1d28   :  { %3330 = vrot.lane.b32.xlu1 %v5325_v27, %s5508_s25 }
0x1d9a   :  { %v3331_v54 = vpop.permute.xlu1 %3330 }
0x1d9b   :  { %v3333_v32 = vmul.f32 %v3331_v54, %v3328_v9 }
0x1d9d   :  { %v6598_v60 = vadd.f32 %v3334_v11, %v3333_v32 }
0x1d9f   :  { %v3341_v29 = vmul.f32 %v6598_v60, %v5970_v13 }
0x1da1   :  { %3343 = vrot.lane.b32.xlu1 %v3341_v29, %s5508_s25 }
0x1e13   :  { %v3344_v5 = vpop.permute.xlu1 %3343 }
0x1e14   :  { %v3346_v43 = vsel %vm108_vm0, %v3344_v5, 0.0 }
0x1e15   :  { %3347 = vadd.xlane.f32.xlu1 %v3346_v43 }
0x1ea2   :  { %v3348_v7 = vpop.xlane.xlu1 %3347 }
0x1ea3   :  { %v3353_v33 = vrot.slane %v3348_v7, %v5746_v21  ;;  %v3357_v4 = vrot.slane %v3348_v7, %v5749_v22  ;;  %v3361_v17 = vrot.slane %v3348_v7, %v5752_v23  ;;  %v3365_v25 = vrot.slane %v3348_v7, %v5755_v24 }
0x1ea4   :  { %v3369_v61 = vrot.slane %v3348_v7, %v5761_v30  ;;  %v3373_v38 = vrot.slane %v3348_v7, %v5765_v37  ;;  %v3377_v28 = vrot.slane %v3348_v7, %v5769_v42  ;;  %v3381_v39 = vrot.slane %v3348_v7, %v5773_v55 }
0x1ea5   :  { %v3390_v0 = vadd.f32 %v3353_v33, %v5702_v45  ;;  %v3391_v56 = vadd.f32 %v3357_v4, %v5704_v46  ;;  %v3392_v10 = vadd.f32 %v3361_v17, %v5706_v47  ;;  %v3393_v18 = vadd.f32 %v3365_v25, %v5708_v48 }
0x1ea6   :  { %v3394_v41 = vadd.f32 %v3369_v61, %v5710_v49  ;;  %v3395_v62 = vadd.f32 %v3373_v38, %v5712_v50  ;;  %v3396_v8 = vadd.f32 %v3377_v28, %v5714_v51  ;;  %v3397_v19 = vadd.f32 %v3381_v39, %v5716_v52 }
0x1ea7   :  { %3407 = vperm.xlu0 %5205, %v3390_v0  }
0x1eab   :  { %3410 = vperm.xlu0 %5205, %v3391_v56  }
0x1eaf   :  { %3413 = vperm.xlu0 %5205, %v3392_v10  }
0x1eb3   :  { %3416 = vperm.xlu0 %5205, %v3393_v18  }
0x1eb7   :  { %3419 = vperm.xlu0 %5205, %v3394_v41  }
0x1ebb   :  { %3422 = vperm.xlu0 %5205, %v3395_v62  }
0x1ebf   :  { %3425 = vperm.xlu0 %5205, %v3396_v8  }
0x1ec3   :  { %3428 = vperm.xlu0 %5205, %v3397_v19  }
0x1f26   :  { %v3408_v31 = vpop.permute.xlu0 %3407 }
0x1f27   :  { %v3433_v57 = vrot.slane %v3408_v31, %v5700_v44 }
0x1f2a   :  { %v3411_v6 = vpop.permute.xlu0 %3410 }
0x1f2b   :  { %v3437_v16 = vrot.slane %v3411_v6, %v5700_v44 }
0x1f2d   :  { %v3462_v27 = vsel %vm365_vm1, %v3437_v16, %v3433_v57 }
0x1f2e   :  { %v3414_v26 = vpop.permute.xlu0 %3413 }
0x1f2f   :  { %v3441_v63 = vrot.slane %v3414_v26, %v5700_v44 }
0x1f31   :  { %v3463_v54 = vsel %vm367_vm2, %v3441_v63, %v3462_v27 }
0x1f32   :  { %v3417_v2 = vpop.permute.xlu0 %3416 }
0x1f33   :  { %v3445_v20 = vrot.slane %v3417_v2, %v5700_v44 }
0x1f35   :  { %v3464_v32 = vsel %vm369_vm3, %v3445_v20, %v3463_v54 }
0x1f36   :  { %v3420_v34 = vpop.permute.xlu0 %3419 }
0x1f37   :  { %v3449_v53 = vrot.slane %v3420_v34, %v5700_v44 }
0x1f39   :  { %v3465_v29 = vsel %vm371_vm4, %v3449_v53, %v3464_v32 }
0x1f3a   :  { %v3423_v40 = vpop.permute.xlu0 %3422 }
0x1f3b   :  { %v3453_v9 = vrot.slane %v3423_v40, %v5700_v44 }
0x1f3d   :  { %v3466_v43 = vsel %vm373_vm5, %v3453_v9, %v3465_v29 }
0x1f3e   :  { %v3426_v36 = vpop.permute.xlu0 %3425 }
0x1f3f   :  { %v3457_v11 = vrot.slane %v3426_v36, %v5700_v44 }
0x1f41   :  { %v3467_v33 = vsel %vm375_vm6, %v3457_v11, %v3466_v43 }
0x1f42   :  { %v3429_v5 = vpop.permute.xlu0 %3428 }
0x1f43   :  { %v3461_v7 = vrot.slane %v3429_v5, %v5700_v44 }
0x1f45   :  { %v3468_v4 = vsel %vm377_vm7, %v3461_v7, %v3467_v33 }
0x1f46   :  { %v3470_v17 = vsel %vm380_vm8, %v3468_v4, -inf }
0x1f47   :  { %3471 = vmax.xlane.f32.xlu0 %v3470_v17 }
0x1fd4   :  { %v3472_v25 = vpop.xlane.xlu0 %3471 }
0x1fd5   :  { %v3477_v61 = vrot.slane %v3472_v25, %v5746_v21  ;;  %v3481_v38 = vrot.slane %v3472_v25, %v5749_v22  ;;  %v3493_v28 = vrot.slane %v3472_v25, %v5761_v30  ;;  %v3485_v39 = vrot.slane %v3472_v25, %v5752_v23 }
0x1fd6   :  { %v3489_v40 = vrot.slane %v3472_v25, %v5755_v24  ;;  %v3497_v57 = vrot.slane %v3472_v25, %v5765_v37  ;;  %v3501_v36 = vrot.slane %v3472_v25, %v5769_v42 }
0x1fd7   :  { %v3514_v31 = vsub.f32 %v3390_v0, %v3477_v61  ;;  %v3515_v6 = vsub.f32 %v3391_v56, %v3481_v38  ;;  %v3518_v26 = vsub.f32 %v3394_v41, %v3493_v28  ;;  %v3516_v16 = vsub.f32 %v3392_v10, %v3485_v39 }
0x1fd8   :  { %v3517_v20 = vsub.f32 %v3393_v18, %v3489_v40  ;;  %v3519_v27 = vsub.f32 %v3395_v62, %v3497_v57  ;;  %v3505_v41 = vrot.slane %v3472_v25, %v5773_v55  ;;  %v3520_v10 = vsub.f32 %v3396_v8, %v3501_v36 }
0x1fd9   :  { %v3522_v2 = vmul.f32 1.442695, %v3514_v31  ;;  %v3524_v34 = vmul.f32 1.442695, %v3515_v6  ;;  %v3530_v63 = vmul.f32 1.442695, %v3518_v26 }
0x1fda   :  { %v3526_v53 = vmul.f32 1.442695, %v3516_v16  ;;  %v3528_v0 = vmul.f32 1.442695, %v3517_v20  ;;  %v3532_v9 = vmul.f32 1.442695, %v3519_v27  ;;  %v3521_v18 = vsub.f32 %v3397_v19, %v3505_v41 }
0x1fdb   :  { %5326 = vpow2.f32 %v3522_v2  ;;  %v3534_v62 = vmul.f32 1.442695, %v3520_v10 }
0x1fdc   :  { %5328 = vpow2.f32 %v3524_v34  ;;  %v3536_v8 = vmul.f32 1.442695, %v3521_v18 }
0x1fdd   :  { %5330 = vpow2.f32 %v3530_v63 }
0x1fde   :  { %5332 = vpow2.f32 %v3526_v53 }
0x1fdf   :  { %5334 = vpow2.f32 %v3528_v0 }
0x1fe0   :  { %5336 = vpow2.f32 %v3532_v9 }
0x1fe1   :  { %5338 = vpow2.f32 %v3534_v62 }
0x1fe2   :  { %5340 = vpow2.f32 %v3536_v8 }
0x1fe5   :  { %v6643_v56 = vpop.eup %5326 }
0x1fe6   :  { %3547 = vperm.xlu1 %5204, %v6643_v56   ;;  %v6647_v54 = vpop.eup %5328 }
0x1fe7   :  { %v6649_v11 = vpop.eup %5330 }
0x1fe8   :  { %3559 = vperm.xlu0 %5205, %v6649_v11   ;;  %v5333_v32 = vpop.eup %5332 }
0x1fe9   :  { %v5335_v29 = vpop.eup %5334 }
0x1fea   :  { %3550 = vperm.xlu1 %5204, %v6647_v54   ;;  %v5337_v5 = vpop.eup %5336 }
0x1feb   :  { %v5339_v43 = vpop.eup %5338 }
0x1fec   :  { %3337 = vrot.lane.b32.xlu0 %v6598_v60, %s5508_s25  ;;  %v5341_v7 = vpop.eup %5340 }
0x1fee   :  { %3553 = vperm.xlu1 %5204, %v5333_v32  }
0x1ff2   :  { %3556 = vperm.xlu1 %5204, %v5335_v29  }
0x1ff6   :  { %3562 = vperm.xlu1 %5204, %v5337_v5  }
0x1ffa   :  { %3565 = vperm.xlu1 %5204, %v5339_v43  }
0x1ffe   :  { %3568 = vperm.xlu1 %5204, %v5341_v7  }
0x2065   :  { %v3548_v33 = vpop.permute.xlu1 %3547 }
0x2066   :  { %v3573_v31 = vrot.slane %v3548_v33, %v5700_v44 }
0x2067   :  { %v3560_v19 = vpop.permute.xlu0 %3559 }
0x2068   :  { %v3589_v40 = vrot.slane %v3560_v19, %v5700_v44 }
0x2069   :  { %v3551_v4 = vpop.permute.xlu1 %3550 }
0x206a   :  { %v3577_v38 = vrot.slane %v3551_v4, %v5700_v44 }
0x206b   :  { %v3338_v17 = vpop.permute.xlu0 %3337 }
0x206c   :  { %3340 = vst.msk [vmem:[#allocation2 + $0x20] sm:$0xff] %vm108_vm0, %v3338_v17  ;;  %5024 = vmatmul.mubr.msk.f32.vlgmr.msra.gmra.mrb[10].mxu1 %vm108_vm0, %v3338_v17 }
0x206d   :  { %v3554_v25 = vpop.permute.xlu1 %3553  ;;  %5160 = vmatpush3.bf16.msra.mxu1 %v5828_v58  ;;  %5045 = vmatprep.mubr.msk.f32.mxu1 %vm5505_vm9, %v6995_v14  ;;  %v3602_v58 = vsel %vm365_vm1, %v3577_v38, %v3573_v31 }
0x206e   :  { %5161 = vmatprep.subr.bf16.mxu1 %v6996_v12  ;;  %v3581_v28 = vrot.slane %v3554_v25, %v5700_v44 }
0x2070   :  { %v3603_v26 = vsel %vm367_vm2, %v3581_v28, %v3602_v58 }
0x2071   :  { %v3557_v61 = vpop.permute.xlu1 %3556  ;;  %5163 = vmatpush3.bf16.msra.mxu1 %v5839_v15 }
0x2072   :  { %5164 = vmatprep.subr.bf16.mxu1 %v6996_v12  ;;  %v3585_v6 = vrot.slane %v3557_v61, %v5700_v44 }
0x2074   :  { %v3604_v34 = vsel %vm369_vm3, %v3585_v6, %v3603_v26 }
0x2075   :  { %v3563_v39 = vpop.permute.xlu1 %3562  ;;  %v3605_v63 = vsel %vm371_vm4, %v3589_v40, %v3604_v34 }
0x2076   :  { %v3593_v15 = vrot.slane %v3563_v39, %v5700_v44 }
0x2078   :  { %v3606_v20 = vsel %vm373_vm5, %v3593_v15, %v3605_v63 }
0x2079   :  { %v3566_v2 = vpop.permute.xlu1 %3565 }
0x207a   :  { %v3597_v16 = vrot.slane %v3566_v2, %v5700_v44 }
0x207c   :  { %v3607_v36 = vsel %vm375_vm6, %v3597_v16, %v3606_v20  ;;  %v6712_v16 = vld [vmem:[%s6968_s0 + $0x10] sm:$0xff] }
0x207d   :  { %v3569_v57 = vpop.permute.xlu1 %3568 }
0x207e   :  { %v3601_v53 = vrot.slane %v3569_v57, %v5700_v44  ;;  %v6718_v57 = vld [vmem:[%s6968_s0 + $0x30] sm:$0xff] }
0x2080   :  { %v3608_v27 = vsel %vm377_vm7, %v3601_v53, %v3607_v36 }
0x2081   :  { %v3610_v0 = vsel %vm380_vm8, %v3608_v27, 0.0 }
0x2082   :  { %3611 = vadd.xlane.f32.xlu1 %v3610_v0 }
0x210f   :  { %v3612_v41 = vpop.xlane.xlu1 %3611 }
0x2110   :  { %5342 = vrcp.f32 %v3612_v41 }
0x211a   :  { %v5343_v10 = vpop.eup %5342 }
0x211b   :  { %v3642_v9 = vrot.slane %v5343_v10, %v5769_v42  ;;  %v3618_v18 = vrot.slane %v5343_v10, %v5746_v21  ;;  %v3622_v33 = vrot.slane %v5343_v10, %v5749_v22  ;;  %v3626_v4 = vrot.slane %v5343_v10, %v5752_v23 }
0x211c   :  { %v3630_v25 = vrot.slane %v5343_v10, %v5755_v24  ;;  %v3634_v38 = vrot.slane %v5343_v10, %v5761_v30  ;;  %v3646_v39 = vrot.slane %v5343_v10, %v5773_v55 }
0x211d   :  { %v3661_v62 = vmul.f32 %v5339_v43, %v3642_v9  ;;  %v3655_v8 = vmul.f32 %v6643_v56, %v3618_v18  ;;  %v3656_v19 = vmul.f32 %v6647_v54, %v3622_v33  ;;  %v3657_v17 = vmul.f32 %v5333_v32, %v3626_v4 }
0x211e   :  { %v3658_v61 = vmul.f32 %v5335_v29, %v3630_v25  ;;  %v3659_v43 = vmul.f32 %v6649_v11, %v3634_v38  ;;  %v3638_v56 = vrot.slane %v5343_v10, %v5765_v37  ;;  %v3662_v54 = vmul.f32 %v5341_v7, %v3646_v39  ;;  %v6698_v11 = vld [vmem:[%s6968_s0] sm:$0xff]  ;;  %v6704_v7 = vld [vmem:[%s6968_s0 + $0x8] sm:$0xff]  ;;  %v6725_v10 = vld [vmem:[%s6968_s0 + $0x18] sm:$0xff] }
0x211f   :  { %3695 = vperm.xlu1 %5204, %v3661_v62   ;;  %3665 = vperm.xlu0 %5205, %v3655_v8   ;;  %v6733_v38 = vld [vmem:[%s6968_s0 + $0x20] sm:$0xff] }
0x2120   :  { %v3660_v28 = vmul.f32 %v5337_v5, %v3638_v56 }
0x2123   :  { %3670 = vperm.xlu0 %5205, %v3656_v19  }
0x2127   :  { %3675 = vperm.xlu0 %5205, %v3657_v17  }
0x212b   :  { %3680 = vperm.xlu0 %5205, %v3658_v61  }
0x212f   :  { %3685 = vperm.xlu0 %5205, %v3659_v43  }
0x2133   :  { %3690 = vperm.xlu0 %5205, %v3660_v28  }
0x2137   :  { %3700 = vperm.xlu0 %5205, %v3662_v54  }
0x213f   :  { %v3923_v31 = vpop.f32.mrb[10].mxu1 }
0x2140   :  { %v6691_v32 = vadd.f32 %v6551_v1, %v3923_v31  ;;  %v5025_v6 = vpop.f32.mrb[11].mxu1 }
0x2142   :  { %3935 = vrot.lane.b32.xlu0 %v6691_v32, %s5507_s26 }
0x219e   :  { %v3666_v29 = vpop.permute.xlu0 %3665  ;;  %v3696_v26 = vpop.permute.xlu1 %3695 }
0x219f   :  { %v3703_v5 = vmul.f32 %v6698_v11, %v3666_v29  ;;  %v3709_v20 = vmul.f32 %v6718_v57, %v3696_v26 }
0x21a1   :  { %v3711_v2 = vsel %vm108_vm0, %v3703_v5, 0.0  ;;  %v3753_v18 = vsel %vm108_vm0, %v3709_v20, 0.0 }
0x21a2   :  { %v3671_v58 = vpop.permute.xlu0 %3670  ;;  %v3712_v53 = vrot.slane %v3711_v2, 4  ;;  %v3754_v25 = vrot.slane %v3753_v18, 4 }
0x21a3   :  { %v3704_v1 = vmul.f32 %v6704_v7, %v3671_v58 }
0x21a4   :  { %v3713_v62 = vadd.f32 %v3712_v53, %v3711_v2  ;;  %v3755_v5 = vadd.f32 %v3754_v25, %v3753_v18 }
0x21a5   :  { %v3718_v34 = vsel %vm108_vm0, %v3704_v1, 0.0  ;;  %v6740_v1 = vld [vmem:[%s6968_s0 + $0x28] sm:$0xff] }
0x21a6   :  { %v3719_v15 = vrot.slane %v3718_v34, 4  ;;  %v3676_v40 = vpop.permute.xlu0 %3675  ;;  %v3714_v56 = vrot.slane %v3713_v62, 2  ;;  %7007 = vst [vmem:[#allocation14_spill] sm:$0xff] %v6740_v1 }
0x21a7   :  { %v3705_v63 = vmul.f32 %v6712_v16, %v3676_v40 }
0x21a8   :  { %v3720_v27 = vadd.f32 %v3719_v15, %v3718_v34  ;;  %v3715_v2 = vadd.f32 %v3714_v56, %v3713_v62 }
0x21a9   :  { %v3725_v36 = vsel %vm108_vm0, %v3705_v63, 0.0 }
0x21aa   :  { %v3726_v0 = vrot.slane %v3725_v36, 4  ;;  %v3681_v41 = vpop.permute.xlu0 %3680  ;;  %v3721_v19 = vrot.slane %v3720_v27, 2  ;;  %v3716_v18 = vrot.slane %v3715_v2, 1 }
0x21ab   :  { %v3706_v9 = vmul.f32 %v6725_v10, %v3681_v41  ;;  %v6747_v41 = vld [vmem:[%s6968_s0 + $0x38] sm:$0xff] }
0x21ac   :  { %v3727_v8 = vadd.f32 %v3726_v0, %v3725_v36  ;;  %v3722_v54 = vadd.f32 %v3721_v19, %v3720_v27  ;;  %v3756_v27 = vrot.slane %v3755_v5, 2  ;;  %7008 = vst [vmem:[#allocation15_spill] sm:$0xff] %v6747_v41 }
0x21ad   :  { %v3732_v33 = vsel %vm108_vm0, %v3706_v9, 0.0 }
0x21ae   :  { %v3733_v4 = vrot.slane %v3732_v33, 4  ;;  %v3686_v17 = vpop.permute.xlu0 %3685  ;;  %v3728_v61 = vrot.slane %v3727_v8, 2  ;;  %v3723_v63 = vrot.slane %v3722_v54, 1 }
0x21af   :  { %v3707_v43 = vmul.f32 %v6733_v38, %v3686_v17 }
0x21b0   :  { %v3734_v28 = vadd.f32 %v3733_v4, %v3732_v33  ;;  %v3729_v58 = vadd.f32 %v3728_v61, %v3727_v8  ;;  %v3724_v4 = vadd.f32 %v3723_v63, %v3722_v54 }
0x21b1   :  { %v3739_v39 = vsel %vm108_vm0, %v3707_v43, 0.0  ;;  %v3757_v43 = vadd.f32 %v3756_v27, %v3755_v5 }
0x21b2   :  { %v3735_v31 = vrot.slane %v3734_v28, 2  ;;  %v3740_v6 = vrot.slane %v3739_v39, 4  ;;  %v3691_v29 = vpop.permute.xlu0 %3690  ;;  %v3730_v0 = vrot.slane %v3729_v58, 1 }
0x21b3   :  { %v3708_v26 = vmul.f32 %v6740_v1, %v3691_v29  ;;  %v3758_v1 = vrot.slane %v3757_v43, 1 }
0x21b4   :  { %v3736_v34 = vadd.f32 %v3735_v31, %v3734_v28  ;;  %v3741_v15 = vadd.f32 %v3740_v6, %v3739_v39  ;;  %v3731_v56 = vadd.f32 %v3730_v0, %v3729_v58  ;;  %v3717_v28 = vadd.f32 %v3716_v18, %v3715_v2 }
0x21b5   :  { %v3746_v40 = vsel %vm108_vm0, %v3708_v26, 0.0  ;;  %v3759_v2 = vadd.f32 %v3758_v1, %v3757_v43 }
0x21b6   :  { %v3742_v20 = vrot.slane %v3741_v15, 2  ;;  %v3747_v53 = vrot.slane %v3746_v40, 4  ;;  %v3701_v36 = vpop.permute.xlu0 %3700  ;;  %v3737_v8 = vrot.slane %v3736_v34, 1  ;;  %v3775_v26 = vsel %vm365_vm1, %v3724_v4, %v3717_v28 }
0x21b7   :  { %v3710_v9 = vmul.f32 %v6747_v41, %v3701_v36 }
0x21b8   :  { %v3743_v62 = vadd.f32 %v3742_v20, %v3741_v15  ;;  %v3748_v33 = vadd.f32 %v3747_v53, %v3746_v40  ;;  %v3738_v39 = vadd.f32 %v3737_v8, %v3736_v34  ;;  %v3776_v15 = vsel %vm367_vm2, %v3731_v56, %v3775_v26 }
0x21b9   :  { %v3760_v19 = vsel %vm108_vm0, %v3710_v9, 0.0 }
0x21ba   :  { %v3744_v17 = vrot.slane %v3743_v62, 1  ;;  %v3749_v25 = vrot.slane %v3748_v33, 2  ;;  %v3761_v61 = vrot.slane %v3760_v19, 4  ;;  %v3777_v40 = vsel %vm369_vm3, %v3738_v39, %v3776_v15 }
0x21bc   :  { %v3750_v31 = vadd.f32 %v3749_v25, %v3748_v33  ;;  %v3762_v6 = vadd.f32 %v3761_v61, %v3760_v19  ;;  %v3745_v29 = vadd.f32 %v3744_v17, %v3743_v62 }
0x21be   :  { %v3751_v36 = vrot.slane %v3750_v31, 1  ;;  %v3763_v41 = vrot.slane %v3762_v6, 2  ;;  %v3778_v20 = vsel %vm371_vm4, %v3745_v29, %v3777_v40 }
0x21c0   :  { %v3752_v54 = vadd.f32 %v3751_v36, %v3750_v31  ;;  %v3764_v63 = vadd.f32 %v3763_v41, %v3762_v6 }
0x21c2   :  { %v3765_v5 = vrot.slane %v3764_v63, 1  ;;  %v3779_v58 = vsel %vm373_vm5, %v3752_v54, %v3778_v20 }
0x21c3   :  { %v3780_v53 = vsel %vm375_vm6, %v3759_v2, %v3779_v58 }
0x21c4   :  { %v3766_v34 = vadd.f32 %v3765_v5, %v3764_v63 }
0x21c6   :  { %v3781_v27 = vsel %vm377_vm7, %v3766_v34, %v3780_v53 }
0x21c7   :  { %5013 = vmatmul.mubr.msk.f32.vlgmr.msra.gmra.mrb[10].mxu0 %vm108_vm0, %v3781_v27 }
0x21c8   :  { %5154 = vmatpush3.bf16.msra.mxu0 %v5884_v59  ;;  %5034 = vmatprep.mubr.msk.f32.mxu0 %vm5505_vm9, %v6995_v14  ;;  %v3936_v59 = vpop.permute.xlu0 %3935 }
0x21c9   :  { %5155 = vmatprep.subr.bf16.mxu0 %v6996_v12 }
0x21cc   :  { %5157 = vmatpush3.bf16.msra.mxu0 %v5905_v3 }
0x229a   :  { %v3850_v0 = vpop.f32.mrb[10].mxu0 }
0x229b   :  { %v5175_v41 = vadd.f32 %v6591_v35, %v3850_v0  ;;  %v5014_v1 = vpop.f32.mrb[11].mxu0 }
0x229d   :  { %v3927_v9 = vadd.f32 %v5175_v41, %v6691_v32 }
0x229f   :  { %v4767_v18 = vmul.f32 -1.442695, %v3927_v9 }
0x22a1   :  { %5344 = vpow2.f32 %v4767_v18 }
0x22ab   :  { %v5345_v8 = vpop.eup %5344 }
0x22ac   :  { %v3931_v62 = vadd.f32 1.0, %v5345_v8 }
0x22ae   :  { %5346 = vrcp.f32 %v3931_v62 }
0x22b8   :  { %v5347_v33 = vpop.eup %5346 }
0x22b9   :  { %v3938_v19 = vmul.f32 %v5347_v33, %v3936_v59  ;;  %v3945_v35 = vsub.f32 1.0, %v5347_v33  ;;  %v3951_v32 = vmul.f32 %v5347_v33, %v6598_v60 }
0x22bb   :  { %3940 = vrot.lane.b32.xlu0 %v3938_v19, %s5507_s26 }
0x232d   :  { %v3941_v4 = vpop.permute.xlu0 %3940 }
0x232e   :  { %v3943_v17 = vadd.f32 %v5175_v41, %v3941_v4 }
0x2330   :  { %5348 = vtanh.f32 %v3943_v17 }
0x233a   :  { %v5349_v3 = vpop.eup %5348 }
0x233b   :  { %3947 = vrot.lane.b32.xlu0 %v5349_v3, %s5508_s25 }
0x23ad   :  { %v3948_v25 = vpop.permute.xlu0 %3947 }
0x23ae   :  { %v3950_v61 = vmul.f32 %v3948_v25, %v3945_v35 }
0x23b0   :  { %v6769_v43 = vadd.f32 %v3951_v32, %v3950_v61 }
0x23b2   :  { %v3958_v56 = vmul.f32 %v6769_v43, %v5970_v13 }
0x23b4   :  { %3960 = vrot.lane.b32.xlu1 %v3958_v56, %s5508_s25 }
0x2426   :  { %v3961_v28 = vpop.permute.xlu1 %3960 }
0x2427   :  { %v3963_v39 = vsel %vm108_vm0, %v3961_v28, 0.0 }
0x2428   :  { %3964 = vadd.xlane.f32.xlu0 %v3963_v39 }
0x24b5   :  { %v3965_v31 = vpop.xlane.xlu0 %3964 }
0x24b6   :  { %v3998_v6 = vrot.slane %v3965_v31, %v5773_v55  ;;  %v3970_v29 = vrot.slane %v3965_v31, %v5746_v21  ;;  %v3974_v36 = vrot.slane %v3965_v31, %v5749_v22  ;;  %v3978_v15 = vrot.slane %v3965_v31, %v5752_v23 }
0x24b7   :  { %v3982_v54 = vrot.slane %v3965_v31, %v5755_v24  ;;  %v3986_v63 = vrot.slane %v3965_v31, %v5761_v30  ;;  %v3990_v20 = vrot.slane %v3965_v31, %v5765_v37  ;;  %v3994_v5 = vrot.slane %v3965_v31, %v5769_v42 }
0x24b8   :  { %v6778_v26 = vadd.f32 %v3998_v6, %v5716_v52  ;;  %v4007_v60 = vadd.f32 %v3970_v29, %v5702_v45  ;;  %v4008_v13 = vadd.f32 %v3974_v36, %v5704_v46  ;;  %v4009_v40 = vadd.f32 %v3978_v15, %v5706_v47 }
0x24b9   :  { %v4010_v52 = vadd.f32 %v3982_v54, %v5708_v48  ;;  %v4011_v45 = vadd.f32 %v3986_v63, %v5710_v49  ;;  %v4012_v46 = vadd.f32 %v3990_v20, %v5712_v50  ;;  %v4013_v47 = vadd.f32 %v3994_v5, %v5714_v51 }
0x24ba   :  { %4045 = vperm.xlu0 %5205, %v6778_v26   ;;  %4024 = vperm.xlu1 %5204, %v4007_v60  }
0x24be   :  { %4027 = vperm.xlu1 %5204, %v4008_v13  }
0x24c2   :  { %4030 = vperm.xlu1 %5204, %v4009_v40  }
0x24c6   :  { %4033 = vperm.xlu1 %5204, %v4010_v52  }
0x24ca   :  { %4036 = vperm.xlu1 %5204, %v4011_v45  }
0x24ce   :  { %4039 = vperm.xlu1 %5204, %v4012_v46  }
0x24d2   :  { %4042 = vperm.xlu1 %5204, %v4013_v47  }
0x2539   :  { %v4025_v58 = vpop.permute.xlu1 %4024  ;;  %v4046_v18 = vpop.permute.xlu0 %4045 }
0x253a   :  { %v4050_v0 = vrot.slane %v4025_v58, %v5700_v44  ;;  %v4078_v4 = vrot.slane %v4046_v18, %v5700_v44  ;;  %v4583_v18 = vld [vmem:[#allocation9 + $0x8] sm:$0xff] }
0x253d   :  { %v4028_v2 = vpop.permute.xlu1 %4027 }
0x253e   :  { %v4054_v27 = vrot.slane %v4028_v2, %v5700_v44 }
0x2540   :  { %v4079_v9 = vsel %vm365_vm1, %v4054_v27, %v4050_v0 }
0x2541   :  { %v4031_v34 = vpop.permute.xlu1 %4030 }
0x2542   :  { %v4058_v49 = vrot.slane %v4031_v34, %v5700_v44 }
0x2544   :  { %v4080_v8 = vsel %vm367_vm2, %v4058_v49, %v4079_v9 }
0x2545   :  { %v4034_v48 = vpop.permute.xlu1 %4033 }
0x2546   :  { %v4062_v41 = vrot.slane %v4034_v48, %v5700_v44 }
0x2548   :  { %v4081_v62 = vsel %vm369_vm3, %v4062_v41, %v4080_v8 }
0x2549   :  { %v4037_v53 = vpop.permute.xlu1 %4036 }
0x254a   :  { %v4066_v1 = vrot.slane %v4037_v53, %v5700_v44 }
0x254c   :  { %v4082_v59 = vsel %vm371_vm4, %v4066_v1, %v4081_v62 }
0x254d   :  { %v4040_v50 = vpop.permute.xlu1 %4039 }
0x254e   :  { %v4070_v51 = vrot.slane %v4040_v50, %v5700_v44 }
0x2550   :  { %v4083_v17 = vsel %vm373_vm5, %v4070_v51, %v4082_v59  ;;  %v4582_v51 = vld [vmem:[#allocation9] sm:$0xff]  ;;  %v4584_v59 = vld [vmem:[#allocation9 + $0x10] sm:$0xff] }
0x2551   :  { %v4043_v33 = vpop.permute.xlu1 %4042 }
0x2552   :  { %v4074_v19 = vrot.slane %v4043_v33, %v5700_v44  ;;  %v5165_v33 = vpack.c.bf16 %v4583_v18, %v4582_v51 }
0x2554   :  { %v4084_v3 = vsel %vm375_vm6, %v4074_v19, %v4083_v17  ;;  %v4585_v19 = vld [vmem:[#allocation9 + $0x18] sm:$0xff] }
0x2555   :  { %v4085_v35 = vsel %vm377_vm7, %v4078_v4, %v4084_v3  ;;  %v5168_v3 = vpack.c.bf16 %v4585_v19, %v4584_v59 }
0x2556   :  { %v4087_v25 = vsel %vm380_vm8, %v4085_v35, -inf }
0x2557   :  { %4088 = vmax.xlane.f32.xlu1 %v4087_v25 }
0x25e4   :  { %v4089_v32 = vpop.xlane.xlu1 %4088 }
0x25e5   :  { %v4094_v61 = vrot.slane %v4089_v32, %v5746_v21  ;;  %v4098_v56 = vrot.slane %v4089_v32, %v5749_v22  ;;  %v4110_v28 = vrot.slane %v4089_v32, %v5761_v30  ;;  %v4102_v39 = vrot.slane %v4089_v32, %v5752_v23 }
0x25e6   :  { %v4106_v54 = vrot.slane %v4089_v32, %v5755_v24  ;;  %v4114_v5 = vrot.slane %v4089_v32, %v5765_v37  ;;  %v4118_v34 = vrot.slane %v4089_v32, %v5769_v42 }
0x25e7   :  { %v4131_v31 = vsub.f32 %v4007_v60, %v4094_v61  ;;  %v4132_v6 = vsub.f32 %v4008_v13, %v4098_v56  ;;  %v4135_v29 = vsub.f32 %v4011_v45, %v4110_v28  ;;  %v4133_v63 = vsub.f32 %v4009_v40, %v4102_v39  ;;  %v4575_v61 = vld [vmem:[#allocation2] sm:$0xff] }
0x25e8   :  { %v4134_v58 = vsub.f32 %v4010_v52, %v4106_v54  ;;  %v4136_v48 = vsub.f32 %v4012_v46, %v4114_v5  ;;  %v4122_v45 = vrot.slane %v4089_v32, %v5773_v55  ;;  %v4137_v40 = vsub.f32 %v4013_v47, %v4118_v34  ;;  %v4577_v5 = vld [vmem:[#allocation2 + $0x10] sm:$0xff] }
0x25e9   :  { %v4139_v36 = vmul.f32 1.442695, %v4131_v31  ;;  %v4141_v15 = vmul.f32 1.442695, %v4132_v6  ;;  %v4147_v20 = vmul.f32 1.442695, %v4135_v29 }
0x25ea   :  { %v4143_v2 = vmul.f32 1.442695, %v4133_v63  ;;  %v4145_v60 = vmul.f32 1.442695, %v4134_v58  ;;  %v4149_v53 = vmul.f32 1.442695, %v4136_v48  ;;  %v4138_v52 = vsub.f32 %v6778_v26, %v4122_v45 }
0x25eb   :  { %5350 = vpow2.f32 %v4139_v36  ;;  %v4151_v46 = vmul.f32 1.442695, %v4137_v40  ;;  %v4576_v6 = vld [vmem:[#allocation2 + $0x8] sm:$0xff]  ;;  %v4578_v45 = vld [vmem:[#allocation2 + $0x18] sm:$0xff] }
0x25ec   :  { %5352 = vpow2.f32 %v4141_v15  ;;  %v4153_v47 = vmul.f32 1.442695, %v4138_v52 }
0x25ed   :  { %5354 = vpow2.f32 %v4147_v20 }
0x25ee   :  { %5356 = vpow2.f32 %v4143_v2 }
0x25ef   :  { %5358 = vpow2.f32 %v4145_v60 }
0x25f0   :  { %5360 = vpow2.f32 %v4149_v53  ;;  %v4579_v53 = vld [vmem:[#allocation2 + $0x20] sm:$0xff] }
0x25f1   :  { %5362 = vpow2.f32 %v4151_v46 }
0x25f2   :  { %5364 = vpow2.f32 %v4153_v47 }
0x25f5   :  { %v6817_v13 = vpop.eup %5350 }
0x25f6   :  { %4164 = vperm.xlu0 %5205, %v6817_v13   ;;  %v6821_v27 = vpop.eup %5352 }
0x25f7   :  { %v6823_v49 = vpop.eup %5354 }
0x25f8   :  { %4176 = vperm.xlu1 %5204, %v6823_v49   ;;  %v6828_v0 = vpop.eup %5356 }
0x25f9   :  { %v6833_v41 = vpop.eup %5358 }
0x25fa   :  { %4167 = vperm.xlu0 %5205, %v6821_v27   ;;  %v6836_v50 = vpop.eup %5360 }
0x25fb   :  { %v6839_v26 = vpop.eup %5362 }
0x25fc   :  { %3954 = vrot.lane.b32.xlu1 %v6769_v43, %s5508_s25  ;;  %v6842_v1 = vpop.eup %5364 }
0x25fe   :  { %4170 = vperm.xlu0 %5205, %v6828_v0  }
0x2602   :  { %4173 = vperm.xlu0 %5205, %v6833_v41  }
0x2606   :  { %4179 = vperm.xlu0 %5205, %v6836_v50  }
0x260a   :  { %4182 = vperm.xlu0 %5205, %v6839_v26  }
0x260e   :  { %4185 = vperm.xlu0 %5205, %v6842_v1  }
0x2675   :  { %v4165_v9 = vpop.permute.xlu0 %4164 }
0x2676   :  { %v4190_v28 = vrot.slane %v4165_v9, %v5700_v44 }
0x2677   :  { %v4177_v8 = vpop.permute.xlu1 %4176 }
0x2678   :  { %v4206_v54 = vrot.slane %v4177_v8, %v5700_v44 }
0x2679   :  { %v4168_v62 = vpop.permute.xlu0 %4167 }
0x267a   :  { %v4194_v25 = vrot.slane %v4168_v62, %v5700_v44 }
0x267b   :  { %v3955_v4 = vpop.permute.xlu1 %3954 }
0x267c   :  { %3957 = vst.msk [vmem:[#allocation2 + $0x28] sm:$0xff] %vm108_vm0, %v3955_v4  ;;  %5046 = vmatmul.mubr.msk.f32.vlgmr.msra.gmra.mrb[12].mxu1 %vm108_vm0, %v3955_v4  ;;  %v4219_v31 = vsel %vm365_vm1, %v4194_v25, %v4190_v28 }
0x267d   :  { %v4171_v17 = vpop.permute.xlu0 %4170  ;;  %5166 = vmatpush3.bf16.msra.mxu1 %v5165_v33  ;;  %5056 = vmatprep.mubr.msk.f32.mxu1 %vm5505_vm9, %v6995_v14 }
0x267e   :  { %5167 = vmatprep.subr.bf16.mxu1 %v6996_v12  ;;  %v4198_v32 = vrot.slane %v4171_v17, %v5700_v44 }
0x2680   :  { %v4220_v12 = vsel %vm367_vm2, %v4198_v32, %v4219_v31 }
0x2681   :  { %v4174_v35 = vpop.permute.xlu0 %4173  ;;  %5169 = vmatpush3.bf16.msra.mxu1 %v5168_v3 }
0x2682   :  { %v4202_v39 = vrot.slane %v4174_v35, %v5700_v44 }
0x2684   :  { %5057 = vmatmul.mubr.msk.f32.vlgmr.msra.gmra.mrb[14].mxu1 %vm108_vm0, %v4575_v61  ;;  %v4221_v36 = vsel %vm369_vm3, %v4202_v39, %v4220_v12 }
0x2685   :  { %v4180_v56 = vpop.permute.xlu0 %4179  ;;  %5059 = vmatprep.mubr.msk.f32.mxu1 %vm5505_vm9, %v6995_v14  ;;  %v4222_v20 = vsel %vm371_vm4, %v4206_v54, %v4221_v36 }
0x2686   :  { %v4210_v15 = vrot.slane %v4180_v56, %v5700_v44 }
0x2688   :  { %5060 = vmatmul.mubr.msk.f32.gmra.mrb[16].mxu1 %vm108_vm0, %v4576_v6  ;;  %v4223_v2 = vsel %vm373_vm5, %v4210_v15, %v4222_v20 }
0x2689   :  { %v4183_v29 = vpop.permute.xlu0 %4182  ;;  %5062 = vmatprep.mubr.msk.f32.mxu1 %vm5505_vm9, %v6995_v14 }
0x268a   :  { %v4214_v63 = vrot.slane %v4183_v29, %v5700_v44 }
0x268c   :  { %5063 = vmatmul.mubr.msk.f32.gmra.mrb[18].mxu1 %vm108_vm0, %v4577_v5  ;;  %v4224_v48 = vsel %vm375_vm6, %v4214_v63, %v4223_v2 }
0x268d   :  { %v4186_v58 = vpop.permute.xlu0 %4185  ;;  %5065 = vmatprep.mubr.msk.f32.mxu1 %vm5505_vm9, %v6995_v14 }
0x268e   :  { %v4218_v34 = vrot.slane %v4186_v58, %v5700_v44  ;;  %v4580_v44 = vld [vmem:[#allocation2 + $0x28] sm:$0xff] }
0x2690   :  { %v4225_v60 = vsel %vm377_vm7, %v4218_v34, %v4224_v48  ;;  %5066 = vmatmul.mubr.msk.f32.gmra.mrb[20].mxu1 %vm108_vm0, %v4578_v45 }
0x2691   :  { %v4227_v40 = vsel %vm380_vm8, %v4225_v60, 0.0  ;;  %5068 = vmatprep.mubr.msk.f32.mxu1 %vm5505_vm9, %v6995_v14 }
0x2692   :  { %4228 = vadd.xlane.f32.xlu0 %v4227_v40 }
0x2694   :  { %5069 = vmatmul.mubr.msk.f32.gmra.mrb[22].mxu1 %vm108_vm0, %v4579_v53 }
0x2695   :  { %5071 = vmatprep.mubr.msk.f32.mxu1 %vm5505_vm9, %v6995_v14 }
0x2698   :  { %5072 = vmatmul.mubr.msk.f32.gmra.mrb[24].mxu1 %vm108_vm0, %v4580_v44 }
0x2699   :  { %5074 = vmatprep.mubr.msk.f32.mxu1 %vm5505_vm9, %v6995_v14 }
0x271f   :  { %v4229_v52 = vpop.xlane.xlu0 %4228 }
0x2720   :  { %5366 = vrcp.f32 %v4229_v52 }
0x272a   :  { %v5367_v46 = vpop.eup %5366 }
0x272b   :  { %v4259_v47 = vrot.slane %v5367_v46, %v5769_v42  ;;  %v4235_v9 = vrot.slane %v5367_v46, %v5746_v21  ;;  %v4239_v8 = vrot.slane %v5367_v46, %v5749_v22  ;;  %v4243_v33 = vrot.slane %v5367_v46, %v5752_v23 }
0x272c   :  { %v4247_v59 = vrot.slane %v5367_v46, %v5755_v24  ;;  %v4251_v42 = vrot.slane %v5367_v46, %v5761_v30  ;;  %v4255_v22 = vrot.slane %v5367_v46, %v5765_v37  ;;  %v4263_v23 = vrot.slane %v5367_v46, %v5773_v55  ;;  %v6910_v37 = vld [vmem:[%s6979_s11] ss:$0 sm:$0xff] }
0x272d   :  { %v4278_v51 = vmul.f32 %v6839_v26, %v4259_v47  ;;  %v4272_v18 = vmul.f32 %v6817_v13, %v4235_v9  ;;  %v4273_v62 = vmul.f32 %v6821_v27, %v4239_v8  ;;  %v4274_v14 = vmul.f32 %v6828_v0, %v4243_v33 }
0x272e   :  { %v4275_v21 = vmul.f32 %v6833_v41, %v4247_v59  ;;  %v4276_v13 = vmul.f32 %v6823_v49, %v4251_v42  ;;  %v4277_v27 = vmul.f32 %v6836_v50, %v4255_v22  ;;  %v4279_v0 = vmul.f32 %v6842_v1, %v4263_v23  ;;  %v5402_v41 = vld [vmem:[%s6977_s9] ss:$0 sm:$0xff] }
0x272f   :  { %4312 = vperm.xlu0 %5205, %v4278_v51   ;;  %4282 = vperm.xlu1 %5204, %v4272_v18  }
0x2733   :  { %4287 = vperm.xlu1 %5204, %v4273_v62  }
0x2737   :  { %4292 = vperm.xlu1 %5204, %v4274_v14  }
0x273b   :  { %4297 = vperm.xlu1 %5204, %v4275_v21  }
0x273f   :  { %4302 = vperm.xlu1 %5204, %v4276_v13  }
0x2743   :  { %4307 = vperm.xlu1 %5204, %v4277_v27   ;;  %v7009_v27 = vld [vmem:[#allocation14_spill] sm:$0xff] }
0x2747   :  { %4317 = vperm.xlu1 %5204, %v4279_v0  }
0x274f   :  { %v4540_v24 = vpop.f32.mrb[12].mxu1 }
0x2750   :  { %v6903_v30 = vadd.f32 %v5402_v41, %v4540_v24  ;;  %v5047_v26 = vpop.f32.mrb[13].mxu1 }
0x2752   :  { %4552 = vrot.lane.b32.xlu1 %v6903_v30, %s5507_s26 }
0x2757   :  { %v4680_v55 = vpop.f32.mrb[14].mxu1 }
0x2758   :  { %v4681_v49 = vadd.f32 %v6910_v37, %v4680_v55  ;;  %v5058_v50 = vpop.f32.mrb[15].mxu1 }
0x275a   :  { %4714 = vst [vmem:[#allocation10] sm:$0xff] %v4681_v49 }
0x275b   :  { %v4685_v1 = vpop.f32.mrb[16].mxu1 }
0x275c   :  { %v4686_v19 = vadd.f32 %v6910_v37, %v4685_v1  ;;  %v5061_v4 = vpop.f32.mrb[17].mxu1 }
0x275d   :  { %v7010_v4 = vld [vmem:[#allocation15_spill] sm:$0xff] }
0x275e   :  { %4715 = vst [vmem:[#allocation10 + $0x8] sm:$0xff] %v4686_v19 }
0x275f   :  { %v4690_v17 = vpop.f32.mrb[18].mxu1 }
0x2760   :  { %v4691_v3 = vadd.f32 %v6910_v37, %v4690_v17  ;;  %v5064_v35 = vpop.f32.mrb[19].mxu1 }
0x2762   :  { %4716 = vst [vmem:[#allocation10 + $0x10] sm:$0xff] %v4691_v3 }
0x2763   :  { %v4695_v25 = vpop.f32.mrb[20].mxu1 }
0x2764   :  { %v4696_v32 = vadd.f32 %v6910_v37, %v4695_v25  ;;  %v5067_v61 = vpop.f32.mrb[21].mxu1 }
0x2766   :  { %4717 = vst [vmem:[#allocation10 + $0x18] sm:$0xff] %v4696_v32 }
0x2767   :  { %v4700_v56 = vpop.f32.mrb[22].mxu1 }
0x2768   :  { %v4701_v28 = vadd.f32 %v6910_v37, %v4700_v56  ;;  %v5070_v39 = vpop.f32.mrb[23].mxu1 }
0x276a   :  { %4718 = vst [vmem:[#allocation10 + $0x20] sm:$0xff] %v4701_v28 }
0x276b   :  { %v4705_v31 = vpop.f32.mrb[24].mxu1 }
0x276c   :  { %v4706_v12 = vadd.f32 %v6910_v37, %v4705_v31  ;;  %v5073_v6 = vpop.f32.mrb[25].mxu1 }
0x276e   :  { %4719 = vst [vmem:[#allocation10 + $0x28] sm:$0xff] %v4706_v12 }
0x27ae   :  { %v4283_v29 = vpop.permute.xlu1 %4282  ;;  %v4313_v63 = vpop.permute.xlu0 %4312 }
0x27af   :  { %v4320_v36 = vmul.f32 %v6698_v11, %v4283_v29  ;;  %v4326_v48 = vmul.f32 %v6718_v57, %v4313_v63 }
0x27b1   :  { %v4328_v20 = vsel %vm108_vm0, %v4320_v36, 0.0 }
0x27b2   :  { %v4288_v15 = vpop.permute.xlu1 %4287  ;;  %v4329_v60 = vrot.slane %v4328_v20, 4 }
0x27b3   :  { %v4321_v54 = vmul.f32 %v6704_v7, %v4288_v15  ;;  %v4370_v7 = vsel %vm108_vm0, %v4326_v48, 0.0 }
0x27b4   :  { %v4330_v52 = vadd.f32 %v4329_v60, %v4328_v20 }
0x27b5   :  { %v4335_v5 = vsel %vm108_vm0, %v4321_v54, 0.0 }
0x27b6   :  { %v4336_v58 = vrot.slane %v4335_v5, 4  ;;  %v4293_v2 = vpop.permute.xlu1 %4292  ;;  %v4331_v62 = vrot.slane %v4330_v52, 2 }
0x27b7   :  { %v4322_v34 = vmul.f32 %v6712_v16, %v4293_v2  ;;  %v4371_v16 = vrot.slane %v4370_v7, 4 }
0x27b8   :  { %v4337_v40 = vadd.f32 %v4336_v58, %v4335_v5  ;;  %v4332_v0 = vadd.f32 %v4331_v62, %v4330_v52 }
0x27b9   :  { %v4342_v45 = vsel %vm108_vm0, %v4322_v34, 0.0  ;;  %v4372_v13 = vadd.f32 %v4371_v16, %v4370_v7 }
0x27ba   :  { %v4343_v53 = vrot.slane %v4342_v45, 4  ;;  %v4298_v11 = vpop.permute.xlu1 %4297  ;;  %v4338_v9 = vrot.slane %v4337_v40, 2  ;;  %v4333_v3 = vrot.slane %v4332_v0, 1 }
0x27bb   :  { %v4323_v44 = vmul.f32 %v6725_v10, %v4298_v11  ;;  %v4373_v1 = vrot.slane %v4372_v13, 2 }
0x27bc   :  { %v4344_v46 = vadd.f32 %v4343_v53, %v4342_v45  ;;  %v4339_v59 = vadd.f32 %v4338_v9, %v4337_v40  ;;  %v4334_v29 = vadd.f32 %v4333_v3, %v4332_v0  ;;  %v5403_v9 = vld [vmem:[%s6976_s8] ss:$0 sm:$0xff]  ;;  %s5510_s8 = smov [#allocation10]  }
0x27bd   :  { %v4349_v47 = vsel %vm108_vm0, %v4323_v44, 0.0  ;;  %v4374_v12 = vadd.f32 %v4373_v1, %v4372_v13 }
0x27be   :  { %v4350_v51 = vrot.slane %v4349_v47, 4  ;;  %v4303_v18 = vpop.permute.xlu1 %4302  ;;  %v4345_v8 = vrot.slane %v4344_v46, 2  ;;  %v4340_v55 = vrot.slane %v4339_v59, 1 }
0x27bf   :  { %v4324_v57 = vmul.f32 %v6733_v38, %v4303_v18  ;;  %v4375_v2 = vrot.slane %v4374_v12, 1 }
0x27c0   :  { %v4351_v33 = vadd.f32 %v4350_v51, %v4349_v47  ;;  %v4346_v22 = vadd.f32 %v4345_v8, %v4344_v46  ;;  %v4341_v56 = vadd.f32 %v4340_v55, %v4339_v59 }
0x27c1   :  { %v4356_v14 = vsel %vm108_vm0, %v4324_v57, 0.0  ;;  %v4376_v44 = vadd.f32 %v4375_v2, %v4374_v12 }
0x27c2   :  { %v4352_v21 = vrot.slane %v4351_v33, 2  ;;  %v4357_v10 = vrot.slane %v4356_v14, 4  ;;  %v4308_v42 = vpop.permute.xlu1 %4307  ;;  %v4347_v19 = vrot.slane %v4346_v22, 1  ;;  %v4392_v20 = vsel %vm365_vm1, %v4341_v56, %v4334_v29 }
0x27c3   :  { %v4325_v23 = vmul.f32 %v7009_v27, %v4308_v42 }
0x27c4   :  { %v4353_v24 = vadd.f32 %v4352_v21, %v4351_v33  ;;  %v4358_v41 = vadd.f32 %v4357_v10, %v4356_v14  ;;  %v4348_v6 = vadd.f32 %v4347_v19, %v4346_v22 }
0x27c5   :  { %v4363_v26 = vsel %vm108_vm0, %v4325_v23, 0.0 }
0x27c6   :  { %v4359_v49 = vrot.slane %v4358_v41, 2  ;;  %v4364_v38 = vrot.slane %v4363_v26, 4  ;;  %v4318_v50 = vpop.permute.xlu1 %4317  ;;  %v4354_v35 = vrot.slane %v4353_v24, 1  ;;  %v4393_v34 = vsel %vm367_vm2, %v4348_v6, %v4392_v20 }
0x27c7   :  { %v4327_v17 = vmul.f32 %v7010_v4, %v4318_v50 }
0x27c8   :  { %v4360_v25 = vadd.f32 %v4359_v49, %v4358_v41  ;;  %v4365_v32 = vadd.f32 %v4364_v38, %v4363_v26  ;;  %v4355_v36 = vadd.f32 %v4354_v35, %v4353_v24 }
0x27c9   :  { %v4377_v61 = vsel %vm108_vm0, %v4327_v17, 0.0 }
0x27ca   :  { %v4361_v28 = vrot.slane %v4360_v25, 1  ;;  %v4366_v39 = vrot.slane %v4365_v32, 2  ;;  %v4378_v31 = vrot.slane %v4377_v61, 4  ;;  %v4394_v48 = vsel %vm369_vm3, %v4355_v36, %v4393_v34  ;;  %v4553_v14 = vpop.permute.xlu1 %4552 }
0x27cc   :  { %v4367_v15 = vadd.f32 %v4366_v39, %v4365_v32  ;;  %v4379_v54 = vadd.f32 %v4378_v31, %v4377_v61  ;;  %v4362_v63 = vadd.f32 %v4361_v28, %v4360_v25 }
0x27ce   :  { %v4368_v5 = vrot.slane %v4367_v15, 1  ;;  %v4380_v58 = vrot.slane %v4379_v54, 2  ;;  %v4395_v40 = vsel %vm371_vm4, %v4362_v63, %v4394_v48 }
0x27d0   :  { %v4369_v60 = vadd.f32 %v4368_v5, %v4367_v15  ;;  %v4381_v45 = vadd.f32 %v4380_v58, %v4379_v54 }
0x27d2   :  { %v4382_v53 = vrot.slane %v4381_v45, 1  ;;  %v4396_v11 = vsel %vm373_vm5, %v4369_v60, %v4395_v40 }
0x27d3   :  { %v4397_v52 = vsel %vm375_vm6, %v4376_v44, %v4396_v11 }
0x27d4   :  { %v4383_v7 = vadd.f32 %v4382_v53, %v4381_v45 }
0x27d6   :  { %v4398_v46 = vsel %vm377_vm7, %v4383_v7, %v4397_v52 }
0x27d7   :  { %5035 = vmatmul.mubr.msk.f32.vlgmr.msra.gmra.mrb[12].mxu0 %vm108_vm0, %v4398_v46 }
0x28aa   :  { %v4467_v47 = vpop.f32.mrb[12].mxu0 }
0x28ab   :  { %v5176_v51 = vadd.f32 %v5403_v9, %v4467_v47  ;;  %v5036_v18 = vpop.f32.mrb[13].mxu0 }
0x28ad   :  { %v4544_v16 = vadd.f32 %v5176_v51, %v6903_v30 }
0x28af   :  { %v4770_v8 = vmul.f32 -1.442695, %v4544_v16 }
0x28b1   :  { %5368 = vpow2.f32 %v4770_v8 }
0x28bb   :  { %v5369_v57 = vpop.eup %5368 }
0x28bc   :  { %v4548_v62 = vadd.f32 1.0, %v5369_v57 }
0x28be   :  { %5370 = vrcp.f32 %v4548_v62 }
0x28c8   :  { %v5371_v33 = vpop.eup %5370 }
0x28c9   :  { %v4555_v59 = vmul.f32 %v5371_v33, %v4553_v14  ;;  %v4562_v13 = vsub.f32 1.0, %v5371_v33  ;;  %v4568_v30 = vmul.f32 %v5371_v33, %v6769_v43 }
0x28cb   :  { %4557 = vrot.lane.b32.xlu1 %v4555_v59, %s5507_s26  ;;  %s4726_s26 = sshll.u32 %s5510_s8, 4  ;;  %s4727_s26 = int_to_ptr.vmem [resolvable:$true] %s4726_s26 }
0x28cc   :  { %s5470_s20 = scalar_lea.vmem %s4727_s26, 896  ;;  %p5475_p11 = scmp.lt.s32.totalorder %s4727_s26, %s4727_s26 }
0x28cd   :  { %p5471_p10 = scmp.ne.s32.totalorder %s4727_s26, %s5470_s20  ;;  %p5476_p12 = scmp.lt.s32.totalorder %s5470_s20, %s5470_s20 }
0x28cf   :  { %p5477_p13 = por %p5476_p12, %p5475_p11 }
0x28d1   :  { %p5478_p0 = pnand %p5477_p13, %p5471_p10 }
0x293d   :  { %v4558_v21 = vpop.permute.xlu1 %4557 }
0x293e   :  { %v4560_v10 = vadd.f32 %v5176_v51, %v4558_v21 }
0x2940   :  { %5372 = vtanh.f32 %v4560_v10 }
0x294a   :  { %v5373_v42 = vpop.eup %5372 }
0x294b   :  { %4564 = vrot.lane.b32.xlu1 %v5373_v42, %s5508_s25 }
0x29bd   :  { %v4565_v22 = vpop.permute.xlu1 %4564 }
0x29be   :  { %v4567_v27 = vmul.f32 %v4565_v22, %v4562_v13 }
0x29c0   :  { %v4569_v23 = vadd.f32 %v4568_v30, %v4567_v27 }
0x29c2   :  { %4571 = vrot.lane.b32.xlu1 %v4569_v23, %s5508_s25 }
0x2a34   :  { %v4572_v0 = vpop.permute.xlu1 %4571 }
0x2a35   :  { %4574 = vst.msk [vmem:[#allocation2 + $0x30] sm:$0xff] %vm108_vm0, %v4572_v0 }
0x2a3c   :  { %v4581_v24 = vld [vmem:[#allocation2 + $0x30] sm:$0xff] }
0x2a3d   :  { %5075 = vmatmul.mubr.msk.f32.gmra.mrb[26].mxu1 %vm108_vm0, %v4581_v24 }
0x2b10   :  { %v4710_v41 = vpop.f32.mrb[26].mxu1 }
0x2b11   :  { %v4711_v26 = vadd.f32 %v6910_v37, %v4710_v41  ;;  %v5076_v55 = vpop.f32.mrb[27].mxu1 }
0x2b13   :  { %4720 = vst [vmem:[#allocation10 + $0x30] sm:$0xff] %v4711_v26 }
0x2b14   :  { %5481 = shalt.err (!%p5478_p0)
}
0x2b15   :  { %s5482_s22 = scalar_lea.hbm %s6980_s12, 896 }
0x2b16   :  { %p5483_p1 = scmp.ne.s32.totalorder %s6980_s12, %s5482_s22  ;;  %p5486_p2 = scmp.lt.u32.totalorder %s5482_s22, %s6980_s12 }
0x2b18   :  { %p5488_p3 = pnand %p5486_p2, %p5483_p1 }
0x2b1a   :  { %5491 = shalt.err (!%p5488_p3)
}
0x2b1b   :  { %4732 = dma.vmem_to_hbm [thread:$0]  %s4727_s26, 896, %s6980_s12, [#allocation6], %s5500_s16, %s5500_s16, %s5501_s17  }
0x2b1c   :  { %5496 = dma.done.wait [#allocation6], 896  }
0x2b1d   :  { %5497 = vsyncadd [#allocation6], 4294966400 }
0x2b1e   :  { %4736 = vsyncpa [#allocation5], 1 }
0x2b1f   :  { %4737 = vsyncpa [#allocation8], 1 }
0x2b20   :  { %4738 = vsyncpa [#allocation6], 1 }

</bundles_post_ra>
